<compile_context>
chip_gen: v6e
topology: v6e:2x2x1
jax: 0.10.0
libtpu: 0.0.40
codegen_flags: <defaults>
</compile_context>

<pallas_src>
import functools

import jax
import jax.numpy as jnp
from jax import lax
from jax.experimental import pallas as pl
from jax.experimental.pallas import tpu as pltpu


def make_divisible(v, divisor, mini_value=None):
    if not mini_value:
        mini_value = divisor
    new_v = max(mini_value, int(v + divisor / 2) // divisor * divisor)
    if new_v < 0.9 * v:
        new_v += divisor
    return new_v


def _round_up(v, m):
    return (v + m - 1) // m * m


# ----------------------------------------------------------------------------
# Fused Pallas kernel: expand(1x1)+BN+ReLU6 -> dw(3x3)+BN+ReLU6 -> project(1x1)+BN (+res)
# ----------------------------------------------------------------------------

def _mbnv2_fused_kernel(x_ref, we_ref, be_ref, wd_ref, bd_ref, wp_ref, bp_ref,
                        *rest, stride, th, relu6_expand, has_residual,
                        touches_bottom):
    if has_residual:
        rp_ref, o_ref = rest
    else:
        (o_ref,) = rest
        rp_ref = None

    i = pl.program_id(1)                       # output-row tile index
    nrt = pl.num_programs(1)

    w = x_ref.shape[2]
    c1 = x_ref.shape[3]
    cexp = we_ref.shape[1]                     # lane-padded expanded channels
    coutp = wp_ref.shape[1]                    # lane-padded output channels
    rows_in = (th - 1) * stride + 3            # input rows needed (incl. halo)
    wout = (w + 2 - 3) // stride + 1

    # ---- load the halo'd input row slab (input image is H-padded by 1 in wrapper)
    r0 = i * (th * stride)
    slab = x_ref[0, pl.ds(r0, rows_in), :, :]              # (rows_in, w, c1) f32

    # ---- expand 1x1 conv (BN scale folded into weights) + bias (+ ReLU6)
    e = jnp.dot(slab.reshape(rows_in * w, c1), we_ref[...],
                preferred_element_type=jnp.float32) + be_ref[...]
    if relu6_expand:
        e = jnp.clip(e, 0.0, 6.0)
    e3 = e.reshape(rows_in, w, cexp)

    # rows that correspond to the (virtual) zero padding of the expanded tensor
    row_id = lax.broadcasted_iota(jnp.int32, (rows_in, 1, 1), 0)
    pad_row = (row_id == 0) & (i == 0)
    if touches_bottom:
        pad_row = pad_row | ((row_id == rows_in - 1) & (i == nrt - 1))
    e3 = jnp.where(pad_row, 0.0, e3)

    # zero-pad the W dimension in-register (left/right halo columns)
    zcol = jnp.zeros((rows_in, 1, cexp), jnp.float32)
    ep = jnp.concatenate([zcol, e3, zcol], axis=1)          # (rows_in, w+2, cexp)

    # ---- depthwise 3x3 (BN scale folded into weights) + bias + ReLU6
    wd = wd_ref[...]
    acc = jnp.zeros((th, wout, cexp), jnp.float32)
    for ky in range(3):
        for kx in range(3):
            if stride == 1:
                tap = ep[ky:ky + th, kx:kx + wout, :]
            else:
                tap = lax.slice(
                    ep, (ky, kx, 0),
                    (ky + stride * (th - 1) + 1,
                     kx + stride * (wout - 1) + 1, cexp),
                    (stride, stride, 1))
            acc = acc + tap * wd[ky:ky + 1, kx:kx + 1, :]
    y = jnp.clip(acc + bd_ref[...], 0.0, 6.0)

    # ---- project 1x1 conv (BN scale folded) + bias (+ residual via embedding matmul)
    y2 = jnp.dot(y.reshape(th * wout, cexp), wp_ref[...],
                 preferred_element_type=jnp.float32) + bp_ref[...]
    if has_residual:
        # residual only exists when stride == 1, so wout == w and the identity
        # rows are the interior rows of the slab.
        r2 = slab[1:th + 1, :, :].reshape(th * w, c1)
        y2 = y2 + jnp.dot(r2, rp_ref[...], preferred_element_type=jnp.float32)

    o_ref[...] = y2.reshape(1, th, wout, coutp).astype(o_ref.dtype)


def _pick_row_tile(hout, w, h, c1, cexp_pad, cout_pad, stride,
                   budget_bytes=16 << 20):
    """Largest divisor of hout whose per-step VMEM footprint fits the budget."""
    wout = (w + 2 - 3) // stride + 1
    best = 1
    for th in range(1, hout + 1):
        if hout % th:
            continue
        rows_in = (th - 1) * stride + 3
        need = 4 * (
            2 * (h + 2) * w * c1              # resident padded input (double-buffered)
            + rows_in * (w + 2) * cexp_pad    # padded expanded slab (live value)
            + 3 * th * wout * cexp_pad        # dw acc / taps
            + 2 * th * wout * cout_pad        # double-buffered output block
        )
        if need <= budget_bytes:
            best = th
    return best


def mbnv2_fused(xp, we, be, wd, bd, wp, bp, rp, *, stride, th, hout,
                relu6_expand, touches_bottom):
    n, hp, w, c1 = xp.shape
    cexp = we.shape[1]
    coutp = wp.shape[1]
    wout = (w + 2 - 3) // stride + 1
    has_res = rp is not None

    kernel = functools.partial(
        _mbnv2_fused_kernel, stride=stride, th=th,
        relu6_expand=relu6_expand, has_residual=has_res,
        touches_bottom=touches_bottom)

    in_specs = [
        # whole (H-padded) image per batch element; block index constant over the
        # row-tile axis, so it is fetched once per batch element.
        pl.BlockSpec((1, hp, w, c1), lambda b, i: (b, 0, 0, 0)),
        pl.BlockSpec((c1, cexp), lambda b, i: (0, 0)),
        pl.BlockSpec((1, cexp), lambda b, i: (0, 0)),
        pl.BlockSpec((3, 3, cexp), lambda b, i: (0, 0, 0)),
        pl.BlockSpec((1, 1, cexp), lambda b, i: (0, 0, 0)),
        pl.BlockSpec((cexp, coutp), lambda b, i: (0, 0)),
        pl.BlockSpec((1, coutp), lambda b, i: (0, 0)),
    ]
    args = [xp, we, be, wd, bd, wp, bp]
    if has_res:
        in_specs.append(pl.BlockSpec((c1, coutp), lambda b, i: (0, 0)))
        args.append(rp)

    return pl.pallas_call(
        kernel,
        out_shape=jax.ShapeDtypeStruct((n, hout, wout, coutp), jnp.float32),
        grid=(n, hout // th),
        in_specs=in_specs,
        out_specs=pl.BlockSpec((1, th, wout, coutp), lambda b, i: (b, i, 0, 0)),
        compiler_params=pltpu.CompilerParams(
            dimension_semantics=("parallel", "arbitrary")),
    )(*args)


# ----------------------------------------------------------------------------
# Module
# ----------------------------------------------------------------------------

def _bn_fold(keys, c, eps=1e-5):
    """Deterministic synthetic BN params, folded to (scale, bias)."""
    g = 1.0 + 0.1 * jax.random.normal(keys[0], (c,), jnp.float32)
    b = 0.1 * jax.random.normal(keys[1], (c,), jnp.float32)
    m = 0.1 * jax.random.normal(keys[2], (c,), jnp.float32)
    v = 1.0 + 0.1 * jnp.abs(jax.random.normal(keys[3], (c,), jnp.float32))
    scale = g / jnp.sqrt(v + eps)
    bias = b - m * scale
    return scale, bias


class Mbnv2BlockPallas:
    """Pallas implementation of Mbnv2_block.forward (inference BN semantics)."""

    def __init__(self, c1, c2, stride, expansion, block_id, alpha=0.5, key=None):
        self.pointwise_filters = make_divisible(int(c2 * alpha), 8)
        self.in_channels = c1
        self.block_id = block_id
        self.stride = stride
        self.cexp = c1 * expansion
        if not block_id:
            # As in the PyTorch module: skipping expand_conv only type-checks when
            # the depthwise/project convs see c1 channels, i.e. expansion == 1.
            assert expansion == 1, "block_id=0 requires expansion == 1"

        key = jax.random.PRNGKey(0) if key is None else key
        ks = jax.random.split(key, 15)

        # raw parameters (used by the pure-JAX reference)
        self.w_expand = 0.1 * jax.random.normal(ks[0], (c1, self.cexp), jnp.float32)
        self.s_expand, self.b_expand = _bn_fold(ks[1:5], self.cexp)
        self.w_dw = 0.1 * jax.random.normal(ks[5], (3, 3, self.cexp), jnp.float32)
        self.s_dw, self.b_dw = _bn_fold(ks[6:10], self.cexp)
        self.w_pw = 0.1 * jax.random.normal(
            ks[10], (self.cexp, self.pointwise_filters), jnp.float32)
        self.s_pw, self.b_pw = _bn_fold(ks[11:15], self.pointwise_filters)

        # ---- fold BN scale into weights & pad channel dims to lane multiples (128)
        ce = self.cexp
        pf = self.pointwise_filters
        self.cexp_pad = _round_up(ce, 128)
        self.cout_pad = _round_up(pf, 128)
        cep, cop = self.cexp_pad, self.cout_pad

        if block_id:
            we = self.w_expand * self.s_expand[None, :]
            be = self.b_expand
            self.relu6_expand = True
        else:
            # no expand conv: use an identity embedding (expansion == 1), no ReLU6
            we = jnp.eye(c1, ce, dtype=jnp.float32)
            be = jnp.zeros((ce,), jnp.float32)
            self.relu6_expand = False

        self.we_f = jnp.pad(we, ((0, 0), (0, cep - ce)))
        self.be_f = jnp.pad(be, (0, cep - ce)).reshape(1, cep)
        self.wd_f = jnp.pad(self.w_dw * self.s_dw, ((0, 0), (0, 0), (0, cep - ce)))
        self.bd_f = jnp.pad(self.b_dw, (0, cep - ce)).reshape(1, 1, cep)
        self.wp_f = jnp.pad(self.w_pw * self.s_pw[None, :],
                            ((0, cep - ce), (0, cop - pf)))
        self.bp_f = jnp.pad(self.b_pw, (0, cop - pf)).reshape(1, cop)

        self.has_residual = (stride == 1 and pf == c1)
        self.rproj = (jnp.eye(c1, cop, dtype=jnp.float32)
                      if self.has_residual else None)

    def __call__(self, x_nchw):
        n, c, h, w = x_nchw.shape
        # TODO(synk): keep the whole network NHWC end-to-end to drop these transposes.
        x = jnp.transpose(x_nchw, (0, 2, 3, 1))             # NCHW -> NHWC
        hout = (h + 2 - 3) // self.stride + 1
        wout = (w + 2 - 3) // self.stride + 1
        touches_bottom = ((hout - 1) * self.stride + 2) == (h + 1)
        th = _pick_row_tile(hout, w, h, c, self.cexp_pad, self.cout_pad,
                            self.stride)
        # 1-row halo pad of the *small* c1-channel input only (no pad of the
        # big expanded activation; W-pad is generated in-kernel).
        xp = jnp.pad(x, ((0, 0), (1, 1), (0, 0), (0, 0)))

        out = mbnv2_fused(
            xp, self.we_f, self.be_f, self.wd_f, self.bd_f, self.wp_f,
            self.bp_f, self.rproj, stride=self.stride, th=th, hout=hout,
            relu6_expand=self.relu6_expand, touches_bottom=touches_bottom)

        out = out[..., :self.pointwise_filters]             # drop lane padding
        return jnp.transpose(out, (0, 3, 1, 2))             # NHWC -> NCHW


# ----------------------------------------------------------------------------
# Pure-JAX reference (for correctness check)
# ----------------------------------------------------------------------------

def reference_forward(blk, x_nchw):
    x = jnp.transpose(x_nchw, (0, 2, 3, 1))
    identity = x
    if blk.block_id:
        y = jnp.einsum('nhwc,cd->nhwd', x, blk.w_expand)
        x = jnp.clip(y * blk.s_expand + blk.b_expand, 0.0, 6.0)
    rhs = blk.w_dw.reshape(3, 3, 1, blk.cexp)
    y = lax.conv_general_dilated(
        x, rhs, window_strides=(blk.stride, blk.stride),
        padding=((1, 1), (1, 1)),
        dimension_numbers=('NHWC', 'HWIO', 'NHWC'),
        feature_group_count=blk.cexp)
    y = jnp.clip(y * blk.s_dw + blk.b_dw, 0.0, 6.0)
    y = jnp.einsum('nhwc,cd->nhwd', y, blk.w_pw)
    y = y * blk.s_pw + blk.b_pw
    if blk.stride == 1 and blk.pointwise_filters == blk.in_channels:
        y = y + identity
    return jnp.transpose(y, (0, 3, 1, 2))


if __name__ == "__main__":
    key = jax.random.PRNGKey(0)
    configs = [
        # (c1, c2, stride, expansion, block_id)
        (8, 16, 1, 2, 1),   # residual path (pointwise_filters == c1)
        (8, 32, 1, 2, 1),   # no residual (pointwise_filters = 16 != c1)
        (8, 16, 1, 1, 0),   # block_id = 0 (expansion == 1), residual active
    ]
    for idx, (c1, c2, stride, expansion, block_id) in enumerate(configs):
        kx, kp = jax.random.split(jax.random.fold_in(key, idx))
        x = jax.random.normal(kx, (2, c1, 16, 16), jnp.float32)
        blk = Mbnv2BlockPallas(c1, c2, stride, expansion, block_id, key=kp)
        out = jax.block_until_ready(blk(x))
        ref = reference_forward(blk, x)
        assert out.shape == ref.shape, f"shape mismatch in config {idx}"
        assert jnp.allclose(out, ref, atol=1e-4, rtol=1e-4), \
            f"numerical mismatch vs reference in config {idx}"
    print("KERNEL_OK")
</pallas_src>

<mosaic_0001>
module attributes {stable_mosaic.version = 11 : i64} {
  func.func @_mbnv2_fused_kernel(%arg0: i32, %arg1: i32, %arg2: memref<1x18x16x8xf32, #tpu.memory_space<vmem>>, %arg3: memref<8x128xf32, #tpu.memory_space<vmem>>, %arg4: memref<1x128xf32, #tpu.memory_space<vmem>>, %arg5: memref<3x3x128xf32, #tpu.memory_space<vmem>>, %arg6: memref<1x1x128xf32, #tpu.memory_space<vmem>>, %arg7: memref<128x128xf32, #tpu.memory_space<vmem>>, %arg8: memref<1x128xf32, #tpu.memory_space<vmem>>, %arg9: memref<8x128xf32, #tpu.memory_space<vmem>>, %arg10: memref<1x16x16x128xf32, #tpu.memory_space<vmem>>) attributes {dimension_semantics = [#tpu.dimension_semantics<parallel>, #tpu.dimension_semantics<arbitrary>], iteration_bounds = array<i64: 2, 1>, scalar_prefetch = 0 : i64, scratch_operands = 0 : i64, tpu.core_type = #tpu.core_type<tc>, window_params = [{transform_indices = @transform_0, window_bounds = array<i64: 1, 18, 16, 8>}, {pipeline_mode = #tpu.pipeline_mode<synchronous>, transform_indices = @transform_1, window_bounds = array<i64: 8, 128>}, {pipeline_mode = #tpu.pipeline_mode<synchronous>, transform_indices = @transform_2, window_bounds = array<i64: 1, 128>}, {pipeline_mode = #tpu.pipeline_mode<synchronous>, transform_indices = @transform_3, window_bounds = array<i64: 3, 3, 128>}, {pipeline_mode = #tpu.pipeline_mode<synchronous>, transform_indices = @transform_4, window_bounds = array<i64: 1, 1, 128>}, {pipeline_mode = #tpu.pipeline_mode<synchronous>, transform_indices = @transform_5, window_bounds = array<i64: 128, 128>}, {pipeline_mode = #tpu.pipeline_mode<synchronous>, transform_indices = @transform_6, window_bounds = array<i64: 1, 128>}, {pipeline_mode = #tpu.pipeline_mode<synchronous>, transform_indices = @transform_7, window_bounds = array<i64: 8, 128>}, {transform_indices = @transform_8, window_bounds = array<i64: 1, 16, 16, 128>}]} {
    %c16_i32 = arith.constant 16 : i32
    %0 = arith.muli %arg1, %c16_i32 : i32
    %c0 = arith.constant 0 : index
    %1 = arith.index_cast %0 : i32 to index
    %c0_0 = arith.constant 0 : index
    %c0_1 = arith.constant 0 : index
    %2 = vector.load %arg2[%c0, %1, %c0_0, %c0_1] : memref<1x18x16x8xf32, #tpu.memory_space<vmem>>, vector<1x18x16x8xf32>
    %3 = vector.shape_cast %2 : vector<1x18x16x8xf32> to vector<18x16x8xf32>
    %4 = vector.shape_cast %3 : vector<18x16x8xf32> to vector<288x8xf32>
    %c0_2 = arith.constant 0 : index
    %c0_3 = arith.constant 0 : index
    %5 = vector.load %arg3[%c0_2, %c0_3] : memref<8x128xf32, #tpu.memory_space<vmem>>, vector<8x128xf32>
    %cst = arith.constant dense<0.000000e+00> : vector<288x128xf32>
    %6 = tpu.matmul %4, %5, %cst {dimension_numbers = #tpu.dot_dimension_numbers<[1], [0], [0], [1], [0, 0, 1, 1], [], []>} : vector<288x8xf32>, vector<8x128xf32>, vector<288x128xf32> -> vector<288x128xf32>
    %c0_4 = arith.constant 0 : index
    %c0_5 = arith.constant 0 : index
    %7 = vector.load %arg4[%c0_4, %c0_5] : memref<1x128xf32, #tpu.memory_space<vmem>>, vector<1x128xf32>
    %8 = vector.broadcast %7 : vector<1x128xf32> to vector<288x128xf32>
    %9 = arith.addf %6, %8 : vector<288x128xf32>
    %cst_6 = arith.constant 0.000000e+00 : f32
    %cst_7 = arith.constant 6.000000e+00 : f32
    %10 = vector.broadcast %cst_6 : f32 to vector<288x128xf32>
    %11 = arith.maximumf %10, %9 : vector<288x128xf32>
    %12 = vector.broadcast %cst_7 : f32 to vector<288x128xf32>
    %13 = arith.minimumf %12, %11 : vector<288x128xf32>
    %14 = vector.shape_cast %13 : vector<288x128xf32> to vector<18x16x128xf32>
    %15 = tpu.iota {dimensions = array<i32: 0>} : vector<18x1x1xi32>
    %c0_i32 = arith.constant 0 : i32
    %16 = vector.broadcast %c0_i32 : i32 to vector<18x1x1xi32>
    %17 = arith.cmpi eq, %15, %16 : vector<18x1x1xi32>
    %c0_i32_8 = arith.constant 0 : i32
    %18 = arith.cmpi eq, %arg1, %c0_i32_8 : i32
    %19 = vector.broadcast %18 : i1 to vector<18x1x1xi1>
    %20 = arith.andi %17, %19 : vector<18x1x1xi1>
    %c17_i32 = arith.constant 17 : i32
    %21 = vector.broadcast %c17_i32 : i32 to vector<18x1x1xi32>
    %22 = arith.cmpi eq, %15, %21 : vector<18x1x1xi32>
    %c0_i32_9 = arith.constant 0 : i32
    %23 = arith.cmpi eq, %arg1, %c0_i32_9 : i32
    %24 = vector.broadcast %23 : i1 to vector<18x1x1xi1>
    %25 = arith.andi %22, %24 : vector<18x1x1xi1>
    %26 = arith.ori %20, %25 : vector<18x1x1xi1>
    %cst_10 = arith.constant 0.000000e+00 : f32
    %27 = vector.shape_cast %26 : vector<18x1x1xi1> to vector<18x1x1xi1>
    %28 = vector.broadcast %27 : vector<18x1x1xi1> to vector<18x16x128xi1>
    %29 = vector.broadcast %cst_10 : f32 to vector<18x16x128xf32>
    %30 = arith.select %28, %29, %14 : vector<18x16x128xi1>, vector<18x16x128xf32>
    %cst_11 = arith.constant 0.000000e+00 : f32
    %31 = vector.broadcast %cst_11 : f32 to vector<18x1x128xf32>
    %32 = tpu.concatenate %31, %30, %31 in 1 : vector<18x1x128xf32>, vector<18x16x128xf32>, vector<18x1x128xf32> -> vector<18x18x128xf32>
    %c0_12 = arith.constant 0 : index
    %c0_13 = arith.constant 0 : index
    %c0_14 = arith.constant 0 : index
    %33 = vector.load %arg5[%c0_12, %c0_13, %c0_14] : memref<3x3x128xf32, #tpu.memory_space<vmem>>, vector<3x3x128xf32>
    %cst_15 = arith.constant 0.000000e+00 : f32
    %34 = vector.broadcast %cst_15 : f32 to vector<16x16x128xf32>
    %35 = vector.extract_strided_slice %32 {offsets = [0, 0, 0], sizes = [16, 16, 128], strides = [1, 1, 1]} : vector<18x18x128xf32> to vector<16x16x128xf32>
    %36 = vector.extract_strided_slice %33 {offsets = [0, 0, 0], sizes = [1, 1, 128], strides = [1, 1, 1]} : vector<3x3x128xf32> to vector<1x1x128xf32>
    %37 = vector.broadcast %36 : vector<1x1x128xf32> to vector<16x16x128xf32>
    %38 = arith.mulf %35, %37 : vector<16x16x128xf32>
    %39 = arith.addf %34, %38 : vector<16x16x128xf32>
    %40 = vector.extract_strided_slice %32 {offsets = [0, 1, 0], sizes = [16, 16, 128], strides = [1, 1, 1]} : vector<18x18x128xf32> to vector<16x16x128xf32>
    %41 = vector.extract_strided_slice %33 {offsets = [0, 1, 0], sizes = [1, 1, 128], strides = [1, 1, 1]} : vector<3x3x128xf32> to vector<1x1x128xf32>
    %42 = vector.broadcast %41 : vector<1x1x128xf32> to vector<16x16x128xf32>
    %43 = arith.mulf %40, %42 : vector<16x16x128xf32>
    %44 = arith.addf %39, %43 : vector<16x16x128xf32>
    %45 = vector.extract_strided_slice %32 {offsets = [0, 2, 0], sizes = [16, 16, 128], strides = [1, 1, 1]} : vector<18x18x128xf32> to vector<16x16x128xf32>
    %46 = vector.extract_strided_slice %33 {offsets = [0, 2, 0], sizes = [1, 1, 128], strides = [1, 1, 1]} : vector<3x3x128xf32> to vector<1x1x128xf32>
    %47 = vector.broadcast %46 : vector<1x1x128xf32> to vector<16x16x128xf32>
    %48 = arith.mulf %45, %47 : vector<16x16x128xf32>
    %49 = arith.addf %44, %48 : vector<16x16x128xf32>
    %50 = vector.extract_strided_slice %32 {offsets = [1, 0, 0], sizes = [16, 16, 128], strides = [1, 1, 1]} : vector<18x18x128xf32> to vector<16x16x128xf32>
    %51 = vector.extract_strided_slice %33 {offsets = [1, 0, 0], sizes = [1, 1, 128], strides = [1, 1, 1]} : vector<3x3x128xf32> to vector<1x1x128xf32>
    %52 = vector.broadcast %51 : vector<1x1x128xf32> to vector<16x16x128xf32>
    %53 = arith.mulf %50, %52 : vector<16x16x128xf32>
    %54 = arith.addf %49, %53 : vector<16x16x128xf32>
    %55 = vector.extract_strided_slice %32 {offsets = [1, 1, 0], sizes = [16, 16, 128], strides = [1, 1, 1]} : vector<18x18x128xf32> to vector<16x16x128xf32>
    %56 = vector.extract_strided_slice %33 {offsets = [1, 1, 0], sizes = [1, 1, 128], strides = [1, 1, 1]} : vector<3x3x128xf32> to vector<1x1x128xf32>
    %57 = vector.broadcast %56 : vector<1x1x128xf32> to vector<16x16x128xf32>
    %58 = arith.mulf %55, %57 : vector<16x16x128xf32>
    %59 = arith.addf %54, %58 : vector<16x16x128xf32>
    %60 = vector.extract_strided_slice %32 {offsets = [1, 2, 0], sizes = [16, 16, 128], strides = [1, 1, 1]} : vector<18x18x128xf32> to vector<16x16x128xf32>
    %61 = vector.extract_strided_slice %33 {offsets = [1, 2, 0], sizes = [1, 1, 128], strides = [1, 1, 1]} : vector<3x3x128xf32> to vector<1x1x128xf32>
    %62 = vector.broadcast %61 : vector<1x1x128xf32> to vector<16x16x128xf32>
    %63 = arith.mulf %60, %62 : vector<16x16x128xf32>
    %64 = arith.addf %59, %63 : vector<16x16x128xf32>
    %65 = vector.extract_strided_slice %32 {offsets = [2, 0, 0], sizes = [16, 16, 128], strides = [1, 1, 1]} : vector<18x18x128xf32> to vector<16x16x128xf32>
    %66 = vector.extract_strided_slice %33 {offsets = [2, 0, 0], sizes = [1, 1, 128], strides = [1, 1, 1]} : vector<3x3x128xf32> to vector<1x1x128xf32>
    %67 = vector.broadcast %66 : vector<1x1x128xf32> to vector<16x16x128xf32>
    %68 = arith.mulf %65, %67 : vector<16x16x128xf32>
    %69 = arith.addf %64, %68 : vector<16x16x128xf32>
    %70 = vector.extract_strided_slice %32 {offsets = [2, 1, 0], sizes = [16, 16, 128], strides = [1, 1, 1]} : vector<18x18x128xf32> to vector<16x16x128xf32>
    %71 = vector.extract_strided_slice %33 {offsets = [2, 1, 0], sizes = [1, 1, 128], strides = [1, 1, 1]} : vector<3x3x128xf32> to vector<1x1x128xf32>
    %72 = vector.broadcast %71 : vector<1x1x128xf32> to vector<16x16x128xf32>
    %73 = arith.mulf %70, %72 : vector<16x16x128xf32>
    %74 = arith.addf %69, %73 : vector<16x16x128xf32>
    %75 = vector.extract_strided_slice %32 {offsets = [2, 2, 0], sizes = [16, 16, 128], strides = [1, 1, 1]} : vector<18x18x128xf32> to vector<16x16x128xf32>
    %76 = vector.extract_strided_slice %33 {offsets = [2, 2, 0], sizes = [1, 1, 128], strides = [1, 1, 1]} : vector<3x3x128xf32> to vector<1x1x128xf32>
    %77 = vector.broadcast %76 : vector<1x1x128xf32> to vector<16x16x128xf32>
    %78 = arith.mulf %75, %77 : vector<16x16x128xf32>
    %79 = arith.addf %74, %78 : vector<16x16x128xf32>
    %c0_16 = arith.constant 0 : index
    %c0_17 = arith.constant 0 : index
    %c0_18 = arith.constant 0 : index
    %80 = vector.load %arg6[%c0_16, %c0_17, %c0_18] : memref<1x1x128xf32, #tpu.memory_space<vmem>>, vector<1x1x128xf32>
    %81 = vector.broadcast %80 : vector<1x1x128xf32> to vector<16x16x128xf32>
    %82 = arith.addf %79, %81 : vector<16x16x128xf32>
    %cst_19 = arith.constant 0.000000e+00 : f32
    %cst_20 = arith.constant 6.000000e+00 : f32
    %83 = vector.broadcast %cst_19 : f32 to vector<16x16x128xf32>
    %84 = arith.maximumf %83, %82 : vector<16x16x128xf32>
    %85 = vector.broadcast %cst_20 : f32 to vector<16x16x128xf32>
    %86 = arith.minimumf %85, %84 : vector<16x16x128xf32>
    %87 = vector.shape_cast %86 : vector<16x16x128xf32> to vector<256x128xf32>
    %c0_21 = arith.constant 0 : index
    %c0_22 = arith.constant 0 : index
    %88 = vector.load %arg7[%c0_21, %c0_22] : memref<128x128xf32, #tpu.memory_space<vmem>>, vector<128x128xf32>
    %cst_23 = arith.constant dense<0.000000e+00> : vector<256x128xf32>
    %89 = tpu.matmul %87, %88, %cst_23 {dimension_numbers = #tpu.dot_dimension_numbers<[1], [0], [0], [1], [0, 0, 1, 1], [], []>} : vector<256x128xf32>, vector<128x128xf32>, vector<256x128xf32> -> vector<256x128xf32>
    %c0_24 = arith.constant 0 : index
    %c0_25 = arith.constant 0 : index
    %90 = vector.load %arg8[%c0_24, %c0_25] : memref<1x128xf32, #tpu.memory_space<vmem>>, vector<1x128xf32>
    %91 = vector.broadcast %90 : vector<1x128xf32> to vector<256x128xf32>
    %92 = arith.addf %89, %91 : vector<256x128xf32>
    %93 = vector.extract_strided_slice %3 {offsets = [1, 0, 0], sizes = [16, 16, 8], strides = [1, 1, 1]} : vector<18x16x8xf32> to vector<16x16x8xf32>
    %94 = vector.shape_cast %93 : vector<16x16x8xf32> to vector<256x8xf32>
    %c0_26 = arith.constant 0 : index
    %c0_27 = arith.constant 0 : index
    %95 = vector.load %arg9[%c0_26, %c0_27] : memref<8x128xf32, #tpu.memory_space<vmem>>, vector<8x128xf32>
    %cst_28 = arith.constant dense<0.000000e+00> : vector<256x128xf32>
    %96 = tpu.matmul %94, %95, %cst_28 {dimension_numbers = #tpu.dot_dimension_numbers<[1], [0], [0], [1], [0, 0, 1, 1], [], []>} : vector<256x8xf32>, vector<8x128xf32>, vector<256x128xf32> -> vector<256x128xf32>
    %97 = arith.addf %92, %96 : vector<256x128xf32>
    %98 = vector.shape_cast %97 : vector<256x128xf32> to vector<1x16x16x128xf32>
    %c0_29 = arith.constant 0 : index
    %c0_30 = arith.constant 0 : index
    %c0_31 = arith.constant 0 : index
    %c0_32 = arith.constant 0 : index
    %99 = vector.load %arg10[%c0_29, %c0_30, %c0_31, %c0_32] : memref<1x16x16x128xf32, #tpu.memory_space<vmem>>, vector<1x16x16x128xf32>
    tpu.vector_store %arg10[%c0_29, %c0_30, %c0_31, %c0_32], %98 {strides = array<i32>} : memref<1x16x16x128xf32, #tpu.memory_space<vmem>>, vector<1x16x16x128xf32>,
    return
  }
  func.func @transform_0(%arg0: i32, %arg1: i32) -> (i32, i32, i32, i32) {
    %c0_i32 = arith.constant 0 : i32
    %c0_i32_0 = arith.constant 0 : i32
    %c0_i32_1 = arith.constant 0 : i32
    %c0_i32_2 = arith.constant 0 : i32
    return %arg0, %c0_i32, %c0_i32_0, %c0_i32_1 : i32, i32, i32, i32
  }
  func.func @transform_1(%arg0: i32, %arg1: i32) -> (i32, i32) {
    %c0_i32 = arith.constant 0 : i32
    %c0_i32_0 = arith.constant 0 : i32
    %c0_i32_1 = arith.constant 0 : i32
    return %c0_i32, %c0_i32_0 : i32, i32
  }
  func.func @transform_2(%arg0: i32, %arg1: i32) -> (i32, i32) {
    %c0_i32 = arith.constant 0 : i32
    %c0_i32_0 = arith.constant 0 : i32
    %c0_i32_1 = arith.constant 0 : i32
    return %c0_i32, %c0_i32_0 : i32, i32
  }
  func.func @transform_3(%arg0: i32, %arg1: i32) -> (i32, i32, i32) {
    %c0_i32 = arith.constant 0 : i32
    %c0_i32_0 = arith.constant 0 : i32
    %c0_i32_1 = arith.constant 0 : i32
    %c0_i32_2 = arith.constant 0 : i32
    return %c0_i32, %c0_i32_0, %c0_i32_1 : i32, i32, i32
  }
  func.func @transform_4(%arg0: i32, %arg1: i32) -> (i32, i32, i32) {
    %c0_i32 = arith.constant 0 : i32
    %c0_i32_0 = arith.constant 0 : i32
    %c0_i32_1 = arith.constant 0 : i32
    %c0_i32_2 = arith.constant 0 : i32
    return %c0_i32, %c0_i32_0, %c0_i32_1 : i32, i32, i32
  }
  func.func @transform_5(%arg0: i32, %arg1: i32) -> (i32, i32) {
    %c0_i32 = arith.constant 0 : i32
    %c0_i32_0 = arith.constant 0 : i32
    %c0_i32_1 = arith.constant 0 : i32
    return %c0_i32, %c0_i32_0 : i32, i32
  }
  func.func @transform_6(%arg0: i32, %arg1: i32) -> (i32, i32) {
    %c0_i32 = arith.constant 0 : i32
    %c0_i32_0 = arith.constant 0 : i32
    %c0_i32_1 = arith.constant 0 : i32
    return %c0_i32, %c0_i32_0 : i32, i32
  }
  func.func @transform_7(%arg0: i32, %arg1: i32) -> (i32, i32) {
    %c0_i32 = arith.constant 0 : i32
    %c0_i32_0 = arith.constant 0 : i32
    %c0_i32_1 = arith.constant 0 : i32
    return %c0_i32, %c0_i32_0 : i32, i32
  }
  func.func @transform_8(%arg0: i32, %arg1: i32) -> (i32, i32, i32, i32) {
    %c0_i32 = arith.constant 0 : i32
    %c0_i32_0 = arith.constant 0 : i32
    %c0_i32_1 = arith.constant 0 : i32
    return %arg0, %arg1, %c0_i32, %c0_i32_0 : i32, i32, i32, i32
  }
}

</mosaic_0001>

<bundles_post_ra>
// kernel: tpu_custom_call.1
= control target key start
LH: loop header
LB: loop body
LE: loop exit
PB: predicated region body
PF: predicated region fallthrough
CT: control target
= control target key end

     0   :  { %13 = vsyncpa [#allocation3], 0  ;;  %s6374_s0 = inlined_call_operand.vmem [shape: f32[2,18,16,8], index: 0, kind: input, shape index: {}]   ;;  %s6375_s1 = inlined_call_operand.vmem [shape: f32[8,128], index: 1, kind: input, shape index: {}]   ;;  %s6376_s2 = inlined_call_operand.vmem [shape: f32[1,128], index: 2, kind: input, shape index: {}]   ;;  %s6377_s3 = inlined_call_operand.vmem [shape: f32[3,3,128], index: 3, kind: input, shape index: {}]   ;;  %s6378_s4 = inlined_call_operand.vmem [shape: f32[1,1,128], index: 4, kind: input, shape index: {}]   ;;  %s6379_s5 = inlined_call_operand.vmem [shape: f32[128,128], index: 5, kind: input, shape index: {}]   ;;  %s6380_s6 = inlined_call_operand.vmem [shape: f32[1,128], index: 6, kind: input, shape index: {}]   ;;  %s6381_s7 = inlined_call_operand.vmem [shape: f32[8,128], index: 7, kind: input, shape index: {}]   ;;  %s6382_s8 = inlined_call_operand.hbm [shape: f32[2,16,16,128], index: 8, kind: output, shape index: {}]  }
   0x1   :  { %15 = vsyncpa [#allocation3 + $0x1], 0  ;;  %s4000_s27 = smov 0   ;;  %s4002_s28 = smov 0  }
   0x2   :  { %s4004_s29 = smov 0   ;;  %s4006_s30 = smov 0  }
   0x3   :  { %s4008_s9 = smov 0   ;;  %s4010_s10 = smov 0  }
   0x4 LB: > { %s3421_s11 = sadd.s32 4294967295, %s3949_s10   ;;  %s3422_s12 = sadd.s32 4294967294, %s3949_s10   ;;  %s3949_s10 = sphi %s4010_s10, %s21_s10   ;;  %s3945_s9 = sphi %s4008_s9, %s6872_s9   ;;  %s3941_s30 = sphi %s4006_s30, %s6871_s30   ;;  %s3937_s29 = sphi %s4004_s29, %s6870_s29   ;;  %s3933_s28 = sphi %s4002_s28, %s6869_s28   ;;  %s3929_s27 = sphi %s4000_s27, %s6868_s27  }
   0x5   : > { %s33_s13 = sadd.s32 1, %s3945_s9  ;;  %s215_s14 = sadd.s32 1, %s3937_s29 }
   0x6   : > { %p35_p0 = scmp.ge.s32.totalorder %s33_s13, 2  ;;  %p225_p1 = scmp.ne.s32.totalorder %s3937_s29, %s3933_s28 }
   0x7   : > { %p226_p2 = scmp.eq.s32.totalorder %s3421_s11, 1  ;;  %p231_p3 = scmp.ne.s32.totalorder %s3933_s28, %s3929_s27 }
   0x8   : > { %s6874_s13 = smov (%p35_p0, %s33_s13), 0  ;;  %p232_p5 = scmp.eq.s32.totalorder %s3422_s12, 1 }
   0x9   : > { %p4040_p4 = por %p226_p2, %p225_p1  ;;  %s210_s16 = ssub.s32 %s3945_s9, %s6874_s13 }
   0xa   : > { %p3425_p6 = scmp.ge.s32.totalorder %s3949_s10, 1  ;;  %p213_p7 = scmp.eq.s32.totalorder %s210_s16, 0 }
   0xb   : > { %p4047_p8 = por %p232_p5, %p231_p3  ;;  %p279_p9 = scmp.lt.s32.totalorder %s3949_s10, 3 }
   0xc   : > { %s4053_s18 = scalar_select %p213_p7, %s3937_s29, %s215_s14  }
   0xd   : > { %p280_p10 = pnand %p3425_p6, %p279_p9 }
   0xf   : > { %283 = sbr.rel (%p280_p10) target bundleno = 810 (0x32a), region = 52 }
  0x14   : > { %v358_v0 = vld [vmem:[%s6375_s1] sm:$0xff]  ;;  %p313_p11 = scmp.lt.s32.totalorder %s3941_s30, 1  ;;  %vm366_vm0 = vcmask 64512   ;;  %v2806_v35 = vld [vmem:[%s6379_s5 + $0x78] sm:$0xff]  ;;  %v2805_v36 = vld [vmem:[%s6379_s5 + $0x70] sm:$0xff]  ;;  %v1018_v54 = vlaneseq  ;;  %v3951_v58 = vmov 0.0  }
  0x15   : > { %3623 = vmatprep.subr.mxu0 %v358_v0  ;;  %3809 = vmatprep.subr.mxu1 %v358_v0  ;;  %v3039_v37 = vld [vmem:[%s6381_s7] sm:$0xff]  ;;  %v2804_v38 = vld [vmem:[%s6379_s5 + $0x68] sm:$0xff]  ;;  %v2802_v40 = vld [vmem:[%s6379_s5 + $0x58] sm:$0xff]  ;;  %v4327_v59 = vrot.slane %v3951_v58, 7  ;;  %vm870_vm1 = vcmask 1040384   ;;  %vm1186_vm2 = vcmask 1046528  }
  0x16   : > { %3624 = vmatpush3.msra.mxu0 %v358_v0  ;;  %s314_s21 = scalar_select %p313_p11, %s3941_s30, 1  ;;  %3810 = vmatpush3.msra.mxu1 %v358_v0  ;;  %v2803_v39 = vld [vmem:[%s6379_s5 + $0x60] sm:$0xff]  ;;  %v2801_v41 = vld [vmem:[%s6379_s5 + $0x50] sm:$0xff]  ;;  %v2800_v42 = vld [vmem:[%s6379_s5 + $0x48] sm:$0xff]  ;;  %v1019_v55 = vshrl.u32 %v1018_v54, 7  ;;  %vm1431_vm3 = vcmask 1045504  }
  0x17   : > { %3679 = vmatprep.subr.mxu1 %v2806_v35  ;;  %3759 = vmatprep.subr.mxu0 %v3039_v37  ;;  %v2799_v43 = vld [vmem:[%s6379_s5 + $0x40] sm:$0xff]  ;;  %v2798_v44 = vld [vmem:[%s6379_s5 + $0x38] sm:$0xff]  ;;  %v2797_v45 = vld [vmem:[%s6379_s5 + $0x30] sm:$0xff]  ;;  %6507 = vst [vmem:[#allocation5_spill] sm:$0xff] %v4327_v59  ;;  %v4333_v62 = vsel %vm870_vm1, 0.0, %v4327_v59  ;;  %v4337_v63 = vsel %vm870_vm1, %v4327_v59, 0.0 }
  0x18   : > { %s3811_s22 = smul.u32 288, %s314_s21  ;;  %v2796_v46 = vld [vmem:[%s6379_s5 + $0x28] sm:$0xff]  ;;  %v2795_v47 = vld [vmem:[%s6379_s5 + $0x20] sm:$0xff]  ;;  %v2794_v48 = vld [vmem:[%s6379_s5 + $0x18] sm:$0xff]  ;;  %v1088_v56 = vsub.s32 1, %v1019_v55  ;;  %v1333_v61 = vsub.s32 2, %v1019_v55 }
  0x19   : > { %v2793_v49 = vld [vmem:[%s6379_s5 + $0x10] sm:$0xff]  ;;  %v2792_v52 = vld [vmem:[%s6379_s5 + $0x8] sm:$0xff]  ;;  %v2791_v53 = vld [vmem:[%s6379_s5] sm:$0xff]  ;;  %6508 = vst [vmem:[#allocation6_spill] sm:$0xff] %v4333_v62  ;;  %v4339_v0 = vsub.s32 0, %v1019_v55  ;;  %s310_s12 = sand.u32 1, %s3933_s28  }
  0x1a   : > { %s4063_s25 = scalar_lea.vmem %s6374_s0, %s3811_s22  ;;  %v1015_v57 = vld [vmem:[%s6377_s3] sm:$0x7]  ;;  %6509 = vst [vmem:[#allocation7_spill] sm:$0xff] %v4337_v63  ;;  %s3426_s19 = sshll.u32 %s310_s12, 8 }
  0x1b   : > { %v322_v1 = vld [vmem:[%s4063_s25] sm:$0xff]  ;;  %v323_v2 = vld [vmem:[%s4063_s25 + $0x8] sm:$0xff]  ;;  %v4068_v3 = vld [vmem:[%s4063_s25 + $0x10] sm:$0xff]  ;;  %v4329_v60 = vrot.slane %v1015_v57, %v1088_v56  ;;  %s6253_s22 = scalar_lea.vmem [#allocation2], %s3426_s19  ;;  %s3504_s23 = sshll.u32 %s3941_s30, 12 }
  0x1c   : > { %3625 = vmatprep.mubr.msk.f32.mxu0 %vm366_vm0, %v322_v1  ;;  %v4075_v4 = vld [vmem:[%s4063_s25 + $0x18] sm:$0xff]  ;;  %v4078_v5 = vld [vmem:[%s4063_s25 + $0x20] sm:$0xff]  ;;  %v4081_v6 = vld [vmem:[%s4063_s25 + $0x90] sm:$0xff]  ;;  %v4341_v1 = vrot.slane %v1015_v57, %v1333_v61  ;;  %s3346_s24 = sshll.u32 %s6253_s22, 4  ;;  %s6321_s11 = scalar_lea.hbm %s6382_s8, %s3504_s23  ;;  %s6323_s24 = int_to_ptr.vmem [resolvable:$true] %s3346_s24 }
  0x1d   : > { %3626 = vmatmul.mubr.msk.f32.vlgmr.msra.gmra.mxu0 %vm366_vm0, %v323_v2  ;;  %v4084_v7 = vld [vmem:[%s4063_s25 + $0x98] sm:$0xff]  ;;  %3652 = vmatprep.mubr.msk.f32.mxu1 %vm366_vm0, %v4081_v6  ;;  %v4091_v8 = vld [vmem:[%s4063_s25 + $0xa0] sm:$0xff]  ;;  %v4096_v9 = vld [vmem:[%s4063_s25 + $0x28] sm:$0xff]  ;;  %v1090_v2 = vmul.f32 %v4329_v60, %v4333_v62  ;;  %s6329_s30 = scalar_lea.sflag [#allocation3], %s310_s12  ;;  %s3873_s14 = scalar_lea.vmem %s6323_s24, 4096 }
  0x1e   : > { %3628 = vmatprep.mubr.msk.f32.mxu0 %vm366_vm0, %v4068_v3  ;;  %3653 = vmatmul.mubr.msk.f32.vlgmr.msra.gmra.mxu1 %vm366_vm0, %v4084_v7  ;;  %v4101_v10 = vld [vmem:[%s4063_s25 + $0x30] sm:$0xff]  ;;  %v4106_v11 = vld [vmem:[%s4063_s25 + $0xa8] sm:$0xff]  ;;  %v4116_v13 = vld [vmem:[%s4063_s25 + $0x38] sm:$0xff]  ;;  %p3874_p12 = scmp.ne.s32.totalorder %s6323_s24, %s3873_s14  ;;  %s3952_s16 = smov [#allocation2]  }
  0x1f   : > { %3655 = vmatprep.mubr.msk.f32.mxu1 %vm366_vm0, %v4091_v8  ;;  %v4109_v12 = vld [vmem:[%s4063_s25 + $0xb0] sm:$0xff]  ;;  %v4121_v14 = vld [vmem:[%s4063_s25 + $0x40] sm:$0xff]  ;;  %v4126_v15 = vld [vmem:[%s4063_s25 + $0xb8] sm:$0xff]  ;;  %3680 = vmatpush3.msra.mxu1 %v2806_v35  ;;  %s3877_s19 = sshll.u32 %s3952_s16, 4  ;;  %s3878_s19 = int_to_ptr.vmem [resolvable:$false] %s3877_s19 }
  0x20   : > { %v4129_v16 = vld [vmem:[%s4063_s25 + $0xc0] sm:$0xff]  ;;  %v331_v17 = vld [vmem:[%s4063_s25 + $0x48] sm:$0xff]  ;;  %v4139_v18 = vld [vmem:[%s4063_s25 + $0x50] sm:$0xff]  ;;  %3681 = vmatprep.subr.mxu1 %v2805_v36  ;;  %3760 = vmatpush3.msra.mxu0 %v3039_v37  ;;  %p3875_p13 = pnand %p3874_p12, %p4040_p4  ;;  %s3879_s20 = scalar_lea.vmem %s3878_s19, 8192 }
  0x21   : > { %3629 = vmatmul.mubr.msk.f32.gmra.mxu0 %vm366_vm0, %v4075_v4  ;;  %v4144_v19 = vld [vmem:[%s4063_s25 + $0xc8] sm:$0xff]  ;;  %v4147_v20 = vld [vmem:[%s4063_s25 + $0xd0] sm:$0xff]  ;;  %v333_v21 = vld [vmem:[%s4063_s25 + $0x58] sm:$0xff]  ;;  %3682 = vmatpush3.msra.mxu1 %v2805_v36  ;;  %p3880_p1 = scmp.lt.s32.totalorder %s6323_s24, %s3878_s19  ;;  %p3881_p2 = scmp.lt.s32.totalorder %s3879_s20, %s3873_s14 }
  0x22   : > { %3631 = vmatprep.mubr.msk.f32.mxu0 %vm366_vm0, %v4078_v5  ;;  %3656 = vmatmul.mubr.msk.f32.gmra.mxu1 %vm366_vm0, %v4106_v11  ;;  %v4156_v22 = vld [vmem:[%s4063_s25 + $0x60] sm:$0xff]  ;;  %v4161_v23 = vld [vmem:[%s4063_s25 + $0xd8] sm:$0xff]  ;;  %v335_v25 = vld [vmem:[%s4063_s25 + $0x68] sm:$0xff]  ;;  %p3876_p0 = pneg %p3875_p13 }
  0x23   : > { %3658 = vmatprep.mubr.msk.f32.mxu1 %vm366_vm0, %v4109_v12  ;;  %v4164_v24 = vld [vmem:[%s4063_s25 + $0xe0] sm:$0xff]  ;;  %v4173_v26 = vld [vmem:[%s4063_s25 + $0x70] sm:$0xff]  ;;  %v4178_v27 = vld [vmem:[%s4063_s25 + $0xe8] sm:$0xff]  ;;  %3683 = vmatprep.subr.mxu1 %v2804_v38  ;;  %p3882_p3 = por %p3881_p2, %p3880_p1 }
  0x24   : > { %v4181_v28 = vld [vmem:[%s4063_s25 + $0xf0] sm:$0xff]  ;;  %v337_v29 = vld [vmem:[%s4063_s25 + $0x78] sm:$0xff]  ;;  %v338_v30 = vld [vmem:[%s4063_s25 + $0x80] sm:$0xff]  ;;  %3684 = vmatpush3.msra.mxu1 %v2804_v38 }
  0x25   : > { %3632 = vmatmul.mubr.msk.f32.gmra.mxu0 %vm366_vm0, %v4096_v9  ;;  %v4193_v31 = vld [vmem:[%s4063_s25 + $0xf8] sm:$0xff]  ;;  %v4196_v32 = vld [vmem:[%s4063_s25 + $0x100] sm:$0xff]  ;;  %v339_v33 = vld [vmem:[%s4063_s25 + $0x88] sm:$0xff]  ;;  %3685 = vmatprep.subr.mxu1 %v2803_v39  ;;  %p3883_p5 = pnand %p3882_p3, %p3876_p0 }
  0x26   : > { %3634 = vmatprep.mubr.msk.f32.mxu0 %vm366_vm0, %v4101_v10  ;;  %3659 = vmatmul.mubr.msk.f32.gmra.mxu1 %vm366_vm0, %v4126_v15  ;;  %v4206_v34 = vld [vmem:[%s4063_s25 + $0x108] sm:$0xff]  ;;  %v356_v50 = vld [vmem:[%s4063_s25 + $0x110] sm:$0xff]  ;;  %v357_v51 = vld [vmem:[%s4063_s25 + $0x118] sm:$0xff] }
  0x27   : > { %3661 = vmatprep.mubr.msk.f32.mxu1 %vm366_vm0, %v4129_v16  ;;  %3686 = vmatpush3.msra.mxu1 %v2803_v39  ;;  %v1017_v36 = vld [vmem:[%s6377_s3 + $0x8] sm:$0x7] }
  0x28   : > { %3687 = vmatprep.subr.mxu1 %v2802_v40  ;;  %v4399_v58 = vrot.slane %v1017_v36, %v1333_v61 }
  0x29   : > { %3635 = vmatmul.mubr.msk.f32.gmra.mxu0 %vm366_vm0, %v4116_v13  ;;  %3688 = vmatpush3.msra.mxu1 %v2802_v40 }
  0x2a   : > { %3637 = vmatprep.mubr.msk.f32.mxu0 %vm366_vm0, %v4121_v14  ;;  %3662 = vmatmul.mubr.msk.f32.gmra.mxu1 %vm366_vm0, %v4144_v19 }
  0x2b   : > { %3664 = vmatprep.mubr.msk.f32.mxu1 %vm366_vm0, %v4147_v20  ;;  %3689 = vmatprep.subr.mxu1 %v2801_v41 }
  0x2c   : > { %3690 = vmatpush3.msra.mxu1 %v2801_v41 }
  0x2d   : > { %3638 = vmatmul.mubr.msk.f32.gmra.mxu0 %vm366_vm0, %v331_v17  ;;  %3691 = vmatprep.subr.mxu1 %v2800_v42 }
  0x2e   : > { %3640 = vmatprep.mubr.msk.f32.mxu0 %vm366_vm0, %v4139_v18  ;;  %3665 = vmatmul.mubr.msk.f32.gmra.mxu1 %vm366_vm0, %v4161_v23 }
  0x2f   : > { %3667 = vmatprep.mubr.msk.f32.mxu1 %vm366_vm0, %v4164_v24  ;;  %3692 = vmatpush3.msra.mxu1 %v2800_v42 }
  0x30   : > { %3693 = vmatprep.subr.mxu1 %v2799_v43 }
  0x31   : > { %3641 = vmatmul.mubr.msk.f32.gmra.mxu0 %vm366_vm0, %v333_v21  ;;  %3694 = vmatpush3.msra.mxu1 %v2799_v43 }
  0x32   : > { %3643 = vmatprep.mubr.msk.f32.mxu0 %vm366_vm0, %v4156_v22  ;;  %3668 = vmatmul.mubr.msk.f32.gmra.mxu1 %vm366_vm0, %v4178_v27 }
  0x33   : > { %3670 = vmatprep.mubr.msk.f32.mxu1 %vm366_vm0, %v4181_v28  ;;  %3695 = vmatprep.subr.mxu1 %v2798_v44 }
  0x34   : > { %3696 = vmatpush3.msra.mxu1 %v2798_v44 }
  0x35   : > { %3644 = vmatmul.mubr.msk.f32.gmra.mxu0 %vm366_vm0, %v335_v25  ;;  %3697 = vmatprep.subr.mxu1 %v2797_v45 }
  0x36   : > { %3646 = vmatprep.mubr.msk.f32.mxu0 %vm366_vm0, %v4173_v26  ;;  %3671 = vmatmul.mubr.msk.f32.gmra.mxu1 %vm366_vm0, %v4193_v31 }
  0x37   : > { %3673 = vmatprep.mubr.msk.f32.mxu1 %vm366_vm0, %v4196_v32  ;;  %3698 = vmatpush3.msra.mxu1 %v2797_v45 }
  0x38   : > { %3699 = vmatprep.subr.mxu1 %v2796_v46 }
  0x39   : > { %3647 = vmatmul.mubr.msk.f32.gmra.mxu0 %vm366_vm0, %v337_v29  ;;  %3700 = vmatpush3.msra.mxu1 %v2796_v46 }
  0x3a   : > { %3649 = vmatprep.mubr.msk.f32.mxu0 %vm366_vm0, %v338_v30  ;;  %3674 = vmatmul.mubr.msk.f32.gmra.mxu1 %vm366_vm0, %v4206_v34 }
  0x3b   : > { %3701 = vmatprep.subr.mxu1 %v2795_v47  ;;  %3676 = vmatprep.mubr.msk.f32.mxu1 %vm366_vm0, %v356_v50 }
  0x3c   : > { %3702 = vmatpush3.msra.mxu1 %v2795_v47 }
  0x3d   : > { %3650 = vmatmul.mubr.msk.f32.gmra.mxu0 %vm366_vm0, %v339_v33  ;;  %3703 = vmatprep.subr.mxu1 %v2794_v48 }
  0x3e   : > { %3761 = vmatprep.mubr.msk.f32.mxu0 %vm366_vm0, %v4068_v3  ;;  %3704 = vmatpush3.msra.mxu1 %v2794_v48  ;;  %v1091_v3 = vmul.f32 %v4329_v60, %v4327_v59  ;;  %v4391_v48 = vrot.slane %v1017_v36, %v1088_v56 }
  0x3f   : > { %3705 = vmatprep.subr.mxu1 %v2793_v49  ;;  %3677 = vmatmul.mubr.msk.f32.gmra.mxu1 %vm366_vm0, %v357_v51 }
  0x40   : > { %3706 = vmatpush3.msra.mxu1 %v2793_v49 }
  0x41   : > { %3762 = vmatmul.mubr.msk.f32.vlgmr.msra.gmra.mxu0 %vm366_vm0, %v4075_v4  ;;  %3707 = vmatprep.subr.mxu1 %v2792_v52  ;;  %v1092_v4 = vmul.f32 %v4329_v60, %v4337_v63 }
  0x42   : > { %3764 = vmatprep.mubr.msk.f32.mxu0 %vm366_vm0, %v4078_v5  ;;  %3708 = vmatpush3.msra.mxu1 %v2792_v52  ;;  %v4350_v5 = vrot.slane %v1015_v57, %v4339_v0 }
  0x43   : > { %3709 = vmatprep.subr.mxu1 %v2791_v53 }
  0x44   : > { %3710 = vmatpush3.msra.mxu1 %v2791_v53 }
  0x45   : > { %3765 = vmatmul.mubr.msk.f32.gmra.mxu0 %vm366_vm0, %v4096_v9  ;;  %v1336_v9 = vmul.f32 %v4341_v1, %v4327_v59 }
  0x46   : > { %3767 = vmatprep.mubr.msk.f32.mxu0 %vm366_vm0, %v4101_v10  ;;  %v1190_v10 = vrot.slane %v1092_v4, 1 }
  0x49   : > { %3768 = vmatmul.mubr.msk.f32.gmra.mxu0 %vm366_vm0, %v4116_v13  ;;  %v1022_v13 = vmul.f32 %v4350_v5, %v4333_v62 }
  0x4a   : > { %3770 = vmatprep.mubr.msk.f32.mxu0 %vm366_vm0, %v4121_v14  ;;  %v1023_v14 = vmul.f32 %v4350_v5, %v4327_v59 }
  0x4d   : > { %3771 = vmatmul.mubr.msk.f32.gmra.mxu0 %vm366_vm0, %v331_v17  ;;  %v1433_v17 = vrot.slane %v1336_v9, 2 }
  0x4e   : > { %3773 = vmatprep.mubr.msk.f32.mxu0 %vm366_vm0, %v4139_v18 }
  0x51   : > { %3774 = vmatmul.mubr.msk.f32.gmra.mxu0 %vm366_vm0, %v333_v21 }
  0x52   : > { %3776 = vmatprep.mubr.msk.f32.mxu0 %vm366_vm0, %v4156_v22 }
  0x55   : > { %3777 = vmatmul.mubr.msk.f32.gmra.mxu0 %vm366_vm0, %v335_v25 }
  0x56   : > { %3779 = vmatprep.mubr.msk.f32.mxu0 %vm366_vm0, %v4173_v26 }
  0x59   : > { %3780 = vmatmul.mubr.msk.f32.gmra.mxu0 %vm366_vm0, %v337_v29 }
  0x5a   : > { %3782 = vmatprep.mubr.msk.f32.mxu0 %vm366_vm0, %v338_v30 }
  0x5d   : > { %3783 = vmatmul.mubr.msk.f32.gmra.mxu0 %vm366_vm0, %v339_v33 }
  0x5e   : > { %3785 = vmatprep.mubr.msk.f32.mxu0 %vm366_vm0, %v4081_v6  ;;  %v1187_v6 = vrot.slane %v1090_v2, 1 }
  0x61   : > { %3786 = vmatmul.mubr.msk.f32.gmra.mxu0 %vm366_vm0, %v4084_v7  ;;  %v1188_v7 = vrot.slane %v1091_v3, 1 }
  0x62   : > { %3788 = vmatprep.mubr.msk.f32.mxu0 %vm366_vm0, %v4091_v8  ;;  %v1335_v8 = vmul.f32 %v4341_v1, %v4333_v62 }
  0x65   : > { %3789 = vmatmul.mubr.msk.f32.gmra.mxu0 %vm366_vm0, %v4106_v11  ;;  %v1337_v11 = vmul.f32 %v4341_v1, %v4337_v63 }
  0x66   : > { %3791 = vmatprep.mubr.msk.f32.mxu0 %vm366_vm0, %v4109_v12 }
  0x67   : > { %v1435_v21 = vrot.slane %v1337_v11, 2 }
  0x69   : > { %3792 = vmatmul.mubr.msk.f32.gmra.mxu0 %vm366_vm0, %v4126_v15  ;;  %v1189_v15 = vsel %vm1186_vm2, %v1187_v6, %v1188_v7  ;;  %v1436_v30 = vsel %vm1431_vm3, %v1433_v17, %v1435_v21  ;;  %v4407_v6 = vrot.slane %v1017_v36, %v4339_v0 }
  0x6a   : > { %3794 = vmatprep.mubr.msk.f32.mxu0 %vm366_vm0, %v4129_v16  ;;  %v1432_v16 = vrot.slane %v1335_v8, 2 }
  0x6d   : > { %3795 = vmatmul.mubr.msk.f32.gmra.mxu0 %vm366_vm0, %v4144_v19  ;;  %v4366_v19 = vld [vmem:[%s6376_s2] ss:$0 sm:$0xff] }
  0x6e   : > { %3797 = vmatprep.mubr.msk.f32.mxu0 %vm366_vm0, %v4147_v20  ;;  %v1191_v20 = vsel %vm1186_vm2, %v1188_v7, %v1190_v10 }
  0x6f   : > { %v1300_v26 = vadd.f32 %v1191_v20, %v1023_v14 }
  0x71   : > { %3798 = vmatmul.mubr.msk.f32.gmra.mxu0 %vm366_vm0, %v4161_v23  ;;  %v1016_v23 = vld [vmem:[%s6377_s3 + $0x4] sm:$0x7]  ;;  %v1545_v45 = vadd.f32 %v1436_v30, %v1300_v26 }
  0x72   : > { %3800 = vmatprep.mubr.msk.f32.mxu0 %vm366_vm0, %v4164_v24  ;;  %v1299_v24 = vadd.f32 %v1189_v15, %v1022_v13  ;;  %v4376_v33 = vrot.slane %v1016_v23, %v1088_v56  ;;  %v4387_v39 = vrot.slane %v1016_v23, %v4339_v0 }
  0x75   : > { %3801 = vmatmul.mubr.msk.f32.gmra.mxu0 %vm366_vm0, %v4178_v27  ;;  %v1434_v27 = vsel %vm1431_vm3, %v1432_v16, %v1433_v17 }
  0x76   : > { %3803 = vmatprep.mubr.msk.f32.mxu0 %vm366_vm0, %v4181_v28  ;;  %v4384_v38 = vadd.f32 %v1434_v27, %v1299_v24 }
  0x79   : > { %3804 = vmatmul.mubr.msk.f32.gmra.mxu0 %vm366_vm0, %v4193_v31 }
  0x7a   : > { %3806 = vmatprep.mubr.msk.f32.mxu0 %vm366_vm0, %v4196_v32 }
  0x7d   : > { %3807 = vmatmul.mubr.msk.f32.gmra.mxu0 %vm366_vm0, %v4206_v34  ;;  %v4378_v34 = vrot.slane %v1016_v23, %v1333_v61 }
  0xdd   : > { %v3627_v12 = vpop.f32.mrf.mxu0 }
  0xde   : > { %v3654_v28 = vpop.f32.mrf.mxu1 }
  0xdf   : > { %v541_v18 = vpop.f32.mrf.mxu0  ;;  %v637_v31 = vadd.f32 %v3654_v28, %v4366_v19 }
  0xe0   : > { %v631_v37 = vpop.f32.mrf.mxu1 }
  0xe1   : > { %v3630_v22 = vpop.f32.mrf.mxu0  ;;  %v739_v41 = vmax.f32 %v637_v31, 0.0  ;;  %v632_v42 = vadd.f32 %v4366_v19, %v631_v37 }
  0xe2   : > { %v557_v25 = vadd.f32 %v3630_v22, %v4366_v19  ;;  %v3657_v47 = vpop.f32.mrf.mxu1 }
  0xe3   : > { %v551_v29 = vpop.f32.mrf.mxu0  ;;  %v4393_v50 = vmin.f32 %v739_v41, 6.0  ;;  %v738_v51 = vmax.f32 %v632_v42, 0.0  ;;  %v4396_v52 = vadd.f32 %v3657_v47, %v4366_v19 }
  0xe4   : > { %v723_v32 = vmax.f32 %v557_v25, 0.0  ;;  %v552_v35 = vadd.f32 %v4366_v19, %v551_v29  ;;  %v641_v4 = vpop.f32.mrf.mxu1 }
  0xe5   : > { %v3633_v40 = vpop.f32.mrf.mxu0  ;;  %v4404_v56 = vmin.f32 %v738_v51, 6.0  ;;  %v4422_v17 = vadd.f32 %v4366_v19, %v641_v4 }
  0xe6   : > { %v759_v43 = vmin.f32 %v723_v32, 6.0  ;;  %v722_v44 = vmax.f32 %v552_v35, 0.0  ;;  %v567_v46 = vadd.f32 %v3633_v40, %v4366_v19 }
  0xe7   : > { %v561_v49 = vpop.f32.mrf.mxu0 }
  0xe8   : > { %v875_v53 = vrot.slane %v759_v43, 7  ;;  %v758_v54 = vmin.f32 %v722_v44, 6.0  ;;  %v725_v55 = vmax.f32 %v567_v46, 0.0  ;;  %v562_v57 = vadd.f32 %v4366_v19, %v561_v49 }
  0xe9   : > { %v4401_v2 = vpop.f32.mrf.mxu0 }
  0xea   : > { %v998_v7 = vsel %vm870_vm1, %v875_v53, 0.0  ;;  %v874_v8 = vrot.slane %v758_v54, 7  ;;  %v761_v9 = vmin.f32 %v725_v55, 6.0  ;;  %v724_v10 = vmax.f32 %v562_v57, 0.0 }
  0xeb   : > { %v1095_v11 = vmul.f32 %v4329_v60, %v998_v7  ;;  %v4412_v61 = vmul.f32 %v4341_v1, %v998_v7  ;;  %v1650_v12 = vmul.f32 %v4376_v33, %v998_v7  ;;  %v1894_v13 = vmul.f32 %v4378_v34, %v998_v7  ;;  %v4416_v14 = vpop.f32.mrf.mxu0 }
  0xec   : > { %v876_v15 = vsel %vm870_vm1, %v874_v8, %v875_v53  ;;  %v980_v0 = vsel %vm870_vm1, 0.0, %v874_v8  ;;  %v878_v21 = vrot.slane %v761_v9, 7  ;;  %v760_v22 = vmin.f32 %v724_v10, 6.0 }
  0xed   : > { %v1195_v18 = vrot.slane %v1095_v11, 1  ;;  %v3639_v23 = vpop.f32.mrf.mxu0  ;;  %v1747_v24 = vrot.slane %v1650_v12, 1  ;;  %v1991_v25 = vrot.slane %v1894_v13, 2  ;;  %v1093_v26 = vmul.f32 %v4329_v60, %v980_v0 }
  0xee   : > { %v1094_v27 = vmul.f32 %v4329_v60, %v876_v15  ;;  %v1338_v28 = vmul.f32 %v4341_v1, %v980_v0  ;;  %v4429_v29 = vmul.f32 %v4341_v1, %v876_v15  ;;  %v1580_v30 = vmul.f32 %v4387_v39, %v980_v0 }
  0xef   : > { %v1581_v31 = vmul.f32 %v4387_v39, %v876_v15  ;;  %v581_v32 = vpop.f32.mrf.mxu0  ;;  %v1024_v35 = vmul.f32 %v4350_v5, %v980_v0  ;;  %v1192_v36 = vrot.slane %v1093_v26, 1  ;;  %v4435_v40 = vmul.f32 %v4376_v33, %v876_v15 }
  0xf0   : > { %v1193_v37 = vrot.slane %v1094_v27, 1  ;;  %v1025_v41 = vmul.f32 %v4350_v5, %v876_v15  ;;  %v1437_v42 = vrot.slane %v1338_v28, 2  ;;  %v6383_v43 = vrot.slane %v4429_v29, 2 }
  0xf1   : > { %v4440_v44 = vmul.f32 %v4376_v33, %v980_v0  ;;  %v3642_v46 = vpop.f32.mrf.mxu0  ;;  %v4445_v51 = vadd.f32 %v1580_v30, %v4384_v38  ;;  %v6385_v53 = vrot.slane %v4435_v40, 1  ;;  %v1613_v57 = vadd.f32 %v1581_v31, %v1545_v45 }
  0xf2   : > { %v1194_v47 = vsel %vm1186_vm2, %v1192_v36, %v1193_v37  ;;  %v1196_v49 = vsel %vm1186_vm2, %v1193_v37, %v1195_v18  ;;  %v1439_v55 = vsel %vm1431_vm3, %v1437_v42, %v6383_v43  ;;  %v4452_v4 = vmul.f32 %v4378_v34, %v980_v0 }
  0xf3   : > { %v1301_v54 = vadd.f32 %v1194_v47, %v1024_v35  ;;  %v591_v7 = vpop.f32.mrf.mxu0  ;;  %v1748_v8 = vsel %vm1186_vm2, %v6385_v53, %v1747_v24  ;;  %v4458_v9 = vmul.f32 %v4378_v34, %v876_v15  ;;  %v999_v38 = vsel %vm870_vm1, %v878_v21, 0.0 }
  0xf4   : > { %v877_v10 = vrot.slane %v760_v22, 7  ;;  %v4461_v11 = vadd.f32 %v1196_v49, %v1025_v41  ;;  %v4467_v13 = vmul.f32 %v4329_v60, %v999_v38  ;;  %v4471_v18 = vmul.f32 %v4341_v1, %v999_v38 }
  0xf5   : > { %v4463_v12 = vadd.f32 %v1439_v55, %v1301_v54  ;;  %v6384_v0 = vrot.slane %v4458_v9, 2  ;;  %v4474_v15 = vmul.f32 %v4376_v33, %v999_v38  ;;  %v4477_v24 = vmul.f32 %v4378_v34, %v999_v38  ;;  %v3645_v30 = vpop.f32.mrf.mxu0 }
  0xf6   : > { %v4479_v22 = vadd.f32 %v1748_v8, %v1613_v57  ;;  %v4482_v26 = vmul.f32 %v4391_v48, %v999_v38  ;;  %v4485_v27 = vmul.f32 %v4399_v58, %v999_v38  ;;  %v4488_v28 = vsel %vm870_vm1, %v877_v10, %v878_v21 }
  0xf7   : > { %v4494_v35 = vsel %vm1431_vm3, %v6384_v0, %v1991_v25  ;;  %v4502_v21 = vsel %vm870_vm1, 0.0, %v877_v10  ;;  %v4507_v54 = vmul.f32 %v4329_v60, %v4488_v28  ;;  %v577_v25 = vadd.f32 %v4401_v2, %v4366_v19  ;;  %v601_v37 = vpop.f32.mrf.mxu0 }
  0xf8   : > { %v572_v55 = vadd.f32 %v4366_v19, %v4416_v14  ;;  %v587_v57 = vadd.f32 %v3639_v23, %v4366_v19  ;;  %v582_v8 = vadd.f32 %v4366_v19, %v581_v32  ;;  %v597_v38 = vadd.f32 %v3642_v46, %v4366_v19 }
  0xf9   : > { %v592_v10 = vadd.f32 %v4366_v19, %v591_v7  ;;  %v4519_v36 = vmul.f32 %v4329_v60, %v4502_v21  ;;  %v727_v42 = vmax.f32 %v577_v25, 0.0  ;;  %v607_v2 = vadd.f32 %v3645_v30, %v4366_v19 }
  0xfa   : > { %v726_v41 = vmax.f32 %v572_v55, 0.0  ;;  %v729_v43 = vmax.f32 %v587_v57, 0.0  ;;  %v728_v20 = vmax.f32 %v582_v8, 0.0  ;;  %v731_v14 = vmax.f32 %v597_v38, 0.0  ;;  %v3648_v8 = vpop.f32.mrf.mxu0 }
  0xfb   : > { %v730_v49 = vmax.f32 %v592_v10, 0.0  ;;  %v763_v23 = vmin.f32 %v727_v42, 6.0  ;;  %v733_v32 = vmax.f32 %v607_v2, 0.0  ;;  %v4523_v46 = vadd.f32 %v4366_v19, %v601_v37 }
  0xfc   : > { %v762_v47 = vmin.f32 %v726_v41, 6.0  ;;  %v4527_v7 = vmul.f32 %v4341_v1, %v4502_v21  ;;  %v765_v31 = vmin.f32 %v729_v43, 6.0  ;;  %v764_v0 = vmin.f32 %v728_v20, 6.0 }
  0xfd   : > { %v767_v25 = vmin.f32 %v731_v14, 6.0  ;;  %v881_v55 = vrot.slane %v763_v23, 7  ;;  %v766_v30 = vmin.f32 %v730_v49, 6.0  ;;  %v4529_v57 = vmin.f32 %v733_v32, 6.0 }
  0xfe   : > { %v880_v45 = vrot.slane %v762_v47, 7  ;;  %v884_v42 = vrot.slane %v765_v31, 7  ;;  %v883_v41 = vrot.slane %v764_v0, 7  ;;  %v732_v38 = vmax.f32 %v4523_v46, 0.0 }
  0xff   : > { %v4534_v37 = vsel %vm870_vm1, %v881_v55, 0.0  ;;  %v887_v43 = vrot.slane %v767_v25, 7  ;;  %v886_v14 = vrot.slane %v766_v30, 7 }
 0x100   : > { %v4537_v10 = vsel %vm870_vm1, %v880_v45, %v881_v55  ;;  %v4540_v20 = vsel %vm870_vm1, 0.0, %v880_v45  ;;  %v4544_v47 = vmul.f32 %v4329_v60, %v4534_v37  ;;  %v4548_v31 = vmul.f32 %v4341_v1, %v4534_v37 }
 0x101   : > { %v4552_v0 = vmul.f32 %v4376_v33, %v4534_v37  ;;  %v4556_v49 = vmul.f32 %v4378_v34, %v4534_v37  ;;  %v4560_v45 = vmul.f32 %v4391_v48, %v4534_v37  ;;  %v4564_v2 = vmul.f32 %v4329_v60, %v4540_v20 }
 0x102   : > { %6510 = vst [vmem:[#allocation8_spill] sm:$0xff] %v4544_v47  ;;  %6511 = vst [vmem:[#allocation9_spill] sm:$0xff] %v4548_v31  ;;  %v4571_v25 = vmul.f32 %v4329_v60, %v4537_v10  ;;  %v4575_v55 = vmul.f32 %v4341_v1, %v4540_v20  ;;  %v4580_v30 = vsel %vm870_vm1, %v884_v42, 0.0  ;;  %v4583_v16 = vsel %vm870_vm1, %v883_v41, %v884_v42 }
 0x103   : > { %6512 = vst [vmem:[#allocation10_spill] sm:$0xff] %v4556_v49  ;;  %6513 = vst [vmem:[#allocation11_spill] sm:$0xff] %v4564_v2  ;;  %v4587_v46 = vmul.f32 %v4329_v60, %v4580_v30  ;;  %v4591_v32 = vmul.f32 %v4341_v1, %v4580_v30  ;;  %v4595_v3 = vmul.f32 %v4376_v33, %v4580_v30  ;;  %v4607_v23 = vsel %vm870_vm1, 0.0, %v883_v41  ;;  %v611_v49 = vpop.f32.mrf.mxu0 }
 0x104   : > { %6514 = vst [vmem:[#allocation12_spill] sm:$0xff] %v4571_v25  ;;  %6515 = vst [vmem:[#allocation13_spill] sm:$0xff] %v4575_v55  ;;  %v4599_v53 = vmul.f32 %v4378_v34, %v4580_v30  ;;  %v4604_v42 = vmul.f32 %v4391_v48, %v4580_v30  ;;  %v4610_v63 = vsel %vm870_vm1, %v887_v43, 0.0  ;;  %v4617_v47 = vmul.f32 %v4329_v60, %v4583_v16 }
 0x105   : > { %6516 = vst [vmem:[#allocation14_spill] sm:$0xff] %v4580_v30  ;;  %6517 = vst [vmem:[#allocation15_spill] sm:$0xff] %v4587_v46  ;;  %v4623_v41 = vmul.f32 %v4329_v60, %v4607_v23  ;;  %v4627_v59 = vmul.f32 %v4329_v60, %v4610_v63  ;;  %v4631_v31 = vmul.f32 %v4341_v1, %v4610_v63 }
 0x106   : > { %6518 = vst [vmem:[#allocation16_spill] sm:$0xff] %v4591_v32  ;;  %6519 = vst [vmem:[#allocation17_spill] sm:$0xff] %v4595_v3  ;;  %v4635_v62 = vmul.f32 %v4376_v33, %v4610_v63  ;;  %v4639_v55 = vmul.f32 %v4378_v34, %v4610_v63  ;;  %v4643_v25 = vmul.f32 %v4391_v48, %v4610_v63 }
 0x107   : > { %6520 = vst [vmem:[#allocation18_spill] sm:$0xff] %v4599_v53  ;;  %6521 = vst [vmem:[#allocation19_spill] sm:$0xff] %v4604_v42  ;;  %v4648_v46 = vmul.f32 %v4341_v1, %v4607_v23  ;;  %v4654_v53 = vsel %vm870_vm1, 0.0, %v886_v14  ;;  %v768_v42 = vmin.f32 %v732_v38, 6.0 }
 0x108   : > { %6522 = vst [vmem:[#allocation20_spill] sm:$0xff] %v4610_v63  ;;  %6523 = vst [vmem:[#allocation21_spill] sm:$0xff] %v4617_v47  ;;  %v4651_v47 = vsel %vm870_vm1, %v886_v14, %v887_v43  ;;  %v4664_v43 = vmul.f32 %v4329_v60, %v4654_v53  ;;  %v6534_v14 = vrot.slane %v4529_v57, 7 }
 0x109   : > { %6524 = vst [vmem:[#allocation22_spill] sm:$0xff] %v4623_v41  ;;  %6525 = vst [vmem:[#allocation23_spill] sm:$0xff] %v4627_v59  ;;  %v4673_v2 = vmul.f32 %v4329_v60, %v4651_v47  ;;  %v3651_v41 = vpop.f32.mrf.mxu0 }
 0x10a   : > { %6526 = vst [vmem:[#allocation24_spill] sm:$0xff] %v4631_v31  ;;  %6527 = vst [vmem:[#allocation25_spill] sm:$0xff] %v4635_v62  ;;  %v617_v31 = vadd.f32 %v3648_v8, %v4366_v19 }
 0x10b   : > { %6528 = vst [vmem:[#allocation26_spill] sm:$0xff] %v4639_v55  ;;  %6529 = vst [vmem:[#allocation27_spill] sm:$0xff] %v4643_v25  ;;  %v889_v25 = vrot.slane %v768_v42, 7 }
 0x10c   : > { %6530 = vst [vmem:[#allocation28_spill] sm:$0xff] %v4648_v46  ;;  %6531 = vst [vmem:[#allocation29_spill] sm:$0xff] %v4651_v47  ;;  %v4669_v46 = vsel %vm870_vm1, %v6534_v14, 0.0  ;;  %v4689_v14 = vmul.f32 %v4341_v1, %v4654_v53  ;;  %v735_v47 = vmax.f32 %v617_v31, 0.0 }
 0x10d   : > { %6532 = vst [vmem:[#allocation30_spill] sm:$0xff] %v4654_v53  ;;  %6533 = vst [vmem:[#allocation31_spill] sm:$0xff] %v4664_v43  ;;  %v4677_v30 = vmul.f32 %v4329_v60, %v4669_v46  ;;  %v4681_v32 = vmul.f32 %v4341_v1, %v4669_v46  ;;  %v4685_v63 = vmul.f32 %v4376_v33, %v4669_v46  ;;  %v6543_v53 = vrot.slane %v4393_v50, 7 }
 0x10e   : > { %6535 = vst [vmem:[#allocation32_spill] sm:$0xff] %v4669_v46  ;;  %6536 = vst [vmem:[#allocation33_spill] sm:$0xff] %v4673_v2  ;;  %v4693_v3 = vmul.f32 %v4378_v34, %v4669_v46  ;;  %v4701_v62 = vmul.f32 %v4391_v48, %v4669_v46  ;;  %v4732_v59 = vsel %vm870_vm1, 0.0, %v889_v25  ;;  %v898_v46 = vrot.slane %v4404_v56, 7 }
 0x10f   : > { %6537 = vst [vmem:[#allocation34_spill] sm:$0xff] %v4677_v30  ;;  %6538 = vst [vmem:[#allocation35_spill] sm:$0xff] %v4681_v32  ;;  %v4707_v38 = vsel %vm870_vm1, %v6543_v53, 0.0  ;;  %v6549_v53 = vrot.slane %v4529_v57, 7  ;;  %v771_v32 = vmin.f32 %v735_v47, 6.0 }
 0x110   : > { %6539 = vst [vmem:[#allocation36_spill] sm:$0xff] %v4685_v63  ;;  %6540 = vst [vmem:[#allocation37_spill] sm:$0xff] %v4689_v14  ;;  %v4711_v8 = vmul.f32 %v4329_v60, %v4707_v38  ;;  %v4715_v55 = vmul.f32 %v4341_v1, %v4707_v38  ;;  %v4719_v2 = vmul.f32 %v4376_v33, %v4707_v38 }
 0x111   : > { %6541 = vst [vmem:[#allocation38_spill] sm:$0xff] %v4693_v3  ;;  %6542 = vst [vmem:[#allocation39_spill] sm:$0xff] %v4701_v62  ;;  %v4723_v31 = vmul.f32 %v4378_v34, %v4707_v38  ;;  %v4729_v14 = vsel %vm870_vm1, %v889_v25, %v6549_v53  ;;  %v4737_v63 = vmul.f32 %v4329_v60, %v4732_v59  ;;  %v621_v53 = vpop.f32.mrf.mxu0  ;;  %v893_v47 = vrot.slane %v771_v32, 7 }
 0x112   : > { %6544 = vst [vmem:[#allocation40_spill] sm:$0xff] %v4707_v38  ;;  %6545 = vst [vmem:[#allocation41_spill] sm:$0xff] %v4711_v8  ;;  %v4741_v43 = vmul.f32 %v4329_v60, %v4729_v14  ;;  %v4745_v57 = vmul.f32 %v4391_v48, %v4707_v38  ;;  %v4749_v25 = vmul.f32 %v4341_v1, %v4732_v59  ;;  %v4792_v3 = vsel %vm870_vm1, 0.0, %v898_v46 }
 0x113   : > { %6546 = vst [vmem:[#allocation42_spill] sm:$0xff] %v4715_v55  ;;  %6547 = vst [vmem:[#allocation43_spill] sm:$0xff] %v4719_v2  ;;  %v4758_v38 = vsel %vm870_vm1, %v893_v47, 0.0  ;;  %v622_v42 = vadd.f32 %v4366_v19, %v621_v53 }
 0x114   : > { %6548 = vst [vmem:[#allocation44_spill] sm:$0xff] %v4723_v31  ;;  %6550 = vst [vmem:[#allocation45_spill] sm:$0xff] %v4729_v14  ;;  %v627_v14 = vadd.f32 %v3651_v41, %v4366_v19  ;;  %v4768_v30 = vmul.f32 %v4329_v60, %v4758_v38  ;;  %v4776_v56 = vmul.f32 %v4376_v33, %v4758_v38 }
 0x115   : > { %6551 = vst [vmem:[#allocation46_spill] sm:$0xff] %v4732_v59  ;;  %6552 = vst [vmem:[#allocation47_spill] sm:$0xff] %v4737_v63  ;;  %v4780_v41 = vmul.f32 %v4378_v34, %v4758_v38  ;;  %v736_v63 = vmax.f32 %v622_v42, 0.0 }
 0x116   : > { %6553 = vst [vmem:[#allocation48_spill] sm:$0xff] %v4741_v43  ;;  %6554 = vst [vmem:[#allocation49_spill] sm:$0xff] %v4745_v57  ;;  %v612_v43 = vadd.f32 %v4366_v19, %v611_v49  ;;  %v4772_v49 = vmul.f32 %v4341_v1, %v4758_v38 }
 0x117   : > { %6555 = vst [vmem:[#allocation50_spill] sm:$0xff] %v4749_v25  ;;  %6556 = vst [vmem:[#allocation51_spill] sm:$0xff] %v4758_v38  ;;  %v6557_v25 = vmax.f32 %v4396_v52, 0.0  ;;  %v4784_v52 = vmul.f32 %v4391_v48, %v4758_v38 }
 0x118   : > { %6558 = vst [vmem:[#allocation52_spill] sm:$0xff] %v4768_v30  ;;  %6559 = vst [vmem:[#allocation53_spill] sm:$0xff] %v4772_v49  ;;  %v734_v53 = vmax.f32 %v612_v43, 0.0 }
 0x119   : > { %v4763_v32 = vmin.f32 %v6557_v25, 6.0  ;;  %6560 = vst [vmem:[#allocation54_spill] sm:$0xff] %v4776_v56  ;;  %6561 = vst [vmem:[#allocation55_spill] sm:$0xff] %v4780_v41  ;;  %v6563_v25 = vrot.slane %v4393_v50, 7  ;;  %v4802_v50 = vmul.f32 %v4329_v60, %v4792_v3 }
 0x11a   : > { %6562 = vst [vmem:[#allocation56_spill] sm:$0xff] %v4784_v52  ;;  %6565 = vst [vmem:[#allocation58_spill] sm:$0xff] %v4792_v3  ;;  %v770_v59 = vmin.f32 %v734_v53, 6.0  ;;  %v4813_v53 = vmul.f32 %v4341_v1, %v4792_v3  ;;  %v6589_v52 = vrot.slane %v4458_v9, 2  ;;  %v6590_v3 = vrot.slane %v4452_v4, 2 }
 0x11b   : > { %v4789_v62 = vsel %vm870_vm1, %v898_v46, %v6563_v25  ;;  %6566 = vst [vmem:[#allocation59_spill] sm:$0xff] %v4802_v50  ;;  %v737_v25 = vmax.f32 %v627_v14, 0.0  ;;  %v902_v55 = vrot.slane %v4763_v32, 7  ;;  %v772_v46 = vmin.f32 %v736_v63, 6.0  ;;  %v3660_v32 = vpop.f32.mrf.mxu1 }
 0x11c   : > { %6564 = vst [vmem:[#allocation57_spill] sm:$0xff] %v4789_v62  ;;  %v892_v8 = vrot.slane %v770_v59, 7  ;;  %v4808_v31 = vmul.f32 %v4329_v60, %v4789_v62  ;;  %6568 = vst [vmem:[#allocation61_spill] sm:$0xff] %v4813_v53  ;;  %v740_v14 = vmax.f32 %v4422_v17, 0.0  ;;  %v657_v50 = vadd.f32 %v3660_v32, %v4366_v19 }
 0x11d   : > { %v773_v43 = vmin.f32 %v737_v25, 6.0  ;;  %v4816_v38 = vsel %vm870_vm1, %v902_v55, 0.0  ;;  %v2448_v9 = vmul.f32 %v4399_v58, %v4502_v21 }
 0x11e   : > { %6567 = vst [vmem:[#allocation60_spill] sm:$0xff] %v4808_v31  ;;  %6569 = vst [vmem:[#allocation62_spill] sm:$0xff] %v4816_v38  ;;  %v4820_v59 = vsel %vm870_vm1, %v892_v8, %v893_v47  ;;  %v4823_v42 = vsel %vm870_vm1, 0.0, %v892_v8  ;;  %v4827_v2 = vmul.f32 %v4329_v60, %v4816_v38  ;;  %v4836_v17 = vmul.f32 %v4341_v1, %v4816_v38 }
 0x11f   : > { %v4832_v25 = vmul.f32 %v4329_v60, %v4823_v42  ;;  %v896_v63 = vrot.slane %v773_v43, 7  ;;  %v6573_v47 = vrot.slane %v4435_v40, 1  ;;  %v6574_v8 = vrot.slane %v4440_v44, 1 }
 0x120   : > { %6570 = vst [vmem:[#allocation63_spill] sm:$0xff] %v4827_v2  ;;  %6572 = vst [vmem:[#allocation65_spill] sm:$0xff] %v4836_v17  ;;  %v4845_v31 = vmul.f32 %v4329_v60, %v4820_v59  ;;  %v4849_v32 = vmul.f32 %v4341_v1, %v4823_v42  ;;  %v4853_v43 = vmul.f32 %v4376_v33, %v4816_v38  ;;  %v743_v41 = vmax.f32 %v657_v50, 0.0 }
 0x121   : > { %6571 = vst [vmem:[#allocation64_spill] sm:$0xff] %v4832_v25  ;;  %v1746_v53 = vsel %vm1186_vm2, %v6574_v8, %v6573_v47  ;;  %v4857_v57 = vmul.f32 %v4378_v34, %v4816_v38  ;;  %v4860_v40 = vsel %vm870_vm1, %v896_v63, 0.0  ;;  %v4865_v47 = vmul.f32 %v4391_v48, %v4816_v38 }
 0x122   : > { %6575 = vst [vmem:[#allocation66_spill] sm:$0xff] %v4845_v31  ;;  %6576 = vst [vmem:[#allocation67_spill] sm:$0xff] %v4849_v32  ;;  %v895_v8 = vrot.slane %v772_v46, 7  ;;  %v4869_v49 = vmul.f32 %v4329_v60, %v4860_v40  ;;  %v4873_v30 = vmul.f32 %v4341_v1, %v4860_v40  ;;  %v4877_v62 = vmul.f32 %v4376_v33, %v4860_v40  ;;  %v651_v32 = vpop.f32.mrf.mxu1 }
 0x123   : > { %6577 = vst [vmem:[#allocation68_spill] sm:$0xff] %v4853_v43  ;;  %6578 = vst [vmem:[#allocation69_spill] sm:$0xff] %v4857_v57  ;;  %v4881_v44 = vmul.f32 %v4378_v34, %v4860_v40  ;;  %v4886_v46 = vmul.f32 %v4391_v48, %v4860_v40  ;;  %v779_v38 = vmin.f32 %v743_v41, 6.0  ;;  %v1990_v17 = vsel %vm1431_vm3, %v6590_v3, %v6589_v52 }
 0x124   : > { %6579 = vst [vmem:[#allocation70_spill] sm:$0xff] %v4860_v40  ;;  %6580 = vst [vmem:[#allocation71_spill] sm:$0xff] %v4865_v47  ;;  %v4896_v2 = vsel %vm870_vm1, %v895_v8, %v896_v63  ;;  %v4899_v25 = vsel %vm870_vm1, 0.0, %v895_v8  ;;  %v776_v40 = vmin.f32 %v740_v14, 6.0  ;;  %v1856_v14 = vadd.f32 %v1746_v53, %v4445_v51 }
 0x125   : > { %6581 = vst [vmem:[#allocation72_spill] sm:$0xff] %v4869_v49  ;;  %6582 = vst [vmem:[#allocation73_spill] sm:$0xff] %v4873_v30  ;;  %v4905_v31 = vmul.f32 %v4329_v60, %v4899_v25  ;;  %v4909_v56 = vmul.f32 %v4329_v60, %v4896_v2  ;;  %v4913_v63 = vmul.f32 %v4341_v1, %v4899_v25  ;;  %v905_v41 = vrot.slane %v779_v38, 7 }
 0x126   : > { %6583 = vst [vmem:[#allocation74_spill] sm:$0xff] %v4877_v62  ;;  %6584 = vst [vmem:[#allocation75_spill] sm:$0xff] %v4881_v44  ;;  %v901_v8 = vrot.slane %v776_v40, 7  ;;  %v2204_v50 = vmul.f32 %v4391_v48, %v4502_v21  ;;  %v2205_v57 = vmul.f32 %v4391_v48, %v4488_v28  ;;  %v2100_v51 = vadd.f32 %v1990_v17, %v1856_v14  ;;  %v3663_v14 = vpop.f32.mrf.mxu1 }
 0x127   : > { %6585 = vst [vmem:[#allocation76_spill] sm:$0xff] %v4886_v46  ;;  %6586 = vst [vmem:[#allocation77_spill] sm:$0xff] %v4905_v31  ;;  %v2136_v52 = vmul.f32 %v4407_v6, %v4502_v21  ;;  %v2449_v17 = vmul.f32 %v4399_v58, %v4488_v28  ;;  %v4947_v4 = vsel %vm870_vm1, %v905_v41, 0.0  ;;  %v2544_v30 = vrot.slane %v2448_v9, 2 }
 0x128   : > { %6587 = vst [vmem:[#allocation78_spill] sm:$0xff] %v4909_v56  ;;  %6588 = vst [vmem:[#allocation79_spill] sm:$0xff] %v4913_v63  ;;  %v4926_v43 = vsel %vm870_vm1, %v901_v8, %v902_v55  ;;  %v4929_v40 = vsel %vm870_vm1, 0.0, %v901_v8  ;;  %v2300_v53 = vrot.slane %v2204_v50, 1  ;;  %v2301_v8 = vrot.slane %v2205_v57, 1  ;;  %v661_v44 = vpop.f32.mrf.mxu1 }
 0x129   : > { %6591 = vst [vmem:[#allocation80_spill] sm:$0xff] %v4926_v43  ;;  %6592 = vst [vmem:[#allocation81_spill] sm:$0xff] %v4929_v40  ;;  %v4936_v3 = vmul.f32 %v4329_v60, %v4929_v40  ;;  %v4942_v55 = vmul.f32 %v4329_v60, %v4926_v43  ;;  %v2168_v47 = vadd.f32 %v2136_v52, %v2100_v51  ;;  %v2545_v9 = vrot.slane %v2449_v17, 2 }
 0x12a   : > { %6594 = vst [vmem:[#allocation83_spill] sm:$0xff] %v4947_v4  ;;  %v652_v38 = vadd.f32 %v4366_v19, %v651_v32  ;;  %v4952_v49 = vmul.f32 %v4329_v60, %v4947_v4  ;;  %v4960_v57 = vmul.f32 %v4376_v33, %v4947_v4  ;;  %v4964_v50 = vmul.f32 %v4378_v34, %v4947_v4 }
 0x12b   : > { %6593 = vst [vmem:[#allocation82_spill] sm:$0xff] %v4942_v55  ;;  %v4956_v55 = vmul.f32 %v4341_v1, %v4947_v4  ;;  %v4968_v51 = vmul.f32 %v4341_v1, %v4929_v40  ;;  %v4972_v32 = vmul.f32 %v4391_v48, %v4947_v4  ;;  %v2302_v56 = vsel %vm1186_vm2, %v2300_v53, %v2301_v8 }
 0x12c   : > { %6595 = vst [vmem:[#allocation84_spill] sm:$0xff] %v4952_v49  ;;  %6597 = vst [vmem:[#allocation86_spill] sm:$0xff] %v4960_v57  ;;  %v742_v52 = vmax.f32 %v652_v38, 0.0  ;;  %v2546_v17 = vsel %vm1431_vm3, %v2544_v30, %v2545_v9  ;;  %v4985_v38 = vld [vmem:[%s6378_s4] ss:$0 sm:$0xff]  ;;  %v2101_v63 = vadd.f32 %v4494_v35, %v4479_v22  ;;  %v2137_v53 = vmul.f32 %v4407_v6, %v4488_v28 }
 0x12d   : > { %6596 = vst [vmem:[#allocation85_spill] sm:$0xff] %v4956_v55  ;;  %6598 = vst [vmem:[#allocation87_spill] sm:$0xff] %v4964_v50  ;;  %v6600_v30 = vrot.slane %v4482_v26, 1  ;;  %v1651_v43 = vmul.f32 %v4376_v33, %v4502_v21  ;;  %v5000_v22 = vmul.f32 %v4376_v33, %v4488_v28 }
 0x12e   : > { %6599 = vst [vmem:[#allocation88_spill] sm:$0xff] %v4968_v51  ;;  %v2412_v51 = vadd.f32 %v2302_v56, %v2168_v47  ;;  %v778_v46 = vmin.f32 %v742_v52, 6.0  ;;  %v667_v56 = vadd.f32 %v3663_v14, %v4366_v19  ;;  %v662_v47 = vadd.f32 %v4366_v19, %v661_v44 }
 0x12f   : > { %v2169_v52 = vadd.f32 %v2137_v53, %v2101_v63  ;;  %v2304_v40 = vsel %vm1186_vm2, %v2301_v8, %v6600_v30  ;;  %v6602_v8 = vrot.slane %v4485_v27, 2  ;;  %v1750_v27 = vrot.slane %v5000_v22, 1 }
 0x130   : > { %v2656_v31 = vadd.f32 %v2546_v17, %v2412_v51  ;;  %v904_v62 = vrot.slane %v778_v46, 7  ;;  %v745_v44 = vmax.f32 %v667_v56, 0.0  ;;  %v1582_v17 = vmul.f32 %v4387_v39, %v4502_v21 }
 0x131   : > { %v2413_v63 = vadd.f32 %v2304_v40, %v2169_v52  ;;  %v2548_v51 = vsel %vm1431_vm3, %v2545_v9, %v6602_v8  ;;  %v744_v53 = vmax.f32 %v662_v47, 0.0  ;;  %v1749_v40 = vrot.slane %v1651_v43, 1 }
 0x132   : > { %v2695_v35 = vadd.f32 %v4985_v38, %v2656_v31  ;;  %v5004_v46 = vsel %vm870_vm1, %v904_v62, %v905_v41  ;;  %v5007_v14 = vsel %vm870_vm1, 0.0, %v904_v62  ;;  %v781_v62 = vmin.f32 %v745_v44, 6.0 }
 0x133   : > { %v5011_v26 = vmul.f32 %v4329_v60, %v5007_v14  ;;  %v5020_v41 = vmul.f32 %v4329_v60, %v5004_v46  ;;  %v5024_v56 = vmul.f32 %v4341_v1, %v5007_v14  ;;  %v2657_v30 = vadd.f32 %v2548_v51, %v2413_v63 }
 0x134   : > { %v2727_v31 = vmax.f32 %v2695_v35, 0.0  ;;  %v908_v9 = vrot.slane %v781_v62, 7  ;;  %v780_v8 = vmin.f32 %v744_v53, 6.0  ;;  %v1614_v4 = vadd.f32 %v1582_v17, %v4463_v12 }
 0x135   : > { %6601 = vst [vmem:[#allocation89_spill] sm:$0xff] %v5011_v26  ;;  %6603 = vst [vmem:[#allocation90_spill] sm:$0xff] %v5020_v41  ;;  %v2696_v55 = vadd.f32 %v4985_v38, %v2657_v30  ;;  %v1751_v44 = vsel %vm1186_vm2, %v1749_v40, %v1750_v27  ;;  %v1895_v47 = vmul.f32 %v4378_v34, %v4502_v21 }
 0x136   : > { %6604 = vst [vmem:[#allocation91_spill] sm:$0xff] %v5024_v56  ;;  %v2759_v52 = vmin.f32 %v2727_v31, 6.0  ;;  %v5034_v63 = vsel %vm870_vm1, %v908_v9, 0.0  ;;  %v907_v43 = vrot.slane %v780_v8, 7  ;;  %v1896_v22 = vmul.f32 %v4378_v34, %v4488_v28 }
 0x137   : > { %6605 = vst [vmem:[#allocation92_spill] sm:$0xff] %v5034_v63  ;;  %v2138_v12 = vmul.f32 %v4407_v6, %v4540_v20  ;;  %v2728_v51 = vmax.f32 %v2696_v55, 0.0  ;;  %v5042_v17 = vmul.f32 %v4329_v60, %v5034_v63  ;;  %v5046_v31 = vmul.f32 %v4341_v1, %v5034_v63 }
 0x138   : > { %3711 = vmatprep.mubr.f32.mxu1 %v2759_v52  ;;  %v5050_v62 = vmul.f32 %v4376_v33, %v5034_v63  ;;  %v5054_v53 = vmul.f32 %v4378_v34, %v5034_v63  ;;  %v5058_v30 = vmul.f32 %v4391_v48, %v5034_v63  ;;  %v5061_v55 = vsel %vm870_vm1, 0.0, %v907_v43 }
 0x139   : > { %6606 = vst [vmem:[#allocation93_spill] sm:$0xff] %v5042_v17  ;;  %6607 = vst [vmem:[#allocation94_spill] sm:$0xff] %v5046_v31  ;;  %v1858_v40 = vadd.f32 %v1751_v44, %v1614_v4  ;;  %v2760_v52 = vmin.f32 %v2728_v51, 6.0  ;;  %v5065_v35 = vsel %vm870_vm1, %v907_v43, %v908_v9  ;;  %v1993_v49 = vrot.slane %v1895_v47, 2  ;;  %v3666_v47 = vpop.f32.mrf.mxu1 }
 0x13a   : > { %6608 = vst [vmem:[#allocation95_spill] sm:$0xff] %v5050_v62  ;;  %6609 = vst [vmem:[#allocation96_spill] sm:$0xff] %v5054_v53  ;;  %v5073_v50 = vmul.f32 %v4329_v60, %v5061_v55  ;;  %v1994_v4 = vrot.slane %v1896_v22, 2  ;;  %v2207_v44 = vmul.f32 %v4391_v48, %v4540_v20  ;;  %v2208_v9 = vmul.f32 %v4391_v48, %v4537_v10 }
 0x13b   : > { %6610 = vst [vmem:[#allocation97_spill] sm:$0xff] %v5058_v30  ;;  %3712 = vmatmul.mubr.f32.vlgmr.msra.gmra.mxu1 %v2760_v52  ;;  %v5081_v43 = vmul.f32 %v4329_v60, %v5065_v35  ;;  %v2451_v51 = vmul.f32 %v4399_v58, %v4540_v20  ;;  %v2452_v52 = vmul.f32 %v4399_v58, %v4537_v10  ;;  %v6613_v56 = vrot.slane %v4412_v61, 2  ;;  %v671_v61 = vpop.f32.mrf.mxu1 }
 0x13c   : > { %6611 = vst [vmem:[#allocation98_spill] sm:$0xff] %v5073_v50  ;;  %v677_v26 = vadd.f32 %v3666_v47, %v4366_v19  ;;  %v1995_v22 = vsel %vm1431_vm3, %v1993_v49, %v1994_v4  ;;  %v2305_v8 = vrot.slane %v2207_v44, 1  ;;  %v2306_v41 = vrot.slane %v2208_v9, 1 }
 0x13d   : > { %6612 = vst [vmem:[#allocation99_spill] sm:$0xff] %v5081_v43  ;;  %v6614_v63 = vrot.slane %v4429_v29, 2  ;;  %v2102_v17 = vadd.f32 %v1995_v22, %v1858_v40  ;;  %v2549_v43 = vrot.slane %v2451_v51, 2  ;;  %v2550_v53 = vrot.slane %v2452_v52, 2 }
 0x13e   : > { %v747_v62 = vmax.f32 %v677_v26, 0.0  ;;  %v5097_v57 = vmul.f32 %v4341_v1, %v5061_v55  ;;  %v1583_v44 = vmul.f32 %v4387_v39, %v4488_v28  ;;  %v2307_v29 = vsel %vm1186_vm2, %v2305_v8, %v2306_v41 }
 0x13f   : > { %v1441_v31 = vsel %vm1431_vm3, %v6614_v63, %v6613_v56  ;;  %v2170_v9 = vadd.f32 %v2138_v12, %v2102_v17  ;;  %v6616_v63 = vrot.slane %v4474_v15, 1  ;;  %v2551_v40 = vsel %vm1431_vm3, %v2549_v43, %v2550_v53 }
 0x140   : > { %6615 = vst [vmem:[#allocation100_spill] sm:$0xff] %v5097_v57  ;;  %v1547_v49 = vadd.f32 %v1441_v31, %v4461_v11  ;;  %v783_v56 = vmin.f32 %v747_v62, 6.0  ;;  %v6617_v51 = vrot.slane %v4477_v24, 2  ;;  %v2453_v11 = vmul.f32 %v4399_v58, %v4534_v37 }
 0x141   : > { %v1753_v26 = vsel %vm1186_vm2, %v1750_v27, %v6616_v63  ;;  %v2414_v31 = vadd.f32 %v2307_v29, %v2170_v9  ;;  %v2139_v12 = vmul.f32 %v4407_v6, %v4537_v10  ;;  %v672_v17 = vadd.f32 %v4366_v19, %v671_v61 }
 0x142   : > { %v1615_v47 = vadd.f32 %v1583_v44, %v1547_v49  ;;  %v1997_v52 = vsel %vm1431_vm3, %v1994_v4, %v6617_v51  ;;  %v911_v22 = vrot.slane %v783_v56, 7  ;;  %v6618_v27 = vrot.slane %v4560_v45, 1 }
 0x143   : > { %v2552_v8 = vrot.slane %v2453_v11, 2  ;;  %v1026_v24 = vmul.f32 %v4350_v5, %v4502_v21  ;;  %v2658_v4 = vadd.f32 %v2551_v40, %v2414_v31  ;;  %v746_v37 = vmax.f32 %v672_v17, 0.0  ;;  %v3669_v31 = vpop.f32.mrf.mxu1 }
 0x144   : > { %v1859_v15 = vadd.f32 %v1753_v26, %v1615_v47  ;;  %v2309_v62 = vsel %vm1186_vm2, %v2306_v41, %v6618_v27  ;;  %v5121_v43 = vsel %vm870_vm1, %v911_v22, 0.0  ;;  %v1198_v49 = vrot.slane %v4507_v54, 1 }
 0x145   : > { %v5126_v44 = vmul.f32 %v4329_v60, %v5121_v43  ;;  %v5130_v19 = vmul.f32 %v4341_v1, %v5121_v43  ;;  %v5134_v45 = vmul.f32 %v4376_v33, %v5121_v43  ;;  %v5138_v21 = vmul.f32 %v4341_v1, %v4488_v28 }
 0x146   : > { %v2697_v41 = vadd.f32 %v4985_v38, %v2658_v4  ;;  %v5143_v54 = vmul.f32 %v4378_v34, %v5121_v43  ;;  %v2103_v61 = vadd.f32 %v1997_v52, %v1859_v15  ;;  %v1442_v9 = vrot.slane %v4527_v7, 2 }
 0x147   : > { %6619 = vst [vmem:[#allocation101_spill] sm:$0xff] %v5126_v44  ;;  %6620 = vst [vmem:[#allocation102_spill] sm:$0xff] %v5130_v19  ;;  %v5150_v63 = vmul.f32 %v4391_v48, %v5121_v43  ;;  %v2553_v26 = vsel %vm1431_vm3, %v2550_v53, %v2552_v8  ;;  %v782_v11 = vmin.f32 %v746_v37, 6.0  ;;  %v6623_v52 = vrot.slane %v4519_v36, 1 }
 0x148   : > { %6621 = vst [vmem:[#allocation103_spill] sm:$0xff] %v5134_v45  ;;  %6622 = vst [vmem:[#allocation104_spill] sm:$0xff] %v5143_v54  ;;  %v2729_v40 = vmax.f32 %v2697_v41, 0.0  ;;  %v2171_v51 = vadd.f32 %v2139_v12, %v2103_v61  ;;  %v1443_v17 = vrot.slane %v5138_v21, 2  ;;  %v1584_v15 = vmul.f32 %v4387_v39, %v4540_v20 }
 0x149   : > { %v1199_v7 = vsel %vm1186_vm2, %v6623_v52, %v1198_v49  ;;  %v1654_v27 = vmul.f32 %v4376_v33, %v4540_v20  ;;  %v910_v8 = vrot.slane %v782_v11, 7  ;;  %v1655_v37 = vmul.f32 %v4376_v33, %v4537_v10 }
 0x14a   : > { %v2761_v4 = vmin.f32 %v2729_v40, 6.0  ;;  %v2415_v53 = vadd.f32 %v2309_v62, %v2171_v51  ;;  %v1303_v41 = vadd.f32 %v1199_v7, %v1026_v24  ;;  %v1444_v12 = vsel %vm1431_vm3, %v1442_v9, %v1443_v17  ;;  %v5173_v40 = vpop.f32.mrf.mxu1 }
 0x14b   : > { %v1754_v36 = vrot.slane %v1654_v27, 1  ;;  %v1898_v61 = vmul.f32 %v4378_v34, %v4540_v20  ;;  %v5168_v52 = vsel %vm870_vm1, %v910_v8, %v911_v22  ;;  %v5171_v56 = vsel %vm870_vm1, 0.0, %v910_v8 }
 0x14c   : > { %3714 = vmatprep.mubr.f32.mxu1 %v2761_v4  ;;  %v2659_v21 = vadd.f32 %v2553_v26, %v2415_v53  ;;  %v1548_v62 = vadd.f32 %v1444_v12, %v1303_v41  ;;  %v5179_v51 = vmul.f32 %v4329_v60, %v5171_v56  ;;  %v1755_v11 = vrot.slane %v1655_v37, 1 }
 0x14d   : > { %v1899_v22 = vmul.f32 %v4378_v34, %v4537_v10  ;;  %v1998_v27 = vrot.slane %v1898_v61, 2  ;;  %v5186_v4 = vmul.f32 %v4329_v60, %v5168_v52  ;;  %v2140_v8 = vmul.f32 %v4407_v6, %v4607_v23 }
 0x14e   : > { %6624 = vst [vmem:[#allocation105_spill] sm:$0xff] %v5179_v51  ;;  %v2698_v26 = vadd.f32 %v4985_v38, %v2659_v21  ;;  %v1616_v7 = vadd.f32 %v1584_v15, %v1548_v62  ;;  %v1756_v53 = vsel %vm1186_vm2, %v1754_v36, %v1755_v11  ;;  %v2210_v41 = vmul.f32 %v4391_v48, %v4607_v23  ;;  %v5195_v62 = vpop.f32.mrf.mxu1 }
 0x14f   : > { %6625 = vst [vmem:[#allocation106_spill] sm:$0xff] %v5186_v4  ;;  %v1999_v21 = vrot.slane %v1899_v22, 2  ;;  %v2211_v15 = vmul.f32 %v4391_v48, %v4583_v16  ;;  %v2454_v29 = vmul.f32 %v4399_v58, %v4607_v23  ;;  %v5201_v36 = vmul.f32 %v4399_v58, %v4583_v16 }
 0x150   : > { %v2730_v12 = vmax.f32 %v2698_v26, 0.0  ;;  %v1860_v37 = vadd.f32 %v1756_v53, %v1616_v7  ;;  %v2310_v61 = vrot.slane %v2210_v41, 1  ;;  %v1027_v24 = vmul.f32 %v4350_v5, %v4488_v28 }
 0x151   : > { %v2000_v26 = vsel %vm1431_vm3, %v1998_v27, %v1999_v21  ;;  %v2311_v7 = vrot.slane %v2211_v15, 1  ;;  %v6626_v22 = vrot.slane %v4467_v13, 1  ;;  %v2554_v41 = vrot.slane %v2454_v29, 2 }
 0x152   : > { %v2762_v47 = vmin.f32 %v2730_v12, 6.0  ;;  %v2104_v30 = vadd.f32 %v2000_v26, %v1860_v37  ;;  %v2555_v9 = vrot.slane %v5201_v36, 2  ;;  %v5212_v44 = vmul.f32 %v4341_v1, %v5171_v56  ;;  %v6630_v36 = vld [vmem:[#allocation10_spill] sm:$0xff] }
 0x153   : > { %v1201_v53 = vsel %vm1186_vm2, %v1198_v49, %v6626_v22  ;;  %v2312_v28 = vsel %vm1186_vm2, %v2310_v61, %v2311_v7  ;;  %v6628_v12 = vrot.slane %v4471_v18, 2  ;;  %v1585_v13 = vmul.f32 %v4387_v39, %v4537_v10  ;;  %v5220_v49 = vpop.f32.mrf.mxu1 }
 0x154   : > { %v1304_v19 = vadd.f32 %v1201_v53, %v1027_v24  ;;  %3715 = vmatmul.mubr.f32.gmra.mxu1 %v2762_v47  ;;  %6627 = vst [vmem:[#allocation107_spill] sm:$0xff] %v5212_v44  ;;  %v2172_v29 = vadd.f32 %v2140_v8, %v2104_v30  ;;  %v2556_v37 = vsel %vm1431_vm3, %v2554_v41, %v2555_v9  ;;  %v6629_v47 = vrot.slane %v4552_v0, 1  ;;  %v5236_v30 = vld [vmem:[%s6376_s2] ss:$0 sm:$0xff]  ;;  %v6633_v53 = vld [vmem:[#allocation19_spill] sm:$0xff] }
 0x155   : > { %v1446_v27 = vsel %vm1431_vm3, %v1443_v17, %v6628_v12  ;;  %v6631_v26 = vrot.slane %v6630_v36, 2  ;;  %v2141_v18 = vmul.f32 %v4407_v6, %v4583_v16  ;;  %v6632_v17 = vld [vmem:[#allocation14_spill] sm:$0xff]  ;;  %v5239_v0 = vpop.f32.mrf.mxu1  ;;  %v6634_v41 = vrot.slane %v6633_v53, 1  ;;  %v6635_v12 = vld [vmem:[#allocation12_spill] sm:$0xff] }
 0x156   : > { %v1549_v24 = vadd.f32 %v1446_v27, %v1304_v19  ;;  %v1758_v15 = vsel %vm1186_vm2, %v1755_v11, %v6629_v47  ;;  %v2456_v22 = vmul.f32 %v4399_v58, %v6632_v17  ;;  %v687_v19 = vadd.f32 %v5236_v30, %v3669_v31  ;;  %v6636_v17 = vld [vmem:[#allocation13_spill] sm:$0xff] }
 0x157   : > { %v2002_v61 = vsel %vm1431_vm3, %v1999_v21, %v6631_v26  ;;  %v2416_v11 = vadd.f32 %v2312_v28, %v2172_v29  ;;  %v2314_v21 = vsel %vm1186_vm2, %v2311_v7, %v6634_v41  ;;  %v6476_v27 = vrot.slane %v6635_v12, 1  ;;  %v5262_v41 = vpop.f32.mrf.mxu1 }
 0x158   : > { %v1617_v8 = vadd.f32 %v1585_v13, %v1549_v24  ;;  %v749_v47 = vmax.f32 %v687_v19, 0.0  ;;  %v1028_v36 = vmul.f32 %v4350_v5, %v4540_v20  ;;  %v5249_v26 = vmul.f32 %v4341_v1, %v4537_v10  ;;  %v6637_v13 = vld [vmem:[#allocation11_spill] sm:$0xff] }
 0x159   : > { %v1447_v31 = vrot.slane %v6636_v17, 2  ;;  %v2660_v44 = vadd.f32 %v2556_v37, %v2416_v11  ;;  %v2557_v28 = vrot.slane %v2456_v22, 2  ;;  %v6638_v29 = vrot.slane %v6637_v13, 1  ;;  %v3678_v17 = vpop.f32.mrf.mxu1 }
 0x15a   : > { %v1861_v4 = vadd.f32 %v1758_v15, %v1617_v8  ;;  %v5257_v24 = vmin.f32 %v749_v47, 6.0  ;;  %v1448_v20 = vrot.slane %v5249_v26, 2  ;;  %v1586_v53 = vmul.f32 %v4387_v39, %v4607_v23 }
 0x15b   : > { %v1204_v7 = vsel %vm1186_vm2, %v6638_v29, %v6476_v27  ;;  %v2699_v37 = vadd.f32 %v4985_v38, %v2660_v44  ;;  %v1657_v22 = vmul.f32 %v4376_v33, %v4607_v23  ;;  %v5269_v11 = vmul.f32 %v4376_v33, %v4583_v16  ;;  %v711_v54 = vpop.f32.mrf.mxu1 }
 0x15c   : > { %v1305_v19 = vadd.f32 %v1204_v7, %v1028_v36  ;;  %v2105_v15 = vadd.f32 %v2002_v61, %v1861_v4  ;;  %v6480_v8 = vrot.slane %v5257_v24, 7  ;;  %v1449_v47 = vsel %vm1431_vm3, %v1447_v31, %v1448_v20 }
 0x15d   : > { %v1901_v36 = vmul.f32 %v4378_v34, %v4607_v23  ;;  %v1902_v26 = vmul.f32 %v4378_v34, %v4583_v16  ;;  %v2731_v44 = vmax.f32 %v2699_v37, 0.0  ;;  %v1759_v13 = vrot.slane %v1657_v22, 1 }
 0x15e   : > { %v2173_v4 = vadd.f32 %v2141_v18, %v2105_v15  ;;  %v1550_v61 = vadd.f32 %v1449_v47, %v1305_v19  ;;  %v5280_v29 = vsel %vm870_vm1, %v6480_v8, 0.0  ;;  %v1760_v7 = vrot.slane %v5269_v11, 1 }
 0x15f   : > { %6639 = vst [vmem:[#allocation10_spill] sm:$0xff] %v5280_v29  ;;  %v2003_v27 = vrot.slane %v1901_v36, 2  ;;  %v2004_v31 = vrot.slane %v1902_v26, 2  ;;  %v2763_v45 = vmin.f32 %v2731_v44, 6.0  ;;  %v5285_v57 = vmul.f32 %v4329_v60, %v5280_v29 }
 0x160   : > { %v2417_v50 = vadd.f32 %v2314_v21, %v2173_v4  ;;  %v5289_v18 = vmul.f32 %v4341_v1, %v5280_v29  ;;  %v2558_v37 = vsel %vm1431_vm3, %v2555_v9, %v2557_v28  ;;  %v5295_v15 = vmul.f32 %v4376_v33, %v5280_v29 }
 0x161   : > { %6640 = vst [vmem:[#allocation14_spill] sm:$0xff] %v5285_v57  ;;  %v1618_v22 = vadd.f32 %v1586_v53, %v1550_v61  ;;  %3717 = vmatprep.mubr.f32.mxu1 %v2763_v45  ;;  %v5299_v21 = vmul.f32 %v4378_v34, %v5280_v29  ;;  %v5303_v11 = vmul.f32 %v4391_v48, %v5280_v29  ;;  %v6645_v53 = vld [vmem:[#allocation30_spill] sm:$0xff]  ;;  %v6646_v61 = vld [vmem:[#allocation29_spill] sm:$0xff]  ;;  %v6647_v57 = vld [vmem:[#allocation8_spill] sm:$0xff]  ;;  %v6649_v51 = vrot.slane %v6635_v12, 1 }
 0x162   : > { %6641 = vst [vmem:[#allocation19_spill] sm:$0xff] %v5289_v18  ;;  %6642 = vst [vmem:[#allocation12_spill] sm:$0xff] %v5295_v15  ;;  %v2661_v54 = vadd.f32 %v2558_v37, %v2417_v50  ;;  %v1761_v47 = vsel %vm1186_vm2, %v1759_v13, %v1760_v7  ;;  %v2005_v50 = vsel %vm1431_vm3, %v2003_v27, %v2004_v31  ;;  %v6648_v15 = vrot.slane %v6647_v57, 1 }
 0x163   : > { %6643 = vst [vmem:[#allocation13_spill] sm:$0xff] %v5299_v21  ;;  %6644 = vst [vmem:[#allocation11_spill] sm:$0xff] %v5303_v11  ;;  %v1862_v26 = vadd.f32 %v1761_v47, %v1618_v22  ;;  %v2142_v17 = vmul.f32 %v4407_v6, %v6645_v53  ;;  %v2213_v44 = vmul.f32 %v4391_v48, %v6645_v53  ;;  %v6674_v21 = vld [vmem:[#allocation15_spill] sm:$0xff] }
 0x164   : > { %v2700_v45 = vadd.f32 %v4985_v38, %v2661_v54  ;;  %v2214_v13 = vmul.f32 %v4391_v48, %v6646_v61  ;;  %v2457_v37 = vmul.f32 %v4399_v58, %v6645_v53  ;;  %v2458_v22 = vmul.f32 %v4399_v58, %v6646_v61 }
 0x165   : > { %v2106_v4 = vadd.f32 %v2005_v50, %v1862_v26  ;;  %v2315_v54 = vrot.slane %v2213_v44, 1  ;;  %v682_v27 = vadd.f32 %v5236_v30, %v5173_v40  ;;  %v1029_v9 = vmul.f32 %v4350_v5, %v4537_v10  ;;  %v6650_v10 = vld [vmem:[#allocation9_spill] sm:$0xff] }
 0x166   : > { %v2732_v47 = vmax.f32 %v2700_v45, 0.0  ;;  %v2316_v28 = vrot.slane %v2214_v13, 1  ;;  %v2559_v26 = vrot.slane %v2457_v37, 2  ;;  %v2560_v50 = vrot.slane %v2458_v22, 2 }
 0x167   : > { %v2174_v36 = vadd.f32 %v2142_v17, %v2106_v4  ;;  %v748_v18 = vmax.f32 %v682_v27, 0.0  ;;  %v1206_v45 = vsel %vm1186_vm2, %v6649_v51, %v6648_v15  ;;  %v6651_v17 = vrot.slane %v6650_v10, 2  ;;  %v6654_v27 = vld [vmem:[#allocation18_spill] sm:$0xff] }
 0x168   : > { %v2764_v19 = vmin.f32 %v2732_v47, 6.0  ;;  %v2317_v40 = vsel %vm1186_vm2, %v2315_v54, %v2316_v28  ;;  %v1306_v29 = vadd.f32 %v1206_v45, %v1029_v9  ;;  %v2561_v37 = vsel %vm1431_vm3, %v2559_v26, %v2560_v50  ;;  %v6652_v47 = vld [vmem:[#allocation17_spill] sm:$0xff]  ;;  %v6656_v45 = vld [vmem:[#allocation20_spill] sm:$0xff] }
 0x169   : > { %v1451_v4 = vsel %vm1431_vm3, %v1448_v20, %v6651_v17  ;;  %v2418_v13 = vadd.f32 %v2317_v40, %v2174_v36  ;;  %v784_v22 = vmin.f32 %v748_v18, 6.0  ;;  %v1587_v57 = vmul.f32 %v4387_v39, %v4583_v16  ;;  %v6657_v40 = vld [vmem:[#allocation27_spill] sm:$0xff]  ;;  %v6659_v17 = vld [vmem:[#allocation21_spill] sm:$0xff] }
 0x16a   : > { %3718 = vmatmul.mubr.f32.gmra.mxu1 %v2764_v19  ;;  %v1551_v12 = vadd.f32 %v1451_v4, %v1306_v29  ;;  %v6653_v51 = vrot.slane %v6652_v47, 1  ;;  %v6655_v54 = vrot.slane %v6654_v27, 2  ;;  %v2459_v20 = vmul.f32 %v4399_v58, %v6656_v45  ;;  %v6664_v45 = vld [vmem:[#allocation22_spill] sm:$0xff] }
 0x16b   : > { %v2662_v19 = vadd.f32 %v2561_v37, %v2418_v13  ;;  %v913_v36 = vrot.slane %v784_v22, 7  ;;  %v2143_v18 = vmul.f32 %v4407_v6, %v6646_v61  ;;  %v697_v26 = vadd.f32 %v5236_v30, %v5195_v62 }
 0x16c   : > { %v1763_v15 = vsel %vm1186_vm2, %v1760_v7, %v6653_v51  ;;  %v2007_v9 = vsel %vm1431_vm3, %v2004_v31, %v6655_v54  ;;  %v1619_v29 = vadd.f32 %v1587_v57, %v1551_v12  ;;  %v6658_v10 = vrot.slane %v6657_v40, 1 }
 0x16d   : > { %v6487_v4 = vrot.slane %v6659_v17, 1  ;;  %v5357_v31 = vmul.f32 %v4341_v1, %v4583_v16  ;;  %v2701_v13 = vadd.f32 %v4985_v38, %v2662_v19  ;;  %v6660_v37 = vrot.slane %v5257_v24, 7 }
 0x16e   : > { %v2319_v7 = vsel %vm1186_vm2, %v2316_v28, %v6658_v10  ;;  %v5366_v62 = vsel %vm870_vm1, 0.0, %v913_v36  ;;  %v751_v57 = vmax.f32 %v697_v26, 0.0  ;;  %v1863_v12 = vadd.f32 %v1763_v15, %v1619_v29  ;;  %v6667_v26 = vld [vmem:[#allocation28_spill] sm:$0xff] }
 0x16f   : > { %v5363_v22 = vsel %vm870_vm1, %v913_v36, %v6660_v37  ;;  %v5370_v28 = vmul.f32 %v4329_v60, %v5366_v62  ;;  %v2562_v47 = vrot.slane %v2459_v20, 2  ;;  %v1030_v51 = vmul.f32 %v4350_v5, %v4607_v23 }
 0x170   : > { %6661 = vst [vmem:[#allocation30_spill] sm:$0xff] %v5363_v22  ;;  %v2733_v27 = vmax.f32 %v2701_v13, 0.0  ;;  %v5376_v24 = vmul.f32 %v4329_v60, %v5363_v22  ;;  %v5378_v54 = vmin.f32 %v751_v57, 6.0  ;;  %v6665_v19 = vrot.slane %v6664_v45, 1 }
 0x171   : > { %6662 = vst [vmem:[#allocation29_spill] sm:$0xff] %v5370_v28  ;;  %v5387_v15 = vmul.f32 %v4341_v1, %v5366_v62  ;;  %v2107_v20 = vadd.f32 %v2007_v9, %v1863_v12  ;;  %v2563_v23 = vsel %vm1431_vm3, %v2560_v50, %v2562_v47  ;;  %v1452_v29 = vrot.slane %v6667_v26, 2 }
 0x172   : > { %6663 = vst [vmem:[#allocation8_spill] sm:$0xff] %v5376_v24  ;;  %v1209_v36 = vsel %vm1186_vm2, %v6665_v19, %v6487_v4  ;;  %v2765_v40 = vmin.f32 %v2733_v27, 6.0  ;;  %v6486_v10 = vrot.slane %v5378_v54, 7  ;;  %v1453_v37 = vrot.slane %v5357_v31, 2 }
 0x173   : > { %6666 = vst [vmem:[#allocation9_spill] sm:$0xff] %v5387_v15  ;;  %v1307_v13 = vadd.f32 %v1209_v36, %v1030_v51  ;;  %v2175_v45 = vadd.f32 %v2143_v18, %v2107_v20  ;;  %v1660_v19 = vmul.f32 %v4376_v33, %v6645_v53  ;;  %v1661_v8 = vmul.f32 %v4376_v33, %v6646_v61 }
 0x174   : > { %3720 = vmatprep.mubr.f32.mxu1 %v2765_v40  ;;  %v5401_v50 = vsel %vm870_vm1, %v6486_v10, 0.0  ;;  %v1454_v9 = vsel %vm1431_vm3, %v1452_v29, %v1453_v37  ;;  %v1904_v31 = vmul.f32 %v4378_v34, %v6645_v53  ;;  %v1905_v18 = vmul.f32 %v4378_v34, %v6646_v61  ;;  %v6672_v29 = vld [vmem:[#allocation46_spill] sm:$0xff] }
 0x175   : > { %6668 = vst [vmem:[#allocation17_spill] sm:$0xff] %v5401_v50  ;;  %v2419_v12 = vadd.f32 %v2319_v7, %v2175_v45  ;;  %v5410_v47 = vmul.f32 %v4329_v60, %v5401_v50  ;;  %v5414_v51 = vmul.f32 %v4341_v1, %v5401_v50  ;;  %v5418_v27 = vmul.f32 %v4376_v33, %v5401_v50 }
 0x176   : > { %v1552_v36 = vadd.f32 %v1454_v9, %v1307_v13  ;;  %v1588_v20 = vmul.f32 %v4387_v39, %v6645_v53  ;;  %v1764_v26 = vrot.slane %v1660_v19, 1  ;;  %v2144_v7 = vmul.f32 %v4407_v6, %v6672_v29 }
 0x177   : > { %6669 = vst [vmem:[#allocation18_spill] sm:$0xff] %v5410_v47  ;;  %6670 = vst [vmem:[#allocation20_spill] sm:$0xff] %v5414_v51  ;;  %v2663_v40 = vadd.f32 %v2563_v23, %v2419_v12  ;;  %v5427_v57 = vmul.f32 %v4378_v34, %v5401_v50  ;;  %v5431_v44 = vmul.f32 %v4391_v48, %v5401_v50  ;;  %v1765_v19 = vrot.slane %v1661_v8, 1  ;;  %v6673_v47 = vld [vmem:[#allocation45_spill] sm:$0xff] }
 0x178   : > { %6671 = vst [vmem:[#allocation27_spill] sm:$0xff] %v5418_v27  ;;  %v1620_v10 = vadd.f32 %v1588_v20, %v1552_v36  ;;  %v2008_v28 = vrot.slane %v1904_v31, 2  ;;  %v2009_v23 = vrot.slane %v1905_v18, 2  ;;  %v2216_v12 = vmul.f32 %v4391_v48, %v6672_v29 }
 0x179   : > { %v2702_v4 = vadd.f32 %v4985_v38, %v2663_v40  ;;  %v1766_v45 = vsel %vm1186_vm2, %v1764_v26, %v1765_v19  ;;  %v2217_v15 = vmul.f32 %v4391_v48, %v6673_v47  ;;  %v2460_v24 = vmul.f32 %v4399_v58, %v6672_v29 }
 0x17a   : > { %v2461_v13 = vmul.f32 %v4399_v58, %v6673_v47  ;;  %v1864_v8 = vadd.f32 %v1766_v45, %v1620_v10  ;;  %v2010_v20 = vsel %vm1431_vm3, %v2008_v28, %v2009_v23  ;;  %v2320_v31 = vrot.slane %v2216_v12, 1 }
 0x17b   : > { %v2734_v36 = vmax.f32 %v2702_v4, 0.0  ;;  %v2321_v18 = vrot.slane %v2217_v15, 1  ;;  %v2564_v40 = vrot.slane %v2460_v24, 2  ;;  %v1031_v26 = vmul.f32 %v4350_v5, %v4583_v16  ;;  %v6677_v24 = vld [vmem:[#allocation16_spill] sm:$0xff] }
 0x17c   : > { %v2565_v9 = vrot.slane %v2461_v13, 2  ;;  %v2108_v50 = vadd.f32 %v2010_v20, %v1864_v8  ;;  %v6675_v11 = vrot.slane %v6674_v21, 1  ;;  %v6676_v22 = vrot.slane %v6659_v17, 1  ;;  %v6681_v8 = vld [vmem:[#allocation26_spill] sm:$0xff] }
 0x17d   : > { %v2766_v51 = vmin.f32 %v2734_v36, 6.0  ;;  %v2322_v28 = vsel %vm1186_vm2, %v2320_v31, %v2321_v18  ;;  %v6678_v45 = vrot.slane %v6677_v24, 2  ;;  %v1589_v21 = vmul.f32 %v4387_v39, %v6646_v61  ;;  %v6679_v36 = vld [vmem:[#allocation25_spill] sm:$0xff] }
 0x17e   : > { %v1211_v4 = vsel %vm1186_vm2, %v6676_v22, %v6675_v11  ;;  %v2176_v16 = vadd.f32 %v2144_v7, %v2108_v50  ;;  %v2566_v12 = vsel %vm1431_vm3, %v2564_v40, %v2565_v9  ;;  %v6680_v17 = vrot.slane %v6679_v36, 1  ;;  %v6684_v7 = vld [vmem:[#allocation33_spill] sm:$0xff] }
 0x17f   : > { %v1308_v15 = vadd.f32 %v1211_v4, %v1031_v26  ;;  %v1456_v13 = vsel %vm1431_vm3, %v1453_v37, %v6678_v45  ;;  %3721 = vmatmul.mubr.f32.gmra.mxu1 %v2766_v51  ;;  %v6682_v20 = vrot.slane %v6681_v8, 2  ;;  %v6683_v26 = vld [vmem:[#allocation32_spill] sm:$0xff]  ;;  %v692_v37 = vadd.f32 %v5236_v30, %v5220_v49  ;;  %v6685_v45 = vld [vmem:[#allocation37_spill] sm:$0xff]  ;;  %v6686_v8 = vld [vmem:[#allocation31_spill] sm:$0xff] }
 0x180   : > { %v1768_v11 = vsel %vm1186_vm2, %v1765_v19, %v6680_v17  ;;  %v2462_v4 = vmul.f32 %v4399_v58, %v6683_v26  ;;  %v2420_v50 = vadd.f32 %v2322_v28, %v2176_v16  ;;  %v2145_v51 = vmul.f32 %v4407_v6, %v6673_v47 }
 0x181   : > { %v1553_v22 = vadd.f32 %v1456_v13, %v1308_v15  ;;  %v2012_v31 = vsel %vm1431_vm3, %v2009_v23, %v6682_v20  ;;  %v1213_v40 = vrot.slane %v6684_v7, 1  ;;  %v1351_v19 = vmul.f32 %v4341_v1, %v6646_v61 }
 0x182   : > { %v750_v24 = vmax.f32 %v692_v37, 0.0  ;;  %v1032_v23 = vmul.f32 %v4350_v5, %v6645_v53  ;;  %v1457_v13 = vrot.slane %v6685_v45, 2  ;;  %v2664_v36 = vadd.f32 %v2566_v12, %v2420_v50 }
 0x183   : > { %v1621_v15 = vadd.f32 %v1589_v21, %v1553_v22  ;;  %v2567_v17 = vrot.slane %v2462_v4, 2  ;;  %v6687_v49 = vrot.slane %v6686_v8, 1  ;;  %v1458_v16 = vrot.slane %v1351_v19, 2 }
 0x184   : > { %v786_v26 = vmin.f32 %v750_v24, 6.0  ;;  %v1590_v27 = vmul.f32 %v4387_v39, %v6672_v29  ;;  %v2703_v21 = vadd.f32 %v4985_v38, %v2664_v36  ;;  %v1663_v53 = vmul.f32 %v4376_v33, %v6672_v29 }
 0x185   : > { %v1214_v28 = vsel %vm1186_vm2, %v6687_v49, %v1213_v40  ;;  %v1865_v20 = vadd.f32 %v1768_v11, %v1621_v15  ;;  %v1459_v22 = vsel %vm1431_vm3, %v1457_v13, %v1458_v16  ;;  %v1664_v12 = vmul.f32 %v4376_v33, %v6673_v47  ;;  %v6688_v13 = vld [vmem:[#allocation39_spill] sm:$0xff] }
 0x186   : > { %v1309_v7 = vadd.f32 %v1214_v28, %v1032_v23  ;;  %v916_v37 = vrot.slane %v786_v26, 7  ;;  %v1907_v11 = vmul.f32 %v4378_v34, %v6672_v29  ;;  %v2735_v19 = vmax.f32 %v2703_v21, 0.0 }
 0x187   : > { %v2109_v4 = vadd.f32 %v2012_v31, %v1865_v20  ;;  %v1769_v15 = vrot.slane %v1663_v53, 1  ;;  %v1770_v24 = vrot.slane %v1664_v12, 1  ;;  %v1908_v23 = vmul.f32 %v4378_v34, %v6673_v47 }
 0x188   : > { %v1554_v50 = vadd.f32 %v1459_v22, %v1309_v7  ;;  %v6689_v36 = vrot.slane %v6688_v13, 1  ;;  %v2568_v49 = vsel %vm1431_vm3, %v2565_v9, %v2567_v17  ;;  %v2767_v31 = vmin.f32 %v2735_v19, 6.0 }
 0x189   : > { %v2177_v45 = vadd.f32 %v2145_v51, %v2109_v4  ;;  %v5500_v20 = vsel %vm870_vm1, 0.0, %v916_v37  ;;  %v1771_v26 = vsel %vm1186_vm2, %v1769_v15, %v1770_v24  ;;  %v2013_v7 = vrot.slane %v1907_v11, 2  ;;  %v6690_v11 = vld [vmem:[#allocation23_spill] sm:$0xff] }
 0x18a   : > { %v2324_v8 = vsel %vm1186_vm2, %v2321_v18, %v6689_v36  ;;  %v1622_v28 = vadd.f32 %v1590_v27, %v1554_v50  ;;  %v2014_v53 = vrot.slane %v1908_v23, 2  ;;  %v2146_v51 = vmul.f32 %v4407_v6, %v4823_v42  ;;  %3723 = vmatprep.mubr.f32.mxu1 %v2767_v31 }
 0x18b   : > { %v2421_v21 = vadd.f32 %v2324_v8, %v2177_v45  ;;  %v2219_v18 = vmul.f32 %v4391_v48, %v4823_v42  ;;  %v2220_v27 = vmul.f32 %v4391_v48, %v4820_v59  ;;  %v2463_v9 = vmul.f32 %v4399_v58, %v4823_v42 }
 0x18c   : > { %v1866_v22 = vadd.f32 %v1771_v26, %v1622_v28  ;;  %v2464_v17 = vmul.f32 %v4399_v58, %v4820_v59  ;;  %v2015_v4 = vsel %vm1431_vm3, %v2013_v7, %v2014_v53  ;;  %v1033_v50 = vmul.f32 %v4350_v5, %v6646_v61 }
 0x18d   : > { %v2665_v12 = vadd.f32 %v2568_v49, %v2421_v21  ;;  %v6691_v19 = vrot.slane %v6690_v11, 1  ;;  %v2325_v45 = vrot.slane %v2219_v18, 1  ;;  %v2326_v13 = vrot.slane %v2220_v27, 1  ;;  %v6697_v11 = vld [vmem:[#allocation38_spill] sm:$0xff] }
 0x18e   : > { %v2110_v23 = vadd.f32 %v2015_v4, %v1866_v22  ;;  %v2569_v36 = vrot.slane %v2463_v9, 2  ;;  %v6692_v28 = vrot.slane %v5378_v54, 7  ;;  %v2570_v49 = vrot.slane %v2464_v17, 2 }
 0x18f   : > { %v1216_v15 = vsel %vm1186_vm2, %v1213_v40, %v6691_v19  ;;  %v2704_v8 = vadd.f32 %v4985_v38, %v2665_v12  ;;  %v1135_v61 = vmul.f32 %v4329_v60, %v5500_v20  ;;  %v2327_v21 = vsel %vm1186_vm2, %v2325_v45, %v2326_v13  ;;  %v6693_v40 = vld [vmem:[#allocation24_spill] sm:$0xff] }
 0x190   : > { %v5523_v31 = vsel %vm870_vm1, %v916_v37, %v6692_v28  ;;  %v1310_v26 = vadd.f32 %v1216_v15, %v1033_v50  ;;  %v2178_v7 = vadd.f32 %v2146_v51, %v2110_v23  ;;  %v6694_v22 = vrot.slane %v6693_v40, 2  ;;  %v6695_v12 = vld [vmem:[#allocation36_spill] sm:$0xff]  ;;  %v6699_v15 = vld [vmem:[#allocation51_spill] sm:$0xff] }
 0x191   : > { %v2736_v27 = vmax.f32 %v2704_v8, 0.0  ;;  %v1591_v54 = vmul.f32 %v4387_v39, %v6673_v47  ;;  %v6696_v37 = vrot.slane %v6695_v12, 1  ;;  %v2571_v50 = vsel %vm1431_vm3, %v2569_v36, %v2570_v49 }
 0x192   : > { %v1461_v18 = vsel %vm1431_vm3, %v1458_v16, %v6694_v22  ;;  %v2422_v4 = vadd.f32 %v2327_v21, %v2178_v7  ;;  %v6698_v51 = vrot.slane %v6697_v11, 2  ;;  %v2465_v23 = vmul.f32 %v4399_v58, %v6699_v15 }
 0x193   : > { %v1555_v9 = vadd.f32 %v1461_v18, %v1310_v26  ;;  %v1773_v17 = vsel %vm1186_vm2, %v1770_v24, %v6696_v37  ;;  %v2768_v16 = vmin.f32 %v2736_v27, 6.0  ;;  %v707_v8 = vadd.f32 %v5236_v30, %v5239_v0  ;;  %v6702_v37 = vld [vmem:[#allocation56_spill] sm:$0xff] }
 0x194   : > { %v2017_v19 = vsel %vm1431_vm3, %v2014_v53, %v6698_v51  ;;  %v702_v28 = vadd.f32 %v5236_v30, %v5262_v41  ;;  %v2666_v26 = vadd.f32 %v2571_v50, %v2422_v4  ;;  %v2147_v24 = vmul.f32 %v4407_v6, %v4820_v59 }
 0x195   : > { %v1623_v45 = vadd.f32 %v1591_v54, %v1555_v9  ;;  %v2572_v36 = vrot.slane %v2465_v23, 2  ;;  %v5550_v7 = vmul.f32 %v4329_v60, %v5523_v31  ;;  %3724 = vmatmul.mubr.f32.gmra.mxu1 %v2768_v16  ;;  %v753_v21 = vmax.f32 %v707_v8, 0.0 }
 0x196   : > { %v752_v40 = vmax.f32 %v702_v28, 0.0  ;;  %v1262_v22 = vrot.slane %v1135_v61, 1  ;;  %v2705_v18 = vadd.f32 %v4985_v38, %v2666_v26  ;;  %v1052_v0 = vmul.f32 %v4350_v5, %v5500_v20 }
 0x197   : > { %6700 = vst [vmem:[#allocation21_spill] sm:$0xff] %v5550_v7  ;;  %v1867_v53 = vadd.f32 %v1773_v17, %v1623_v45  ;;  %v6498_v30 = vrot.slane %v5550_v7, 1  ;;  %v1380_v41 = vmul.f32 %v4341_v1, %v5500_v20  ;;  %v789_v9 = vmin.f32 %v753_v21, 6.0 }
 0x198   : > { %v788_v54 = vmin.f32 %v752_v40, 6.0  ;;  %v5560_v60 = vmul.f32 %v4341_v1, %v5523_v31  ;;  %v2737_v12 = vmax.f32 %v2705_v18, 0.0  ;;  %v6703_v61 = vrot.slane %v6702_v37, 1 }
 0x199   : > { %v2111_v27 = vadd.f32 %v2017_v19, %v1867_v53  ;;  %v2573_v4 = vsel %vm1431_vm3, %v2570_v49, %v2572_v36  ;;  %v1264_v50 = vsel %vm1186_vm2, %v1262_v22, %v6498_v30  ;;  %v920_v51 = vrot.slane %v789_v9, 7 }
 0x19a   : > { %6701 = vst [vmem:[#allocation22_spill] sm:$0xff] %v5560_v60  ;;  %v2329_v17 = vsel %vm1186_vm2, %v2326_v13, %v6703_v61  ;;  %v919_v19 = vrot.slane %v788_v54, 7  ;;  %v1507_v15 = vrot.slane %v1380_v41, 2  ;;  %v2769_v23 = vmin.f32 %v2737_v12, 6.0 }
 0x19b   : > { %v2179_v11 = vadd.f32 %v2147_v24, %v2111_v27  ;;  %v1329_v16 = vadd.f32 %v1264_v50, %v1052_v0  ;;  %v6497_v45 = vrot.slane %v5560_v60, 2  ;;  %v1034_v8 = vmul.f32 %v4350_v5, %v6672_v29  ;;  %v6706_v29 = vld [vmem:[#allocation48_spill] sm:$0xff] }
 0x19c   : > { %v1013_v13 = vsel %vm870_vm1, %v920_v51, 0.0  ;;  %v5574_v49 = vsel %vm870_vm1, %v919_v19, %v920_v51  ;;  %v5577_v26 = vsel %vm870_vm1, 0.0, %v919_v19  ;;  %3726 = vmatprep.mubr.f32.mxu1 %v2769_v23  ;;  %v1218_v21 = vrot.slane %v6706_v29, 1 }
 0x19d   : > { %v2423_v28 = vadd.f32 %v2329_v17, %v2179_v11  ;;  %v5580_v24 = vmul.f32 %v4376_v33, %v1013_v13  ;;  %v5583_v36 = vmul.f32 %v4391_v48, %v1013_v13  ;;  %v5586_v53 = vmul.f32 %v4399_v58, %v1013_v13 }
 0x19e   : > { %v1509_v22 = vsel %vm1431_vm3, %v1507_v15, %v6497_v45  ;;  %v1610_v18 = vmul.f32 %v4387_v39, %v5577_v26  ;;  %v1354_v0 = vmul.f32 %v4341_v1, %v6673_v47  ;;  %v5598_v27 = vmul.f32 %v4378_v34, %v1013_v13 }
 0x19f   : > { %6704 = vst [vmem:[#allocation28_spill] sm:$0xff] %v5580_v24  ;;  %6705 = vst [vmem:[#allocation46_spill] sm:$0xff] %v5586_v53  ;;  %v2667_v40 = vadd.f32 %v2573_v4, %v2423_v28  ;;  %v5603_v54 = vmul.f32 %v4387_v39, %v5574_v49  ;;  %v1574_v37 = vadd.f32 %v1509_v22, %v1329_v16 }
 0x1a0   : > { %6707 = vst [vmem:[#allocation45_spill] sm:$0xff] %v5598_v27  ;;  %v5608_v61 = vmul.f32 %v4376_v33, %v5577_v26  ;;  %v5612_v17 = vmul.f32 %v4376_v33, %v5574_v49  ;;  %v5617_v50 = vmul.f32 %v4378_v34, %v5577_v26  ;;  %v5621_v11 = vmul.f32 %v4391_v48, %v5577_v26 }
 0x1a1   : > { %6708 = vst [vmem:[#allocation15_spill] sm:$0xff] %v5603_v54  ;;  %v2706_v12 = vadd.f32 %v4985_v38, %v2667_v40  ;;  %v6711_v38 = vld [vmem:[#allocation47_spill] sm:$0xff]  ;;  %v5626_v23 = vadd.f32 %v1610_v18, %v1574_v37  ;;  %v5631_v28 = vmul.f32 %v4378_v34, %v5574_v49  ;;  %v1592_v18 = vmul.f32 %v4387_v39, %v4823_v42 }
 0x1a2   : > { %6709 = vst [vmem:[#allocation16_spill] sm:$0xff] %v5608_v61  ;;  %6710 = vst [vmem:[#allocation25_spill] sm:$0xff] %v5617_v50  ;;  %v6712_v51 = vrot.slane %v6711_v38, 1  ;;  %v6714_v38 = vld [vmem:[#allocation50_spill] sm:$0xff]  ;;  %v1667_v37 = vmul.f32 %v4376_v33, %v4820_v59  ;;  %v1910_v45 = vmul.f32 %v4378_v34, %v4823_v42  ;;  %v1911_v30 = vmul.f32 %v4378_v34, %v4820_v59  ;;  %v6732_v61 = vld [vmem:[#allocation52_spill] sm:$0xff] }
 0x1a3   : > { %v2738_v15 = vmax.f32 %v2706_v12, 0.0  ;;  %6713 = vst [vmem:[#allocation26_spill] sm:$0xff] %v5626_v23  ;;  %v1462_v4 = vrot.slane %v6714_v38, 2  ;;  %v1666_v12 = vmul.f32 %v4376_v33, %v4823_v42  ;;  %v2467_v24 = vmul.f32 %v4399_v58, %v4896_v2 }
 0x1a4   : > { %v1219_v19 = vsel %vm1186_vm2, %v6712_v51, %v1218_v21  ;;  %v1463_v51 = vrot.slane %v1354_v0, 2  ;;  %v2148_v0 = vmul.f32 %v4407_v6, %v4899_v25  ;;  %v1775_v16 = vrot.slane %v1667_v37, 1 }
 0x1a5   : > { %v1311_v22 = vadd.f32 %v1219_v19, %v1034_v8  ;;  %v2770_v41 = vmin.f32 %v2738_v15, 6.0  ;;  %v2222_v19 = vmul.f32 %v4391_v48, %v4899_v25  ;;  %v2223_v15 = vmul.f32 %v4391_v48, %v4896_v2 }
 0x1a6   : > { %v1464_v8 = vsel %vm1431_vm3, %v1462_v4, %v1463_v51  ;;  %v1774_v29 = vrot.slane %v1666_v12, 1  ;;  %v2018_v13 = vrot.slane %v1910_v45, 2  ;;  %v2019_v9 = vrot.slane %v1911_v30, 2  ;;  %v6715_v30 = vld [vmem:[#allocation34_spill] sm:$0xff] }
 0x1a7   : > { %3727 = vmatmul.mubr.f32.gmra.mxu1 %v2770_v41  ;;  %v1556_v38 = vadd.f32 %v1464_v8, %v1311_v22  ;;  %v2330_v40 = vrot.slane %v2222_v19, 1  ;;  %v2331_v10 = vrot.slane %v2223_v15, 1  ;;  %v2466_v41 = vmul.f32 %v4399_v58, %v4899_v25 }
 0x1a8   : > { %v1776_v54 = vsel %vm1186_vm2, %v1774_v29, %v1775_v16  ;;  %v1035_v53 = vmul.f32 %v4350_v5, %v6673_v47  ;;  %v2020_v22 = vsel %vm1431_vm3, %v2018_v13, %v2019_v9  ;;  %v6716_v37 = vrot.slane %v6715_v30, 1  ;;  %v6719_v47 = vld [vmem:[#allocation54_spill] sm:$0xff] }
 0x1a9   : > { %v1624_v4 = vadd.f32 %v1592_v18, %v1556_v38  ;;  %v2332_v12 = vsel %vm1186_vm2, %v2330_v40, %v2331_v10  ;;  %v2574_v45 = vrot.slane %v2466_v41, 2  ;;  %v2575_v15 = vrot.slane %v2467_v24, 2  ;;  %v6717_v38 = vld [vmem:[#allocation35_spill] sm:$0xff] }
 0x1aa   : > { %v1221_v8 = vsel %vm1186_vm2, %v1218_v21, %v6716_v37  ;;  %v6718_v29 = vrot.slane %v6717_v38, 2  ;;  %v1593_v60 = vmul.f32 %v4387_v39, %v4820_v59  ;;  %v6720_v7 = vrot.slane %v6719_v47, 1  ;;  %v6721_v40 = vld [vmem:[#allocation55_spill] sm:$0xff] }
 0x1ab   : > { %v1868_v19 = vadd.f32 %v1776_v54, %v1624_v4  ;;  %v1312_v18 = vadd.f32 %v1221_v8, %v1035_v53  ;;  %v6722_v41 = vrot.slane %v6721_v40, 2  ;;  %v2149_v21 = vmul.f32 %v4407_v6, %v4896_v2  ;;  %v6723_v4 = vld [vmem:[#allocation76_spill] sm:$0xff]  ;;  %v6725_v8 = vld [vmem:[#allocation70_spill] sm:$0xff] }
 0x1ac   : > { %v1466_v27 = vsel %vm1431_vm3, %v1463_v51, %v6718_v29  ;;  %v1778_v13 = vsel %vm1186_vm2, %v1775_v16, %v6720_v7  ;;  %v2576_v53 = vsel %vm1431_vm3, %v2574_v45, %v2575_v15  ;;  %v6724_v51 = vrot.slane %v6723_v4, 1  ;;  %v6726_v16 = vld [vmem:[#allocation66_spill] sm:$0xff] }
 0x1ad   : > { %v2022_v30 = vsel %vm1431_vm3, %v2019_v9, %v6722_v41  ;;  %v2112_v24 = vadd.f32 %v2020_v22, %v1868_v19  ;;  %v1557_v54 = vadd.f32 %v1466_v27, %v1312_v18  ;;  %v2468_v38 = vmul.f32 %v4399_v58, %v6725_v8  ;;  %v6727_v19 = vld [vmem:[#allocation67_spill] sm:$0xff] }
 0x1ae   : > { %v2334_v37 = vsel %vm1186_vm2, %v2331_v10, %v6724_v51  ;;  %v1036_v7 = vmul.f32 %v4350_v5, %v4823_v42  ;;  %v1223_v29 = vrot.slane %v6726_v16, 1  ;;  %v1357_v9 = vmul.f32 %v4341_v1, %v4820_v59  ;;  %v6728_v10 = vld [vmem:[#allocation64_spill] sm:$0xff] }
 0x1af   : > { %v2180_v47 = vadd.f32 %v2148_v0, %v2112_v24  ;;  %v1625_v22 = vadd.f32 %v1593_v60, %v1557_v54  ;;  %v1467_v45 = vrot.slane %v6727_v19, 2  ;;  %v1594_v27 = vmul.f32 %v4387_v39, %v4899_v25 }
 0x1b0   : > { %v2577_v18 = vrot.slane %v2468_v38, 2  ;;  %v6729_v40 = vrot.slane %v6728_v10, 1  ;;  %v1468_v4 = vrot.slane %v1357_v9, 2  ;;  %v1669_v42 = vmul.f32 %v4376_v33, %v4899_v25 }
 0x1b1   : > { %v2424_v51 = vadd.f32 %v2332_v12, %v2180_v47  ;;  %v1869_v8 = vadd.f32 %v1778_v13, %v1625_v22  ;;  %v1670_v60 = vmul.f32 %v4376_v33, %v4896_v2  ;;  %v1913_v38 = vmul.f32 %v4378_v34, %v4899_v25  ;;  %v5713_v22 = vld [vmem:[%s6378_s4] ss:$0 sm:$0xff] }
 0x1b2   : > { %v1224_v41 = vsel %vm1186_vm2, %v6729_v40, %v1223_v29  ;;  %v2578_v0 = vsel %vm1431_vm3, %v2575_v15, %v2577_v18  ;;  %v1469_v24 = vsel %vm1431_vm3, %v1467_v45, %v1468_v4  ;;  %v1779_v54 = vrot.slane %v1669_v42, 1  ;;  %v6731_v42 = vld [vmem:[#allocation57_spill] sm:$0xff] }
 0x1b3   : > { %v1313_v16 = vadd.f32 %v1224_v41, %v1036_v7  ;;  %v2668_v19 = vadd.f32 %v2576_v53, %v2424_v51  ;;  %v2113_v10 = vadd.f32 %v2022_v30, %v1869_v8  ;;  %v1780_v40 = vrot.slane %v1670_v60, 1  ;;  %v6730_v7 = vld [vmem:[#allocation58_spill] sm:$0xff] }
 0x1b4   : > { %v1914_v12 = vmul.f32 %v4378_v34, %v4896_v2  ;;  %v2023_v13 = vrot.slane %v1913_v38, 2  ;;  %v2150_v47 = vmul.f32 %v4407_v6, %v6730_v7  ;;  %v2225_v15 = vmul.f32 %v4391_v48, %v6730_v7 }
 0x1b5   : > { %v1558_v9 = vadd.f32 %v1469_v24, %v1313_v16  ;;  %v2707_v53 = vadd.f32 %v5713_v22, %v2668_v19  ;;  %v2181_v30 = vadd.f32 %v2149_v21, %v2113_v10  ;;  %v1781_v18 = vsel %vm1186_vm2, %v1779_v54, %v1780_v40 }
 0x1b6   : > { %v2024_v41 = vrot.slane %v1914_v12, 2  ;;  %v2226_v51 = vmul.f32 %v4391_v48, %v6731_v42  ;;  %v2335_v8 = vrot.slane %v2225_v15, 1  ;;  %v2469_v16 = vmul.f32 %v4399_v58, %v6730_v7 }
 0x1b7   : > { %v1626_v45 = vadd.f32 %v1594_v27, %v1558_v9  ;;  %v2739_v60 = vmax.f32 %v2707_v53, 0.0  ;;  %v2425_v24 = vadd.f32 %v2334_v37, %v2181_v30  ;;  %v2470_v50 = vmul.f32 %v4399_v58, %v6731_v42  ;;  %v6734_v30 = vld [vmem:[#allocation53_spill] sm:$0xff] }
 0x1b8   : > { %v2025_v19 = vsel %vm1431_vm3, %v2023_v13, %v2024_v41  ;;  %v2336_v21 = vrot.slane %v2226_v51, 1  ;;  %v2579_v27 = vrot.slane %v2469_v16, 2  ;;  %v1037_v54 = vmul.f32 %v4350_v5, %v4820_v59  ;;  %v6736_v16 = vld [vmem:[#allocation74_spill] sm:$0xff] }
 0x1b9   : > { %v1870_v38 = vadd.f32 %v1781_v18, %v1626_v45  ;;  %v2771_v10 = vmin.f32 %v2739_v60, 6.0  ;;  %v2669_v9 = vadd.f32 %v2578_v0, %v2425_v24  ;;  %v2580_v15 = vrot.slane %v2470_v50, 2  ;;  %v6738_v60 = vld [vmem:[#allocation75_spill] sm:$0xff] }
 0x1ba   : > { %v2337_v23 = vsel %vm1186_vm2, %v2335_v8, %v2336_v21  ;;  %v6733_v53 = vrot.slane %v6732_v61, 1  ;;  %v6735_v45 = vrot.slane %v6734_v30, 2  ;;  %v1595_v13 = vmul.f32 %v4387_v39, %v4896_v2  ;;  %v6744_v30 = vld [vmem:[#allocation79_spill] sm:$0xff] }
 0x1bb   : > { %v2114_v12 = vadd.f32 %v2025_v19, %v1870_v38  ;;  %3729 = vmatprep.mubr.f32.mxu1 %v2771_v10  ;;  %v2708_v59 = vadd.f32 %v5713_v22, %v2669_v9  ;;  %v2581_v0 = vsel %vm1431_vm3, %v2579_v27, %v2580_v15  ;;  %v6737_v8 = vrot.slane %v6736_v16, 1  ;;  %v6740_v38 = vld [vmem:[#allocation49_spill] sm:$0xff]  ;;  %v6742_v27 = vld [vmem:[#allocation40_spill] sm:$0xff] }
 0x1bc   : > { %v1226_v37 = vsel %vm1186_vm2, %v1223_v29, %v6733_v53  ;;  %v1471_v18 = vsel %vm1431_vm3, %v1468_v4, %v6735_v45  ;;  %v6739_v29 = vrot.slane %v6738_v60, 2  ;;  %v2151_v4 = vmul.f32 %v4407_v6, %v6731_v42  ;;  %v6743_v53 = vld [vmem:[#allocation78_spill] sm:$0xff] }
 0x1bd   : > { %v2182_v51 = vadd.f32 %v2150_v47, %v2114_v12  ;;  %v1314_v50 = vadd.f32 %v1226_v37, %v1037_v54  ;;  %v1783_v61 = vsel %vm1186_vm2, %v1780_v40, %v6737_v8  ;;  %v6741_v19 = vrot.slane %v6740_v38, 1 }
 0x1be   : > { %v2027_v24 = vsel %vm1431_vm3, %v2024_v41, %v6739_v29  ;;  %v2740_v9 = vmax.f32 %v2708_v59, 0.0  ;;  %v2471_v54 = vmul.f32 %v4399_v58, %v6742_v27  ;;  %v1038_v40 = vmul.f32 %v4350_v5, %v4899_v25  ;;  %v6745_v59 = vld [vmem:[#allocation77_spill] sm:$0xff] }
 0x1bf   : > { %v2339_v10 = vsel %vm1186_vm2, %v2336_v21, %v6741_v19  ;;  %v2426_v47 = vadd.f32 %v2337_v23, %v2182_v51  ;;  %v1559_v12 = vadd.f32 %v1471_v18, %v1314_v50  ;;  %v1228_v37 = vrot.slane %v6743_v53, 1 }
 0x1c0   : > { %v1360_v41 = vmul.f32 %v4341_v1, %v4896_v2  ;;  %v1472_v45 = vrot.slane %v6744_v30, 2  ;;  %v2772_v16 = vmin.f32 %v2740_v9, 6.0  ;;  %v2582_v21 = vrot.slane %v2471_v54, 2 }
 0x1c1   : > { %v2670_v8 = vadd.f32 %v2581_v0, %v2426_v47  ;;  %v1627_v60 = vadd.f32 %v1595_v13, %v1559_v12  ;;  %v6746_v23 = vrot.slane %v6745_v59, 1  ;;  %v1596_v50 = vmul.f32 %v4387_v39, %v6730_v7 }
 0x1c2   : > { %v1473_v51 = vrot.slane %v1360_v41, 2  ;;  %v1672_v25 = vmul.f32 %v4376_v33, %v6730_v7  ;;  %3730 = vmatmul.mubr.f32.gmra.mxu1 %v2772_v16  ;;  %v2583_v19 = vsel %vm1431_vm3, %v2580_v15, %v2582_v21  ;;  %v1673_v9 = vmul.f32 %v4376_v33, %v6731_v42  ;;  %v6747_v16 = vld [vmem:[#allocation81_spill] sm:$0xff] }
 0x1c3   : > { %v1229_v18 = vsel %vm1186_vm2, %v6746_v23, %v1228_v37  ;;  %v2709_v29 = vadd.f32 %v5713_v22, %v2670_v8  ;;  %v1871_v38 = vadd.f32 %v1783_v61, %v1627_v60  ;;  %v1916_v12 = vmul.f32 %v4378_v34, %v6730_v7  ;;  %v6748_v23 = vld [vmem:[#allocation80_spill] sm:$0xff] }
 0x1c4   : > { %v1315_v0 = vadd.f32 %v1229_v18, %v1038_v40  ;;  %v1474_v13 = vsel %vm1431_vm3, %v1472_v45, %v1473_v51  ;;  %v1784_v47 = vrot.slane %v1672_v25, 1  ;;  %v1917_v41 = vmul.f32 %v4378_v34, %v6731_v42 }
 0x1c5   : > { %v2741_v27 = vmax.f32 %v2709_v29, 0.0  ;;  %v2115_v54 = vadd.f32 %v2027_v24, %v1871_v38  ;;  %v1785_v30 = vrot.slane %v1673_v9, 1  ;;  %v2028_v61 = vrot.slane %v1916_v12, 2 }
 0x1c6   : > { %v1560_v53 = vadd.f32 %v1474_v13, %v1315_v0  ;;  %v2152_v15 = vmul.f32 %v4407_v6, %v6747_v16  ;;  %v2228_v40 = vmul.f32 %v4391_v48, %v6747_v16  ;;  %v2029_v21 = vrot.slane %v1917_v41, 2 }
 0x1c7   : > { %v2773_v45 = vmin.f32 %v2741_v27, 6.0  ;;  %v2183_v8 = vadd.f32 %v2151_v4, %v2115_v54  ;;  %v1786_v59 = vsel %vm1186_vm2, %v1784_v47, %v1785_v30  ;;  %v2229_v24 = vmul.f32 %v4391_v48, %v6748_v23  ;;  %v6749_v47 = vld [vmem:[#allocation72_spill] sm:$0xff] }
 0x1c8   : > { %v1628_v60 = vadd.f32 %v1596_v50, %v1560_v53  ;;  %v2340_v18 = vrot.slane %v2228_v40, 1  ;;  %v2472_v25 = vmul.f32 %v4399_v58, %v6747_v16  ;;  %v2030_v0 = vsel %vm1431_vm3, %v2028_v61, %v2029_v21  ;;  %v6751_v40 = vld [vmem:[#allocation73_spill] sm:$0xff] }
 0x1c9   : > { %3732 = vmatprep.mubr.f32.mxu1 %v2773_v45  ;;  %v2427_v29 = vadd.f32 %v2339_v10, %v2183_v8  ;;  %v2473_v13 = vmul.f32 %v4399_v58, %v6748_v23  ;;  %v2341_v4 = vrot.slane %v2229_v24, 1  ;;  %v1039_v9 = vmul.f32 %v4350_v5, %v4896_v2 }
 0x1ca   : > { %v1872_v38 = vadd.f32 %v1786_v59, %v1628_v60  ;;  %v2584_v50 = vrot.slane %v2472_v25, 2  ;;  %v6750_v12 = vrot.slane %v6749_v47, 1  ;;  %v6752_v10 = vrot.slane %v6751_v40, 2  ;;  %v6753_v59 = vld [vmem:[#allocation43_spill] sm:$0xff] }
 0x1cb   : > { %v2671_v54 = vadd.f32 %v2583_v19, %v2427_v29  ;;  %v2585_v41 = vrot.slane %v2473_v13, 2  ;;  %v2342_v61 = vsel %vm1186_vm2, %v2340_v18, %v2341_v4  ;;  %v1597_v60 = vmul.f32 %v4387_v39, %v6731_v42  ;;  %v6755_v29 = vld [vmem:[#allocation44_spill] sm:$0xff]  ;;  %v6757_v13 = vld [vmem:[#allocation71_spill] sm:$0xff] }
 0x1cc   : > { %v1231_v27 = vsel %vm1186_vm2, %v1228_v37, %v6750_v12  ;;  %v2116_v53 = vadd.f32 %v2030_v0, %v1872_v38  ;;  %v1476_v45 = vsel %vm1431_vm3, %v1473_v51, %v6752_v10  ;;  %v6754_v24 = vrot.slane %v6753_v59, 1  ;;  %v6759_v12 = vld [vmem:[#allocation62_spill] sm:$0xff] }
 0x1cd   : > { %v1316_v8 = vadd.f32 %v1231_v27, %v1039_v9  ;;  %v2710_v25 = vadd.f32 %v5713_v22, %v2671_v54  ;;  %v2586_v19 = vsel %vm1431_vm3, %v2584_v50, %v2585_v41  ;;  %v6756_v38 = vrot.slane %v6755_v29, 2  ;;  %v6760_v50 = vld [vmem:[#allocation60_spill] sm:$0xff] }
 0x1ce   : > { %v1788_v2 = vsel %vm1186_vm2, %v1785_v30, %v6754_v24  ;;  %v2184_v37 = vadd.f32 %v2152_v15, %v2116_v53  ;;  %v2153_v18 = vmul.f32 %v4407_v6, %v6748_v23  ;;  %v6758_v9 = vrot.slane %v6757_v13, 1 }
 0x1cf   : > { %v2032_v0 = vsel %vm1431_vm3, %v2029_v21, %v6756_v38  ;;  %v1561_v51 = vadd.f32 %v1476_v45, %v1316_v8  ;;  %v2474_v30 = vmul.f32 %v4399_v58, %v6759_v12  ;;  %v2742_v27 = vmax.f32 %v2710_v25, 0.0  ;;  %v6761_v45 = vld [vmem:[#allocation61_spill] sm:$0xff] }
 0x1d0   : > { %v2344_v47 = vsel %vm1186_vm2, %v2341_v4, %v6758_v9  ;;  %v2428_v54 = vadd.f32 %v2342_v61, %v2184_v37  ;;  %v1040_v15 = vmul.f32 %v4350_v5, %v6730_v7  ;;  %v1233_v53 = vrot.slane %v6760_v50, 1  ;;  %v6762_v4 = vld [vmem:[#allocation59_spill] sm:$0xff] }
 0x1d1   : > { %v1629_v40 = vadd.f32 %v1597_v60, %v1561_v51  ;;  %v2587_v21 = vrot.slane %v2474_v30, 2  ;;  %v1363_v10 = vmul.f32 %v4341_v1, %v6731_v42  ;;  %v1477_v8 = vrot.slane %v6761_v45, 2 }
 0x1d2   : > { %v2774_v59 = vmin.f32 %v2742_v27, 6.0  ;;  %v2672_v24 = vadd.f32 %v2586_v19, %v2428_v54  ;;  %v6763_v29 = vrot.slane %v6762_v4, 1  ;;  %v1598_v61 = vmul.f32 %v4387_v39, %v6747_v16 }
 0x1d3   : > { %v1873_v25 = vadd.f32 %v1788_v2, %v1629_v40  ;;  %v2588_v7 = vsel %vm1431_vm3, %v2585_v41, %v2587_v21  ;;  %v1478_v60 = vrot.slane %v1363_v10, 2  ;;  %v1675_v13 = vmul.f32 %v4376_v33, %v6747_v16 }
 0x1d4   : > { %v1234_v38 = vsel %vm1186_vm2, %v6763_v29, %v1233_v53  ;;  %3733 = vmatmul.mubr.f32.gmra.mxu1 %v2774_v59  ;;  %v2711_v51 = vadd.f32 %v5713_v22, %v2672_v24  ;;  %v1676_v19 = vmul.f32 %v4376_v33, %v6748_v23  ;;  %v1919_v9 = vmul.f32 %v4378_v34, %v6747_v16 }
 0x1d5   : > { %v1317_v37 = vadd.f32 %v1234_v38, %v1040_v15  ;;  %v2117_v12 = vadd.f32 %v2032_v0, %v1873_v25  ;;  %v1479_v30 = vsel %vm1431_vm3, %v1477_v8, %v1478_v60  ;;  %v1920_v41 = vmul.f32 %v4378_v34, %v6748_v23 }
 0x1d6   : > { %v2154_v2 = vmul.f32 %v4407_v6, %v5007_v14  ;;  %v2743_v27 = vmax.f32 %v2711_v51, 0.0  ;;  %v1789_v15 = vrot.slane %v1675_v13, 1  ;;  %v1790_v50 = vrot.slane %v1676_v19, 1 }
 0x1d7   : > { %v1562_v54 = vadd.f32 %v1479_v30, %v1317_v37  ;;  %v2185_v40 = vadd.f32 %v2153_v18, %v2117_v12  ;;  %v2033_v21 = vrot.slane %v1919_v9, 2  ;;  %v2034_v10 = vrot.slane %v1920_v41, 2  ;;  %v6764_v9 = vld [vmem:[#allocation41_spill] sm:$0xff]  ;;  %v6766_v30 = vld [vmem:[#allocation42_spill] sm:$0xff] }
 0x1d8   : > { %v2231_v45 = vmul.f32 %v4391_v48, %v5007_v14  ;;  %v2775_v59 = vmin.f32 %v2743_v27, 6.0  ;;  %v1791_v8 = vsel %vm1186_vm2, %v1789_v15, %v1790_v50  ;;  %v2232_v24 = vmul.f32 %v4391_v48, %v5004_v46 }
 0x1d9   : > { %v1630_v0 = vadd.f32 %v1598_v61, %v1562_v54  ;;  %v2429_v4 = vadd.f32 %v2344_v47, %v2185_v40  ;;  %v2035_v29 = vsel %vm1431_vm3, %v2033_v21, %v2034_v10  ;;  %v2475_v25 = vmul.f32 %v4399_v58, %v5007_v14 }
 0x1da   : > { %v2345_v38 = vrot.slane %v2231_v45, 1  ;;  %3735 = vmatprep.mubr.f32.mxu1 %v2775_v59  ;;  %v2346_v37 = vrot.slane %v2232_v24, 1  ;;  %v2476_v51 = vmul.f32 %v4399_v58, %v5004_v46  ;;  %v1041_v61 = vmul.f32 %v4350_v5, %v6731_v42 }
 0x1db   : > { %v1874_v18 = vadd.f32 %v1791_v8, %v1630_v0  ;;  %v2673_v13 = vadd.f32 %v2588_v7, %v2429_v4  ;;  %v2589_v19 = vrot.slane %v2475_v25, 2  ;;  %v6765_v12 = vrot.slane %v6764_v9, 1  ;;  %v6768_v7 = vld [vmem:[#allocation68_spill] sm:$0xff]  ;;  %v6770_v8 = vld [vmem:[#allocation69_spill] sm:$0xff] }
 0x1dc   : > { %v6767_v41 = vrot.slane %v6766_v30, 2  ;;  %v2347_v15 = vsel %vm1186_vm2, %v2345_v38, %v2346_v37  ;;  %v2590_v40 = vrot.slane %v2476_v51, 2  ;;  %v1599_v42 = vmul.f32 %v4387_v39, %v6748_v23 }
 0x1dd   : > { %v1236_v47 = vsel %vm1186_vm2, %v1233_v53, %v6765_v12  ;;  %v2118_v54 = vadd.f32 %v2035_v29, %v1874_v18  ;;  %v2712_v45 = vadd.f32 %v5713_v22, %v2673_v13  ;;  %v6769_v59 = vrot.slane %v6768_v7, 1 }
 0x1de   : > { %v1481_v27 = vsel %vm1431_vm3, %v1478_v60, %v6767_v41  ;;  %v1318_v21 = vadd.f32 %v1236_v47, %v1041_v61  ;;  %v6771_v53 = vrot.slane %v6770_v8, 2  ;;  %v2591_v60 = vsel %vm1431_vm3, %v2589_v19, %v2590_v40  ;;  %v6773_v61 = vld [vmem:[#allocation83_spill] sm:$0xff]  ;;  %v6775_v41 = vld [vmem:[#allocation88_spill] sm:$0xff] }
 0x1df   : > { %v1793_v0 = vsel %vm1186_vm2, %v1790_v50, %v6769_v59  ;;  %v2186_v4 = vadd.f32 %v2154_v2, %v2118_v54  ;;  %v2155_v38 = vmul.f32 %v4407_v6, %v5004_v46  ;;  %v2744_v25 = vmax.f32 %v2712_v45, 0.0  ;;  %v6774_v2 = vld [vmem:[#allocation82_spill] sm:$0xff] }
 0x1e0   : > { %v2037_v24 = vsel %vm1431_vm3, %v2034_v10, %v6771_v53  ;;  %v1563_v29 = vadd.f32 %v1481_v27, %v1318_v21  ;;  %v6772_v18 = vrot.slane %v4972_v32, 1  ;;  %v2477_v13 = vmul.f32 %v4399_v58, %v6773_v61 }
 0x1e1   : > { %v1042_v50 = vmul.f32 %v4350_v5, %v6747_v16  ;;  %v2430_v9 = vadd.f32 %v2347_v15, %v2186_v4  ;;  %v1238_v12 = vrot.slane %v6774_v2, 1  ;;  %v1366_v19 = vmul.f32 %v4341_v1, %v6748_v23 }
 0x1e2   : > { %v2349_v51 = vsel %vm1186_vm2, %v2346_v37, %v6772_v18  ;;  %v1631_v10 = vadd.f32 %v1599_v42, %v1563_v29  ;;  %v2776_v47 = vmin.f32 %v2744_v25, 6.0  ;;  %v2592_v30 = vrot.slane %v2477_v13, 2 }
 0x1e3   : > { %v1482_v27 = vrot.slane %v6775_v41, 2  ;;  %v1600_v32 = vmul.f32 %v4387_v39, %v5007_v14  ;;  %v2674_v37 = vadd.f32 %v2591_v60, %v2430_v9  ;;  %v6776_v21 = vrot.slane %v4936_v3, 1 }
 0x1e4   : > { %v1875_v54 = vadd.f32 %v1793_v0, %v1631_v10  ;;  %v1483_v15 = vrot.slane %v1366_v19, 2  ;;  %3736 = vmatmul.mubr.f32.gmra.mxu1 %v2776_v47  ;;  %v2593_v45 = vsel %vm1431_vm3, %v2590_v40, %v2592_v30  ;;  %v1678_v7 = vmul.f32 %v4376_v33, %v5007_v14 }
 0x1e5   : > { %v1239_v16 = vsel %vm1186_vm2, %v6776_v21, %v1238_v12  ;;  %v1679_v59 = vmul.f32 %v4376_v33, %v5004_v46  ;;  %v2713_v8 = vadd.f32 %v5713_v22, %v2674_v37  ;;  %v1922_v3 = vmul.f32 %v4378_v34, %v5007_v14 }
 0x1e6   : > { %v1319_v42 = vadd.f32 %v1239_v16, %v1042_v50  ;;  %v2119_v53 = vadd.f32 %v2037_v24, %v1875_v54  ;;  %v1484_v0 = vsel %vm1431_vm3, %v1482_v27, %v1483_v15  ;;  %v1794_v60 = vrot.slane %v1678_v7, 1  ;;  %v6777_v7 = vld [vmem:[#allocation63_spill] sm:$0xff] }
 0x1e7   : > { %v1795_v29 = vrot.slane %v1679_v59, 1  ;;  %v1923_v40 = vmul.f32 %v4378_v34, %v5004_v46  ;;  %v2745_v25 = vmax.f32 %v2713_v8, 0.0  ;;  %v2038_v61 = vrot.slane %v1922_v3, 2 }
 0x1e8   : > { %v1564_v4 = vadd.f32 %v1484_v0, %v1319_v42  ;;  %v2187_v18 = vadd.f32 %v2155_v38, %v2119_v53  ;;  %v2156_v13 = vmul.f32 %v4407_v6, %v5061_v55  ;;  %v2234_v10 = vmul.f32 %v4391_v48, %v5061_v55  ;;  %v6779_v53 = vld [vmem:[#allocation65_spill] sm:$0xff] }
 0x1e9   : > { %v1796_v24 = vsel %vm1186_vm2, %v1794_v60, %v1795_v29  ;;  %v2039_v9 = vrot.slane %v1923_v40, 2  ;;  %v2777_v2 = vmin.f32 %v2745_v25, 6.0  ;;  %v2235_v47 = vmul.f32 %v4391_v48, %v5065_v35 }
 0x1ea   : > { %v1632_v50 = vadd.f32 %v1600_v32, %v1564_v4  ;;  %v2431_v19 = vadd.f32 %v2349_v51, %v2187_v18  ;;  %v2478_v30 = vmul.f32 %v4399_v58, %v5061_v55  ;;  %v2350_v27 = vrot.slane %v2234_v10, 1  ;;  %v6781_v18 = vld [vmem:[#allocation86_spill] sm:$0xff] }
 0x1eb   : > { %v2040_v41 = vsel %vm1431_vm3, %v2038_v61, %v2039_v9  ;;  %v2479_v32 = vmul.f32 %v4399_v58, %v5065_v35  ;;  %3738 = vmatprep.mubr.f32.mxu1 %v2777_v2  ;;  %v2351_v54 = vrot.slane %v2235_v47, 1  ;;  %v1043_v51 = vmul.f32 %v4350_v5, %v6748_v23  ;;  %v6785_v47 = vld [vmem:[#allocation97_spill] sm:$0xff] }
 0x1ec   : > { %v1876_v38 = vadd.f32 %v1796_v24, %v1632_v50  ;;  %v2675_v37 = vadd.f32 %v2593_v45, %v2431_v19  ;;  %v2594_v21 = vrot.slane %v2478_v30, 2  ;;  %v6778_v59 = vrot.slane %v6777_v7, 1 }
 0x1ed   : > { %v2595_v42 = vrot.slane %v2479_v32, 2  ;;  %v6780_v0 = vrot.slane %v6779_v53, 2  ;;  %v2352_v60 = vsel %vm1186_vm2, %v2350_v27, %v2351_v54  ;;  %v1601_v40 = vmul.f32 %v4387_v39, %v5004_v46  ;;  %v6788_v32 = vld [vmem:[#allocation90_spill] sm:$0xff]  ;;  %v6790_v53 = vld [vmem:[#allocation89_spill] sm:$0xff] }
 0x1ee   : > { %v2120_v16 = vadd.f32 %v2040_v41, %v1876_v38  ;;  %v1241_v8 = vsel %vm1186_vm2, %v1238_v12, %v6778_v59  ;;  %v2714_v4 = vadd.f32 %v5713_v22, %v2675_v37  ;;  %v6782_v61 = vrot.slane %v6781_v18, 1  ;;  %v6783_v12 = vld [vmem:[#allocation87_spill] sm:$0xff]  ;;  %v6787_v41 = vld [vmem:[#allocation92_spill] sm:$0xff] }
 0x1ef   : > { %v1486_v3 = vsel %vm1431_vm3, %v1483_v15, %v6780_v0  ;;  %v1320_v45 = vadd.f32 %v1241_v8, %v1043_v51  ;;  %v2596_v23 = vsel %vm1431_vm3, %v2594_v21, %v2595_v42  ;;  %v6784_v24 = vrot.slane %v6783_v12, 2 }
 0x1f0   : > { %v2188_v25 = vadd.f32 %v2156_v13, %v2120_v16  ;;  %v1798_v50 = vsel %vm1186_vm2, %v1795_v29, %v6782_v61  ;;  %v2746_v15 = vmax.f32 %v2714_v4, 0.0  ;;  %v2157_v19 = vmul.f32 %v4407_v6, %v5065_v35  ;;  %v6789_v16 = vld [vmem:[#allocation91_spill] sm:$0xff] }
 0x1f1   : > { %v2042_v10 = vsel %vm1431_vm3, %v2039_v9, %v6784_v24  ;;  %v1565_v2 = vadd.f32 %v1486_v3, %v1320_v45  ;;  %v6786_v30 = vrot.slane %v6785_v47, 1  ;;  %v2480_v27 = vmul.f32 %v4399_v58, %v6787_v41 }
 0x1f2   : > { %v2432_v13 = vadd.f32 %v2352_v60, %v2188_v25  ;;  %v1044_v29 = vmul.f32 %v4350_v5, %v5007_v14  ;;  %v1243_v37 = vrot.slane %v6788_v32, 1  ;;  %v2778_v21 = vmin.f32 %v2746_v15, 6.0 }
 0x1f3   : > { %v2354_v38 = vsel %vm1186_vm2, %v2351_v54, %v6786_v30  ;;  %v1633_v9 = vadd.f32 %v1601_v40, %v1565_v2  ;;  %v1369_v51 = vmul.f32 %v4341_v1, %v5004_v46  ;;  %v1487_v7 = vrot.slane %v6789_v16, 2 }
 0x1f4   : > { %v2676_v59 = vadd.f32 %v2596_v23, %v2432_v13  ;;  %v2597_v8 = vrot.slane %v2480_v27, 2  ;;  %v6791_v54 = vrot.slane %v6790_v53, 1  ;;  %v1602_v3 = vmul.f32 %v4387_v39, %v5061_v55  ;;  %3739 = vmatmul.mubr.f32.gmra.mxu1 %v2778_v21 }
 0x1f5   : > { %v1877_v14 = vadd.f32 %v1798_v50, %v1633_v9  ;;  %v1488_v60 = vrot.slane %v1369_v51, 2  ;;  %v1681_v45 = vmul.f32 %v4376_v33, %v5061_v55  ;;  %v1682_v23 = vmul.f32 %v4376_v33, %v5065_v35 }
 0x1f6   : > { %v1244_v0 = vsel %vm1186_vm2, %v6791_v54, %v1243_v37  ;;  %v2715_v40 = vadd.f32 %v5713_v22, %v2676_v59  ;;  %v2598_v25 = vsel %vm1431_vm3, %v2595_v42, %v2597_v8  ;;  %v1925_v18 = vmul.f32 %v4378_v34, %v5061_v55 }
 0x1f7   : > { %v1321_v4 = vadd.f32 %v1244_v0, %v1044_v29  ;;  %v2121_v61 = vadd.f32 %v2042_v10, %v1877_v14  ;;  %v1489_v12 = vsel %vm1431_vm3, %v1487_v7, %v1488_v60  ;;  %v1799_v24 = vrot.slane %v1681_v45, 1 }
 0x1f8   : > { %v1926_v50 = vmul.f32 %v4378_v34, %v5065_v35  ;;  %v2747_v15 = vmax.f32 %v2715_v40, 0.0  ;;  %v1800_v47 = vrot.slane %v1682_v23, 1  ;;  %v2043_v30 = vrot.slane %v1925_v18, 2 }
 0x1f9   : > { %v1566_v2 = vadd.f32 %v1489_v12, %v1321_v4  ;;  %v2189_v13 = vadd.f32 %v2157_v19, %v2121_v61  ;;  %v2158_v42 = vmul.f32 %v4407_v6, %v5171_v56  ;;  %v2237_v27 = vmul.f32 %v4391_v48, %v5171_v56  ;;  %v6794_v4 = vld [vmem:[#allocation85_spill] sm:$0xff] }
 0x1fa   : > { %v2044_v41 = vrot.slane %v1926_v50, 2  ;;  %v2779_v29 = vmin.f32 %v2747_v15, 6.0  ;;  %v1801_v32 = vsel %vm1186_vm2, %v1799_v24, %v1800_v47  ;;  %v2238_v21 = vmul.f32 %v4391_v48, %v5168_v52 }
 0x1fb   : > { %v1634_v10 = vadd.f32 %v1602_v3, %v1566_v2  ;;  %v2433_v9 = vadd.f32 %v2354_v38, %v2189_v13  ;;  %v2355_v16 = vrot.slane %v2237_v27, 1  ;;  %v2481_v19 = vmul.f32 %v4399_v58, %v5171_v56  ;;  %v6792_v3 = vld [vmem:[#allocation84_spill] sm:$0xff] }
 0x1fc   : > { %v2045_v51 = vsel %vm1431_vm3, %v2043_v30, %v2044_v41  ;;  %3741 = vmatprep.mubr.f32.mxu1 %v2779_v29  ;;  %v2356_v59 = vrot.slane %v2238_v21, 1  ;;  %v2482_v8 = vmul.f32 %v4399_v58, %v5168_v52  ;;  %v1045_v53 = vmul.f32 %v4350_v5, %v5004_v46  ;;  %v6798_v2 = vld [vmem:[#allocation96_spill] sm:$0xff] }
 0x1fd   : > { %v1878_v7 = vadd.f32 %v1801_v32, %v1634_v10  ;;  %v2677_v54 = vadd.f32 %v2598_v25, %v2433_v9  ;;  %v2599_v0 = vrot.slane %v2481_v19, 2  ;;  %v6793_v14 = vrot.slane %v6792_v3, 1  ;;  %v6796_v25 = vld [vmem:[#allocation95_spill] sm:$0xff] }
 0x1fe   : > { %v6795_v45 = vrot.slane %v6794_v4, 2  ;;  %v2357_v18 = vsel %vm1186_vm2, %v2355_v16, %v2356_v59  ;;  %v2600_v61 = vrot.slane %v2482_v8, 2  ;;  %v1603_v46 = vmul.f32 %v4387_v39, %v5065_v35 }
 0x1ff   : > { %v1246_v38 = vsel %vm1186_vm2, %v1243_v37, %v6793_v14  ;;  %v2122_v23 = vadd.f32 %v2045_v51, %v1878_v7  ;;  %v2716_v24 = vadd.f32 %v5713_v22, %v2677_v54  ;;  %v6797_v50 = vrot.slane %v6796_v25, 1 }
 0x200   : > { %v1491_v40 = vsel %vm1431_vm3, %v1488_v60, %v6795_v45  ;;  %v1322_v12 = vadd.f32 %v1246_v38, %v1045_v53  ;;  %v6799_v37 = vrot.slane %v6798_v2, 2  ;;  %v2601_v60 = vsel %vm1431_vm3, %v2599_v0, %v2600_v61  ;;  %v6802_v53 = vld [vmem:[#allocation100_spill] sm:$0xff] }
 0x201   : > { %v1803_v15 = vsel %vm1186_vm2, %v1800_v47, %v6797_v50  ;;  %v2190_v13 = vadd.f32 %v2158_v42, %v2122_v23  ;;  %v2159_v29 = vmul.f32 %v4407_v6, %v5168_v52  ;;  %v2748_v10 = vmax.f32 %v2716_v24, 0.0  ;;  %v6801_v42 = vld [vmem:[#allocation99_spill] sm:$0xff] }
 0x202   : > { %v2047_v30 = vsel %vm1431_vm3, %v2044_v41, %v6799_v37  ;;  %v1567_v27 = vadd.f32 %v1491_v40, %v1322_v12  ;;  %v6800_v32 = vrot.slane %v5150_v63, 1  ;;  %v2483_v9 = vmul.f32 %v4399_v58, %v5121_v43  ;;  %v6803_v43 = vld [vmem:[#allocation98_spill] sm:$0xff] }
 0x203   : > { %v1046_v47 = vmul.f32 %v4350_v5, %v5061_v55  ;;  %v2434_v51 = vadd.f32 %v2357_v18, %v2190_v13  ;;  %v1248_v16 = vrot.slane %v6801_v42, 1  ;;  %v1372_v19 = vmul.f32 %v4341_v1, %v5065_v35 }
 0x204   : > { %v2359_v21 = vsel %vm1186_vm2, %v2356_v59, %v6800_v32  ;;  %v1635_v41 = vadd.f32 %v1603_v46, %v1567_v27  ;;  %v2780_v7 = vmin.f32 %v2748_v10, 6.0  ;;  %v2602_v8 = vrot.slane %v2483_v9, 2 }
 0x205   : > { %v1492_v54 = vrot.slane %v6802_v53, 2  ;;  %v1604_v63 = vmul.f32 %v4387_v39, %v5171_v56  ;;  %v2678_v59 = vadd.f32 %v2601_v60, %v2434_v51  ;;  %v6804_v3 = vrot.slane %v6803_v43, 1 }
 0x206   : > { %v1879_v0 = vadd.f32 %v1803_v15, %v1635_v41  ;;  %v1493_v14 = vrot.slane %v1372_v19, 2  ;;  %3742 = vmatmul.mubr.f32.gmra.mxu1 %v2780_v7  ;;  %v2603_v38 = vsel %vm1431_vm3, %v2600_v61, %v2602_v8  ;;  %v1684_v45 = vmul.f32 %v4376_v33, %v5171_v56 }
 0x207   : > { %v1249_v55 = vsel %vm1186_vm2, %v6804_v3, %v1248_v16  ;;  %v1685_v40 = vmul.f32 %v4376_v33, %v5168_v52  ;;  %v2717_v23 = vadd.f32 %v5713_v22, %v2678_v59  ;;  %v1928_v24 = vmul.f32 %v4378_v34, %v5171_v56 }
 0x208   : > { %v1323_v4 = vadd.f32 %v1249_v55, %v1046_v47  ;;  %v2123_v18 = vadd.f32 %v2047_v30, %v1879_v0  ;;  %v1494_v12 = vsel %vm1431_vm3, %v1492_v54, %v1493_v14  ;;  %v1804_v25 = vrot.slane %v1684_v45, 1  ;;  %v6805_v47 = vld [vmem:[#allocation30_spill] sm:$0xff]  ;;  %v6806_v0 = vld [vmem:[#allocation93_spill] sm:$0xff] }
 0x209   : > { %v1805_v50 = vrot.slane %v1685_v40, 1  ;;  %v1929_v61 = vmul.f32 %v4378_v34, %v5168_v52  ;;  %v2749_v15 = vmax.f32 %v2717_v23, 0.0  ;;  %v2048_v37 = vrot.slane %v1928_v24, 2  ;;  %v6808_v55 = vld [vmem:[#allocation94_spill] sm:$0xff]  ;;  %v6810_v24 = vld [vmem:[#allocation103_spill] sm:$0xff] }
 0x20a   : > { %v1568_v46 = vadd.f32 %v1494_v12, %v1323_v4  ;;  %v2191_v2 = vadd.f32 %v2159_v29, %v2123_v18  ;;  %v2160_v13 = vmul.f32 %v4407_v6, %v5366_v62  ;;  %v2240_v10 = vmul.f32 %v4391_v48, %v5366_v62 }
 0x20b   : > { %v1806_v30 = vsel %vm1186_vm2, %v1804_v25, %v1805_v50  ;;  %v2049_v27 = vrot.slane %v1929_v61, 2  ;;  %v2781_v32 = vmin.f32 %v2749_v15, 6.0  ;;  %v2241_v51 = vmul.f32 %v4391_v48, %v6805_v47 }
 0x20c   : > { %v1636_v60 = vadd.f32 %v1604_v63, %v1568_v46  ;;  %v2435_v9 = vadd.f32 %v2359_v21, %v2191_v2  ;;  %v2484_v41 = vmul.f32 %v4399_v58, %v5366_v62  ;;  %v2360_v19 = vrot.slane %v2240_v10, 1 }
 0x20d   : > { %v2050_v42 = vsel %vm1431_vm3, %v2048_v37, %v2049_v27  ;;  %v2485_v7 = vmul.f32 %v4399_v58, %v6805_v47  ;;  %3744 = vmatprep.mubr.f32.mxu1 %v2781_v32  ;;  %v2361_v53 = vrot.slane %v2241_v51, 1  ;;  %v1047_v21 = vmul.f32 %v4350_v5, %v5065_v35  ;;  %v6816_v32 = vld [vmem:[#allocation10_spill] sm:$0xff] }
 0x20e   : > { %v1880_v29 = vadd.f32 %v1806_v30, %v1636_v60  ;;  %v2679_v8 = vadd.f32 %v2603_v38, %v2435_v9  ;;  %v2604_v54 = vrot.slane %v2484_v41, 2  ;;  %v6807_v43 = vrot.slane %v6806_v0, 1  ;;  %v6814_v60 = vld [vmem:[#allocation11_spill] sm:$0xff]  ;;  %v6817_v51 = vld [vmem:[#allocation106_spill] sm:$0xff] }
 0x20f   : > { %v2605_v59 = vrot.slane %v2485_v7, 2  ;;  %v6809_v4 = vrot.slane %v6808_v55, 2  ;;  %v2362_v23 = vsel %vm1186_vm2, %v2360_v19, %v2361_v53  ;;  %v1605_v18 = vmul.f32 %v4387_v39, %v5168_v52  ;;  %v6818_v19 = vld [vmem:[#allocation107_spill] sm:$0xff] }
 0x210   : > { %v2124_v63 = vadd.f32 %v2050_v42, %v1880_v29  ;;  %v1251_v3 = vsel %vm1186_vm2, %v1248_v16, %v6807_v43  ;;  %v2718_v40 = vadd.f32 %v5713_v22, %v2679_v8  ;;  %v6811_v46 = vrot.slane %v6810_v24, 1  ;;  %v6812_v16 = vld [vmem:[#allocation104_spill] sm:$0xff] }
 0x211   : > { %v1496_v45 = vsel %vm1431_vm3, %v1493_v14, %v6809_v4  ;;  %v1324_v38 = vadd.f32 %v1251_v3, %v1047_v21  ;;  %v2606_v35 = vsel %vm1431_vm3, %v2604_v54, %v2605_v59  ;;  %v6813_v61 = vrot.slane %v6812_v16, 2  ;;  %v6819_v21 = vld [vmem:[#allocation105_spill] sm:$0xff] }
 0x212   : > { %v2192_v12 = vadd.f32 %v2160_v13, %v2124_v63  ;;  %v1808_v25 = vsel %vm1186_vm2, %v1805_v50, %v6811_v46  ;;  %v2750_v14 = vmax.f32 %v2718_v40, 0.0  ;;  %v2161_v37 = vmul.f32 %v4407_v6, %v6805_v47 }
 0x213   : > { %v2052_v15 = vsel %vm1431_vm3, %v2049_v27, %v6813_v61  ;;  %v1569_v2 = vadd.f32 %v1496_v45, %v1324_v38  ;;  %v6815_v30 = vrot.slane %v6814_v60, 1  ;;  %v2486_v9 = vmul.f32 %v4399_v58, %v6816_v32 }
 0x214   : > { %v2436_v13 = vadd.f32 %v2362_v23, %v2192_v12  ;;  %v1048_v50 = vmul.f32 %v4350_v5, %v5171_v56  ;;  %v1253_v41 = vrot.slane %v6817_v51, 1  ;;  %v2782_v29 = vmin.f32 %v2750_v14, 6.0 }
 0x215   : > { %v2364_v10 = vsel %vm1186_vm2, %v2361_v53, %v6815_v30  ;;  %v1637_v27 = vadd.f32 %v1605_v18, %v1569_v2  ;;  %v1375_v42 = vmul.f32 %v4341_v1, %v5168_v52  ;;  %v1497_v7 = vrot.slane %v6818_v19, 2 }
 0x216   : > { %v2680_v8 = vadd.f32 %v2606_v35, %v2436_v13  ;;  %v2607_v54 = vrot.slane %v2486_v9, 2  ;;  %v6820_v53 = vrot.slane %v6819_v21, 1  ;;  %v1606_v0 = vmul.f32 %v4387_v39, %v5366_v62  ;;  %3745 = vmatmul.mubr.f32.gmra.mxu1 %v2782_v29  ;;  %v6823_v21 = vld [vmem:[#allocation102_spill] sm:$0xff] }
 0x217   : > { %v1881_v56 = vadd.f32 %v1808_v25, %v1637_v27  ;;  %v1498_v3 = vrot.slane %v1375_v42, 2  ;;  %v1687_v55 = vmul.f32 %v4376_v33, %v5366_v62  ;;  %v1688_v40 = vmul.f32 %v4376_v33, %v6805_v47 }
 0x218   : > { %v1254_v63 = vsel %vm1186_vm2, %v6820_v53, %v1253_v41  ;;  %v2719_v4 = vadd.f32 %v5713_v22, %v2680_v8  ;;  %v2608_v45 = vsel %vm1431_vm3, %v2605_v59, %v2607_v54  ;;  %v1931_v23 = vmul.f32 %v4378_v34, %v5366_v62  ;;  %v6821_v8 = vld [vmem:[#allocation101_spill] sm:$0xff] }
 0x219   : > { %v1325_v43 = vadd.f32 %v1254_v63, %v1048_v50  ;;  %v2125_v38 = vadd.f32 %v2052_v15, %v1881_v56  ;;  %v1499_v18 = vsel %vm1431_vm3, %v1497_v7, %v1498_v3  ;;  %v1809_v12 = vrot.slane %v1687_v55, 1 }
 0x21a   : > { %v1932_v35 = vmul.f32 %v4378_v34, %v6805_v47  ;;  %v2751_v24 = vmax.f32 %v2719_v4, 0.0  ;;  %v1810_v25 = vrot.slane %v1688_v40, 1  ;;  %v2053_v16 = vrot.slane %v1931_v23, 2 }
 0x21b   : > { %v1570_v46 = vadd.f32 %v1499_v18, %v1325_v43  ;;  %v2193_v61 = vadd.f32 %v2161_v37, %v2125_v38  ;;  %v2162_v59 = vmul.f32 %v4407_v6, %v5500_v20  ;;  %v2243_v2 = vmul.f32 %v4391_v48, %v5500_v20  ;;  %v6827_v38 = vld [vmem:[#allocation13_spill] sm:$0xff] }
 0x21c   : > { %v2054_v14 = vrot.slane %v1932_v35, 2  ;;  %v2783_v60 = vmin.f32 %v2751_v24, 6.0  ;;  %v1811_v30 = vsel %vm1186_vm2, %v1809_v12, %v1810_v25  ;;  %v2244_v13 = vmul.f32 %v4391_v48, %v5523_v31 }
 0x21d   : > { %v1638_v15 = vadd.f32 %v1606_v0, %v1570_v46  ;;  %v2437_v32 = vadd.f32 %v2364_v10, %v2193_v61  ;;  %v2365_v50 = vrot.slane %v2243_v2, 1  ;;  %v2487_v37 = vmul.f32 %v4399_v58, %v5500_v20  ;;  %v6830_v2 = vld [vmem:[#allocation17_spill] sm:$0xff] }
 0x21e   : > { %v2055_v9 = vsel %vm1431_vm3, %v2053_v16, %v2054_v14  ;;  %3747 = vmatprep.mubr.f32.mxu1 %v2783_v60  ;;  %v2366_v29 = vrot.slane %v2244_v13, 1  ;;  %v2488_v27 = vmul.f32 %v4399_v58, %v5523_v31  ;;  %v1049_v42 = vmul.f32 %v4350_v5, %v5168_v52 }
 0x21f   : > { %v1882_v51 = vadd.f32 %v1811_v30, %v1638_v15  ;;  %v2681_v19 = vadd.f32 %v2608_v45, %v2437_v32  ;;  %v2609_v7 = vrot.slane %v2487_v37, 2  ;;  %v6822_v54 = vrot.slane %v6821_v8, 1  ;;  %v6825_v45 = vld [vmem:[#allocation12_spill] sm:$0xff] }
 0x220   : > { %v6824_v53 = vrot.slane %v6823_v21, 2  ;;  %v2367_v56 = vsel %vm1186_vm2, %v2365_v50, %v2366_v29  ;;  %v2610_v43 = vrot.slane %v2488_v27, 2  ;;  %v1607_v52 = vmul.f32 %v4387_v39, %v6805_v47  ;;  %v6832_v50 = vld [vmem:[#allocation9_spill] sm:$0xff] }
 0x221   : > { %v1256_v10 = vsel %vm1186_vm2, %v1253_v41, %v6822_v54  ;;  %v2126_v0 = vadd.f32 %v2055_v9, %v1882_v51  ;;  %v2720_v4 = vadd.f32 %v5713_v22, %v2681_v19  ;;  %v6826_v40 = vrot.slane %v6825_v45, 1  ;;  %v6833_v27 = vld [vmem:[#allocation29_spill] sm:$0xff] }
 0x222   : > { %v1501_v63 = vsel %vm1431_vm3, %v1498_v3, %v6824_v53  ;;  %v1326_v55 = vadd.f32 %v1256_v10, %v1049_v42  ;;  %v6828_v41 = vrot.slane %v6827_v38, 2  ;;  %v2611_v3 = vsel %vm1431_vm3, %v2609_v7, %v2610_v43 }
 0x223   : > { %v1813_v23 = vsel %vm1186_vm2, %v1810_v25, %v6826_v40  ;;  %v2194_v12 = vadd.f32 %v2162_v59, %v2126_v0  ;;  %v2163_v24 = vmul.f32 %v4407_v6, %v5523_v31  ;;  %v2752_v46 = vmax.f32 %v2720_v4, 0.0  ;;  %v6831_v59 = vld [vmem:[#allocation8_spill] sm:$0xff] }
 0x224   : > { %v2057_v18 = vsel %vm1431_vm3, %v2054_v14, %v6828_v41  ;;  %v1571_v35 = vadd.f32 %v1501_v63, %v1326_v55  ;;  %v6829_v16 = vrot.slane %v5431_v44, 1  ;;  %v2489_v60 = vmul.f32 %v4399_v58, %v6830_v2 }
 0x225   : > { %v1050_v25 = vmul.f32 %v4350_v5, %v5366_v62  ;;  %v2438_v15 = vadd.f32 %v2367_v56, %v2194_v12  ;;  %v1258_v30 = vrot.slane %v6831_v59, 1  ;;  %v1378_v13 = vmul.f32 %v4341_v1, %v6805_v47 }
 0x226   : > { %v2369_v61 = vsel %vm1186_vm2, %v2366_v29, %v6829_v16  ;;  %v1639_v14 = vadd.f32 %v1607_v52, %v1571_v35  ;;  %v2784_v32 = vmin.f32 %v2752_v46, 6.0  ;;  %v2612_v9 = vrot.slane %v2489_v60, 2 }
 0x227   : > { %v1502_v37 = vrot.slane %v6832_v50, 2  ;;  %v1608_v44 = vmul.f32 %v4387_v39, %v5500_v20  ;;  %v2682_v51 = vadd.f32 %v2611_v3, %v2438_v15  ;;  %v6834_v42 = vrot.slane %v6833_v27, 1  ;;  %v6143_v3 = vpop.f32.mrf.mxu1 }
 0x228   : > { %v1883_v29 = vadd.f32 %v1813_v23, %v1639_v14  ;;  %v1503_v19 = vrot.slane %v1378_v13, 2  ;;  %3748 = vmatmul.mubr.f32.gmra.mxu1 %v2784_v32  ;;  %v2613_v7 = vsel %vm1431_vm3, %v2610_v43, %v2612_v9  ;;  %v1690_v1 = vmul.f32 %v4376_v33, %v5500_v20  ;;  %v6152_v14 = vpop.f32.mrf.mxu0  ;;  %v6837_v9 = vld [vmem:[#allocation19_spill] sm:$0xff] }
 0x229   : > { %v1259_v62 = vsel %vm1186_vm2, %v6834_v42, %v1258_v30  ;;  %v1691_v54 = vmul.f32 %v4376_v33, %v5523_v31  ;;  %v2721_v10 = vadd.f32 %v5713_v22, %v2682_v51  ;;  %v1934_v63 = vmul.f32 %v4378_v34, %v5500_v20  ;;  %v2880_v27 = vpop.f32.mrf.mxu1 }
 0x22a   : > { %v1327_v8 = vadd.f32 %v1259_v62, %v1050_v25  ;;  %v2127_v21 = vadd.f32 %v2057_v18, %v1883_v29  ;;  %v1504_v53 = vsel %vm1431_vm3, %v1502_v37, %v1503_v19  ;;  %v1814_v56 = vrot.slane %v1690_v1, 1  ;;  %v6835_v25 = vld [vmem:[#allocation14_spill] sm:$0xff] }
 0x22b   : > { %v1815_v55 = vrot.slane %v1691_v54, 1  ;;  %v1935_v43 = vmul.f32 %v4378_v34, %v5523_v31  ;;  %v2753_v4 = vmax.f32 %v2721_v10, 0.0  ;;  %v2058_v45 = vrot.slane %v1934_v63, 2  ;;  %v6845_v63 = vld [vmem:[#allocation16_spill] sm:$0xff] }
 0x22c   : > { %v1572_v0 = vadd.f32 %v1504_v53, %v1327_v8  ;;  %v2195_v52 = vadd.f32 %v2163_v24, %v2127_v21  ;;  %v2164_v33 = vmul.f32 %v4407_v6, %v5577_v26  ;;  %v2247_v41 = vmul.f32 %v4391_v48, %v5574_v49 }
 0x22d   : > { %v1816_v23 = vsel %vm1186_vm2, %v1814_v56, %v1815_v55  ;;  %v2059_v38 = vrot.slane %v1935_v43, 2  ;;  %v2785_v20 = vmin.f32 %v2753_v4, 6.0  ;;  %v2490_v12 = vmul.f32 %v4399_v58, %v5577_v26  ;;  %v3106_v43 = vpop.f32.mrf.mxu0 }
 0x22e   : > { %v1640_v40 = vadd.f32 %v1608_v44, %v1572_v0  ;;  %v2439_v18 = vadd.f32 %v2369_v61, %v2195_v52  ;;  %v6141_v34 = vmul.f32 %v4399_v58, %v5574_v49  ;;  %v2371_v46 = vrot.slane %v2247_v41, 1  ;;  %v6847_v52 = vld [vmem:[#allocation26_spill] sm:$0xff] }
 0x22f   : > { %v2060_v24 = vsel %vm1431_vm3, %v2058_v45, %v2059_v38  ;;  %v1051_v16 = vmul.f32 %v4350_v5, %v6805_v47  ;;  %3750 = vmatprep.mubr.f32.mxu1 %v2785_v20  ;;  %v2614_v60 = vrot.slane %v2490_v12, 2  ;;  %v6836_v26 = vrot.slane %v6835_v25, 1  ;;  %v6851_v20 = vld [vmem:[#allocation5_spill] sm:$0xff]  ;;  %v3766_v25 = vpop.f32.mrf.mxu0 }
 0x230   : > { %v1884_v35 = vadd.f32 %v1816_v23, %v1640_v40  ;;  %v2683_v2 = vadd.f32 %v2613_v7, %v2439_v18  ;;  %v2615_v61 = vrot.slane %v6141_v34, 2  ;;  %v2064_v59 = vrot.slane %v5631_v28, 2  ;;  %v6840_v7 = vld [vmem:[#allocation27_spill] sm:$0xff]  ;;  %v6850_v23 = vld [vmem:[#allocation6_spill] sm:$0xff] }
 0x231   : > { %v1261_v15 = vsel %vm1186_vm2, %v1258_v30, %v6836_v26  ;;  %v6838_v50 = vrot.slane %v6837_v9, 2  ;;  %v6839_v44 = vrot.slane %v5621_v11, 1  ;;  %v1609_v30 = vmul.f32 %v4387_v39, %v5523_v31 }
 0x232   : > { %v2128_v13 = vadd.f32 %v2060_v24, %v1884_v35  ;;  %v1328_v32 = vadd.f32 %v1261_v15, %v1051_v16  ;;  %v2722_v47 = vadd.f32 %v5713_v22, %v2683_v2  ;;  %v2616_v29 = vsel %vm1431_vm3, %v2614_v60, %v2615_v61 }
 0x233   : > { %v1506_v37 = vsel %vm1431_vm3, %v1503_v19, %v6838_v50  ;;  %v2372_v51 = vsel %vm1186_vm2, %v6839_v44, %v2371_v46  ;;  %v6841_v8 = vrot.slane %v6840_v7, 1  ;;  %v6842_v19 = vrot.slane %v5427_v57, 2 }
 0x234   : > { %v2196_v42 = vadd.f32 %v2164_v33, %v2128_v13  ;;  %v1573_v62 = vadd.f32 %v1506_v37, %v1328_v32  ;;  %v2754_v10 = vmax.f32 %v2722_v47, 0.0  ;;  %v2165_v11 = vmul.f32 %v4407_v6, %v5574_v49  ;;  %v6848_v33 = vld [vmem:[#allocation25_spill] sm:$0xff]  ;;  %v6852_v47 = vld [vmem:[#allocation18_spill] sm:$0xff] }
 0x235   : > { %v1818_v1 = vsel %vm1186_vm2, %v1815_v55, %v6841_v8  ;;  %v2062_v54 = vsel %vm1431_vm3, %v2059_v38, %v6842_v19  ;;  %v6843_v21 = vrot.slane %v5583_v36, 1  ;;  %v6844_v39 = vrot.slane %v5612_v17, 1  ;;  %v3716_v55 = vpop.f32.mrf.mxu1 }
 0x236   : > { %v6846_v0 = vrot.slane %v6845_v63, 1  ;;  %v2440_v4 = vadd.f32 %v2372_v51, %v2196_v42  ;;  %v1641_v57 = vadd.f32 %v1609_v30, %v1573_v62  ;;  %v6849_v49 = vrot.slane %v6848_v33, 2  ;;  %v6854_v51 = vld [vmem:[#allocation21_spill] sm:$0xff]  ;;  %v6858_v42 = vld [vmem:[#allocation22_spill] sm:$0xff] }
 0x237   : > { %v2374_v53 = vsel %vm1186_vm2, %v2371_v46, %v6843_v21  ;;  %v2786_v40 = vmin.f32 %v2754_v10, 6.0  ;;  %v2166_v38 = vmul.f32 %v4407_v6, %v6850_v23  ;;  %v2249_v41 = vmul.f32 %v4391_v48, %v6850_v23  ;;  %v2890_v26 = vpop.f32.mrf.mxu1  ;;  %v6860_v10 = vld [vmem:[#allocation45_spill] sm:$0xff] }
 0x238   : > { %v1821_v56 = vsel %vm1186_vm2, %v6846_v0, %v6844_v39  ;;  %v2065_v36 = vsel %vm1431_vm3, %v6849_v49, %v2064_v59  ;;  %v6193_v18 = vmul.f32 %v4391_v48, %v6851_v20  ;;  %v2684_v12 = vadd.f32 %v2616_v29, %v2440_v4  ;;  %v6861_v39 = vld [vmem:[#allocation46_spill] sm:$0xff]  ;;  %v6863_v4 = vld [vmem:[#allocation28_spill] sm:$0xff] }
 0x239   : > { %v1886_v45 = vadd.f32 %v1821_v56, %v6847_v52  ;;  %v1885_v34 = vadd.f32 %v1818_v1, %v1641_v57  ;;  %v2493_v24 = vmul.f32 %v4399_v58, %v6850_v23  ;;  %3751 = vmatmul.mubr.f32.gmra.mxu1 %v2786_v40  ;;  %v2375_v46 = vrot.slane %v2249_v41, 1  ;;  %v3719_v33 = vpop.f32.mrf.mxu1 }
 0x23a   : > { %v2376_v16 = vrot.slane %v6193_v18, 1  ;;  %v6200_v2 = vmul.f32 %v4399_v58, %v6851_v20  ;;  %v1053_v60 = vmul.f32 %v4350_v5, %v5523_v31  ;;  %v2723_v15 = vadd.f32 %v5713_v22, %v2684_v12  ;;  %v6856_v5 = vld [vmem:[#allocation20_spill] sm:$0xff] }
 0x23b   : > { %v2130_v35 = vadd.f32 %v2065_v36, %v1886_v45  ;;  %v2129_v13 = vadd.f32 %v2062_v54, %v1885_v34  ;;  %v2619_v9 = vrot.slane %v2493_v24, 2  ;;  %v6853_v44 = vrot.slane %v6852_v47, 1  ;;  %v6221_v54 = vld [vmem:[%s6380_s6] ss:$0 sm:$0xff]  ;;  %v3116_v45 = vpop.f32.mrf.mxu0 }
 0x23c   : > { %v2377_v50 = vsel %vm1186_vm2, %v2375_v46, %v2376_v16  ;;  %v2620_v37 = vrot.slane %v6200_v2, 2  ;;  %v6855_v29 = vrot.slane %v6854_v51, 1  ;;  %v6857_v31 = vrot.slane %v6856_v5, 2  ;;  %v3872_v34 = vld [vmem:[%s6378_s4] ss:$0 sm:$0xff] }
 0x23d   : > { %v2198_v32 = vadd.f32 %v2166_v38, %v2130_v35  ;;  %v6859_v62 = vrot.slane %v6858_v42, 2  ;;  %v2755_v7 = vmax.f32 %v2723_v15, 0.0  ;;  %v2197_v8 = vadd.f32 %v2165_v11, %v2129_v13  ;;  %v6866_v38 = vld [vmem:[#allocation7_spill] sm:$0xff] }
 0x23e   : > { %v1266_v30 = vsel %vm1186_vm2, %v6855_v29, %v6853_v44  ;;  %v2066_v21 = vrot.slane %v6860_v10, 2  ;;  %v6862_v63 = vrot.slane %v6861_v39, 2  ;;  %v2621_v56 = vsel %vm1431_vm3, %v2619_v9, %v2620_v37  ;;  %v6867_v35 = vld [vmem:[#allocation15_spill] sm:$0xff] }
 0x23f   : > { %v1511_v22 = vsel %vm1431_vm3, %v6859_v62, %v6857_v31  ;;  %v2442_v1 = vadd.f32 %v2377_v50, %v2198_v32  ;;  %v1330_v19 = vadd.f32 %v1266_v30, %v1053_v60  ;;  %v6864_v57 = vrot.slane %v6863_v4, 1  ;;  %v2900_v60 = vpop.f32.mrf.mxu1 }
 0x240   : > { %v2618_v0 = vsel %vm1431_vm3, %v2615_v61, %v6862_v63  ;;  %v6865_v52 = vrot.slane %v5612_v17, 1  ;;  %v2787_v49 = vmin.f32 %v2755_v7, 6.0  ;;  %v2441_v36 = vadd.f32 %v2374_v53, %v2197_v8 }
 0x241   : > { %v2686_v40 = vadd.f32 %v2621_v56, %v2442_v1  ;;  %v1575_v23 = vadd.f32 %v1511_v22, %v1330_v19  ;;  %v2251_v41 = vmul.f32 %v4391_v48, %v6866_v38  ;;  %v2495_v61 = vmul.f32 %v4399_v58, %v6866_v38 }
 0x242   : > { %v1823_v11 = vsel %vm1186_vm2, %v6865_v52, %v6864_v57  ;;  %v2886_v18 = vadd.f32 %v6143_v3, %v6221_v54  ;;  %v2881_v17 = vadd.f32 %v6221_v54, %v2880_v27  ;;  %3753 = vmatprep.mubr.f32.mxu1 %v2787_v49  ;;  %v2685_v12 = vadd.f32 %v2618_v0, %v2441_v36  ;;  %v3769_v27 = vpop.f32.mrf.mxu0 }
 0x243   : > { %v2725_v53 = vadd.f32 %v3872_v34, %v2686_v40  ;;  %v1643_v24 = vadd.f32 %v6867_v35, %v1575_v23  ;;  %v2896_v46 = vadd.f32 %v3716_v55, %v6221_v54  ;;  %v2067_v48 = vsel %vm1431_vm3, %v2064_v59, %v2066_v21 }
 0x244   : > { %v2378_v58 = vrot.slane %v2251_v41, 1  ;;  %v3266_v3 = vadd.f32 %v6152_v14, %v2886_v18  ;;  %v3265_v2 = vadd.f32 %v3106_v43, %v2881_v17  ;;  %v2724_v15 = vadd.f32 %v3872_v34, %v2685_v12  ;;  %v3126_v44 = vpop.f32.mrf.mxu0 }
 0x245   : > { %v1887_v13 = vadd.f32 %v1823_v11, %v1643_v24  ;;  %v2167_v32 = vmul.f32 %v4407_v6, %v6851_v20  ;;  %v3268_v9 = vadd.f32 %v3766_v25, %v2896_v46  ;;  %v2757_v50 = vmax.f32 %v2725_v53, 0.0 }
 0x246   : > { %v2622_v47 = vrot.slane %v2495_v61, 2  ;;  %3298 = vst [vmem:[%s6253_s22 + $0x8] sm:$0xff] %v3266_v3  ;;  %3297 = vst [vmem:[%s6253_s22] sm:$0xff] %v3265_v2  ;;  %v2891_v28 = vadd.f32 %v6221_v54, %v2890_v26  ;;  %v2906_v14 = vadd.f32 %v3719_v33, %v6221_v54  ;;  %v2756_v59 = vmax.f32 %v2724_v15, 0.0  ;;  %v3772_v22 = vpop.f32.mrf.mxu0 }
 0x247   : > { %v2131_v43 = vadd.f32 %v2067_v48, %v1887_v13  ;;  %3300 = vst [vmem:[%s6253_s22 + $0x18] sm:$0xff] %v3268_v9  ;;  %v2901_v6 = vadd.f32 %v6221_v54, %v2900_v60  ;;  %v2379_v55 = vsel %vm1186_vm2, %v2376_v16, %v2378_v58  ;;  %v2789_v5 = vmin.f32 %v2757_v50, 6.0  ;;  %v3722_v16 = vpop.f32.mrf.mxu1 }
 0x248   : > { %v3267_v20 = vadd.f32 %v3116_v45, %v2891_v28  ;;  %v3270_v25 = vadd.f32 %v3769_v27, %v2906_v14  ;;  %v2788_v51 = vmin.f32 %v2756_v59, 6.0  ;;  %v2623_v26 = vsel %vm1431_vm3, %v2620_v37, %v2622_v47  ;;  %v3136_v21 = vpop.f32.mrf.mxu0 }
 0x249   : > { %v2199_v29 = vadd.f32 %v2167_v32, %v2131_v43  ;;  %v3269_v30 = vadd.f32 %v3126_v44, %v2901_v6  ;;  %v2916_v8 = vadd.f32 %v3722_v16, %v6221_v54  ;;  %v2910_v1 = vpop.f32.mrf.mxu1 }
 0x24a   : > { %3299 = vst [vmem:[%s6253_s22 + $0x10] sm:$0xff] %v3267_v20  ;;  %3302 = vst [vmem:[%s6253_s22 + $0x28] sm:$0xff] %v3270_v25  ;;  %3754 = vmatmul.mubr.f32.gmra.mxu1 %v2788_v51  ;;  %v2911_v37 = vadd.f32 %v6221_v54, %v2910_v1  ;;  %v3775_v0 = vpop.f32.mrf.mxu0 }
 0x24b   : > { %v2443_v31 = vadd.f32 %v2379_v55, %v2199_v29  ;;  %3301 = vst [vmem:[%s6253_s22 + $0x20] sm:$0xff] %v3269_v30  ;;  %3756 = vmatprep.mubr.f32.mxu1 %v2789_v5  ;;  %v3272_v10 = vadd.f32 %v3772_v22, %v2916_v8 }
 0x24c   : > { %v3271_v39 = vadd.f32 %v3136_v21, %v2911_v37  ;;  %v3146_v11 = vpop.f32.mrf.mxu0 }
 0x24d   : > { %v2687_v42 = vadd.f32 %v2623_v26, %v2443_v31  ;;  %3304 = vst [vmem:[%s6253_s22 + $0x38] sm:$0xff] %v3272_v10 }
 0x24e   : > { %3303 = vst [vmem:[%s6253_s22 + $0x30] sm:$0xff] %v3271_v39  ;;  %v3778_v49 = vpop.f32.mrf.mxu0 }
 0x24f   : > { %v2726_v62 = vadd.f32 %v3872_v34, %v2687_v42 }
 0x250   : > { %v3156_v41 = vpop.f32.mrf.mxu0 }
 0x251   : > { %v2758_v7 = vmax.f32 %v2726_v62, 0.0 }
 0x252   : > { %v3781_v17 = vpop.f32.mrf.mxu0 }
 0x253   : > { %v2790_v19 = vmin.f32 %v2758_v7, 6.0 }
 0x254   : > { %v3166_v24 = vpop.f32.mrf.mxu0 }
 0x255   : > { %3757 = vmatmul.mubr.f32.gmra.mxu1 %v2790_v19  ;;  %v3725_v63 = vpop.f32.mrf.mxu1 }
 0x256   : > { %v2926_v56 = vadd.f32 %v3725_v63, %v6221_v54  ;;  %v3784_v58 = vpop.f32.mrf.mxu0 }
 0x257   : > { %v2920_v4 = vpop.f32.mrf.mxu1 }
 0x258   : > { %v3274_v57 = vadd.f32 %v3775_v0, %v2926_v56  ;;  %v2921_v52 = vadd.f32 %v6221_v54, %v2920_v4  ;;  %v3176_v15 = vpop.f32.mrf.mxu0 }
 0x25a   : > { %3306 = vst [vmem:[%s6253_s22 + $0x48] sm:$0xff] %v3274_v57  ;;  %v3273_v45 = vadd.f32 %v3146_v11, %v2921_v52  ;;  %v3787_v9 = vpop.f32.mrf.mxu0 }
 0x25c   : > { %3305 = vst [vmem:[%s6253_s22 + $0x40] sm:$0xff] %v3273_v45  ;;  %v3186_v59 = vpop.f32.mrf.mxu0 }
 0x25e   : > { %v3790_v55 = vpop.f32.mrf.mxu0 }
 0x260   : > { %v3196_v29 = vpop.f32.mrf.mxu0 }
 0x262   : > { %v3793_v26 = vpop.f32.mrf.mxu0 }
 0x264   : > { %v3206_v22 = vpop.f32.mrf.mxu0 }
 0x266   : > { %v3796_v1 = vpop.f32.mrf.mxu0 }
 0x267   : > { %v3728_v33 = vpop.f32.mrf.mxu1 }
 0x268   : > { %v2936_v36 = vadd.f32 %v3728_v33, %v6221_v54  ;;  %v3216_v39 = vpop.f32.mrf.mxu0 }
 0x269   : > { %v2930_v40 = vpop.f32.mrf.mxu1 }
 0x26a   : > { %v3276_v23 = vadd.f32 %v3778_v49, %v2936_v36  ;;  %v2931_v38 = vadd.f32 %v6221_v54, %v2930_v40  ;;  %v3799_v56 = vpop.f32.mrf.mxu0 }
 0x26c   : > { %3308 = vst [vmem:[%s6253_s22 + $0x58] sm:$0xff] %v3276_v23  ;;  %v3275_v61 = vadd.f32 %v3156_v41, %v2931_v38  ;;  %v3226_v45 = vpop.f32.mrf.mxu0 }
 0x26e   : > { %3307 = vst [vmem:[%s6253_s22 + $0x50] sm:$0xff] %v3275_v61  ;;  %v3802_v36 = vpop.f32.mrf.mxu0 }
 0x270   : > { %v3236_v61 = vpop.f32.mrf.mxu0 }
 0x282   : > { %v3731_v18 = vpop.f32.mrf.mxu1 }
 0x283   : > { %v2946_v12 = vadd.f32 %v3731_v18, %v6221_v54 }
 0x284   : > { %v2940_v34 = vpop.f32.mrf.mxu1 }
 0x285   : > { %v3278_v53 = vadd.f32 %v3781_v17, %v2946_v12  ;;  %v2941_v35 = vadd.f32 %v6221_v54, %v2940_v34  ;;  %v3805_v12 = vpop.f32.mrf.mxu0 }
 0x287   : > { %3310 = vst [vmem:[%s6253_s22 + $0x68] sm:$0xff] %v3278_v53  ;;  %v3277_v46 = vadd.f32 %v3166_v24, %v2941_v35 }
 0x289   : > { %3309 = vst [vmem:[%s6253_s22 + $0x60] sm:$0xff] %v3277_v46  ;;  %v3246_v46 = vpop.f32.mrf.mxu0 }
 0x294   : > { %v3734_v48 = vpop.f32.mrf.mxu1 }
 0x295   : > { %v2956_v3 = vadd.f32 %v3734_v48, %v6221_v54 }
 0x296   : > { %v2950_v2 = vpop.f32.mrf.mxu1 }
 0x297   : > { %v3280_v27 = vadd.f32 %v3784_v58, %v2956_v3  ;;  %v2951_v60 = vadd.f32 %v6221_v54, %v2950_v2  ;;  %v3808_v3 = vpop.f32.mrf.mxu0 }
 0x299   : > { %3312 = vst [vmem:[%s6253_s22 + $0x78] sm:$0xff] %v3280_v27  ;;  %v3279_v13 = vadd.f32 %v3176_v15, %v2951_v60 }
 0x29b   : > { %3311 = vst [vmem:[%s6253_s22 + $0x70] sm:$0xff] %v3279_v13  ;;  %v3256_v13 = vpop.f32.mrf.mxu0 }
 0x2a4   : > { %v3737_v32 = vpop.f32.mrf.mxu1 }
 0x2a5   : > { %v2966_v50 = vadd.f32 %v3737_v32, %v6221_v54 }
 0x2a6   : > { %v2960_v47 = vpop.f32.mrf.mxu1 }
 0x2a7   : > { %v3282_v28 = vadd.f32 %v3787_v9, %v2966_v50  ;;  %v2961_v14 = vadd.f32 %v6221_v54, %v2960_v47 }
 0x2a9   : > { %3314 = vst [vmem:[%s6253_s22 + $0x88] sm:$0xff] %v3282_v28  ;;  %v3281_v43 = vadd.f32 %v3186_v59, %v2961_v14 }
 0x2ab   : > { %3313 = vst [vmem:[%s6253_s22 + $0x80] sm:$0xff] %v3281_v43 }
 0x2b4   : > { %v3740_v6 = vpop.f32.mrf.mxu1 }
 0x2b5   : > { %v2976_v20 = vadd.f32 %v3740_v6, %v6221_v54 }
 0x2b6   : > { %v2970_v25 = vpop.f32.mrf.mxu1 }
 0x2b7   : > { %v3284_v44 = vadd.f32 %v3790_v55, %v2976_v20  ;;  %v2971_v51 = vadd.f32 %v6221_v54, %v2970_v25 }
 0x2b9   : > { %3316 = vst [vmem:[%s6253_s22 + $0x98] sm:$0xff] %v3284_v44  ;;  %v3283_v30 = vadd.f32 %v3196_v29, %v2971_v51 }
 0x2bb   : > { %3315 = vst [vmem:[%s6253_s22 + $0x90] sm:$0xff] %v3283_v30 }
 0x2c6   : > { %v3743_v5 = vpop.f32.mrf.mxu1 }
 0x2c7   : > { %v2986_v31 = vadd.f32 %v3743_v5, %v6221_v54 }
 0x2c8   : > { %v2980_v42 = vpop.f32.mrf.mxu1 }
 0x2c9   : > { %v3286_v62 = vadd.f32 %v3793_v26, %v2986_v31  ;;  %v2981_v16 = vadd.f32 %v6221_v54, %v2980_v42 }
 0x2cb   : > { %3318 = vst [vmem:[%s6253_s22 + $0xa8] sm:$0xff] %v3286_v62  ;;  %v3285_v7 = vadd.f32 %v3206_v22, %v2981_v16 }
 0x2cd   : > { %3317 = vst [vmem:[%s6253_s22 + $0xa0] sm:$0xff] %v3285_v7 }
 0x2d6   : > { %v3746_v8 = vpop.f32.mrf.mxu1 }
 0x2d7   : > { %v2996_v19 = vadd.f32 %v3746_v8, %v6221_v54 }
 0x2d8   : > { %v2990_v10 = vpop.f32.mrf.mxu1 }
 0x2d9   : > { %v3288_v37 = vadd.f32 %v3796_v1, %v2996_v19  ;;  %v2991_v21 = vadd.f32 %v6221_v54, %v2990_v10 }
 0x2db   : > { %3320 = vst [vmem:[%s6253_s22 + $0xb8] sm:$0xff] %v3288_v37  ;;  %v3287_v63 = vadd.f32 %v3216_v39, %v2991_v21 }
 0x2dd   : > { %3319 = vst [vmem:[%s6253_s22 + $0xb0] sm:$0xff] %v3287_v63 }
 0x2e8   : > { %v3749_v0 = vpop.f32.mrf.mxu1 }
 0x2e9   : > { %v3006_v4 = vadd.f32 %v3749_v0, %v6221_v54 }
 0x2ea   : > { %v3000_v57 = vpop.f32.mrf.mxu1 }
 0x2eb   : > { %v3290_v52 = vadd.f32 %v3799_v56, %v3006_v4  ;;  %v3001_v11 = vadd.f32 %v6221_v54, %v3000_v57 }
 0x2ed   : > { %3322 = vst [vmem:[%s6253_s22 + $0xc8] sm:$0xff] %v3290_v52  ;;  %v3289_v33 = vadd.f32 %v3226_v45, %v3001_v11 }
 0x2ef   : > { %3321 = vst [vmem:[%s6253_s22 + $0xc0] sm:$0xff] %v3289_v33 }
 0x2f9   : > { %v3752_v49 = vpop.f32.mrf.mxu1 }
 0x2fa   : > { %v3016_v40 = vadd.f32 %v3752_v49, %v6221_v54 }
 0x2fb   : > { %v3010_v23 = vpop.f32.mrf.mxu1 }
 0x2fc   : > { %v3292_v38 = vadd.f32 %v3802_v36, %v3016_v40  ;;  %v3011_v41 = vadd.f32 %v6221_v54, %v3010_v23 }
 0x2fe   : > { %3324 = vst [vmem:[%s6253_s22 + $0xd8] sm:$0xff] %v3292_v38  ;;  %v3291_v18 = vadd.f32 %v3236_v61, %v3011_v41 }
 0x300   : > { %3323 = vst [vmem:[%s6253_s22 + $0xd0] sm:$0xff] %v3291_v18 }
 0x30a   : > { %v3755_v17 = vpop.f32.mrf.mxu1 }
 0x30b   : > { %v3026_v34 = vadd.f32 %v3755_v17, %v6221_v54 }
 0x30c   : > { %v3020_v53 = vpop.f32.mrf.mxu1 }
 0x30d   : > { %v3294_v35 = vadd.f32 %v3805_v12, %v3026_v34  ;;  %v3021_v24 = vadd.f32 %v6221_v54, %v3020_v53 }
 0x30f   : > { %3326 = vst [vmem:[%s6253_s22 + $0xe8] sm:$0xff] %v3294_v35  ;;  %v3293_v48 = vadd.f32 %v3246_v46, %v3021_v24 }
 0x311   : > { %3325 = vst [vmem:[%s6253_s22 + $0xe0] sm:$0xff] %v3293_v48 }
 0x315   : > { %v3758_v58 = vpop.f32.mrf.mxu1 }
 0x316   : > { %v3036_v2 = vadd.f32 %v3758_v58, %v6221_v54 }
 0x317   : > { %v3030_v27 = vpop.f32.mrf.mxu1 }
 0x318   : > { %v3296_v60 = vadd.f32 %v3808_v3, %v3036_v2  ;;  %v3031_v15 = vadd.f32 %v6221_v54, %v3030_v27 }
 0x31a   : > { %3328 = vst [vmem:[%s6253_s22 + $0xf8] sm:$0xff] %v3296_v60  ;;  %v3295_v32 = vadd.f32 %v3256_v13, %v3031_v15 }
 0x31c   : > { %3327 = vst [vmem:[%s6253_s22 + $0xf0] sm:$0xff] %v3295_v32 }
 0x31d   : > { %3886 = shalt.err (!%p3883_p5)
}
 0x31e   : > { %s3887_s12 = scalar_lea.hbm %s6321_s11, 4096  ;;  %s3891_s23 = scalar_lea.hbm %s6382_s8, 8192 }
 0x31f   : > { %p3888_p6 = scmp.ne.s32.totalorder %s6321_s11, %s3887_s12  ;;  %p3892_p10 = scmp.lt.s32.totalorder %s6321_s11, %s6382_s8 }
 0x320   : > { %p3893_p11 = scmp.lt.s32.totalorder %s3891_s23, %s3887_s12 }
 0x321   : > { %p3889_p7 = pnand %p3888_p6, %p4040_p4 }
 0x322   : > { %p3894_p12 = por %p3893_p11, %p3892_p10 }
 0x323   : > { %p3890_p9 = pneg %p3889_p7 }
 0x325   : > { %p3895_p13 = pnand %p3894_p12, %p3890_p9 }
 0x327   : > { %3898 = shalt.err (!%p3895_p13)
}
 0x328   : > { %s3953_s14 = smov 128   ;;  %s3954_s16 = smov 8  }
 0x329   : > { %3812 = dma.vmem_to_hbm [thread:$0]  (%p4040_p4), %s6323_s24, 4096, %s6321_s11, %s6329_s30, %s3953_s14, %s3953_s14, %s3954_s16  }
 0x32a PF: > { %p3818_p0 = scmp.ge.s32.totalorder %s3949_s10, 2  ;;  %s3361_s19 = sand.u32 1, %s3929_s27  }
 0x32b   : > { %s3362_s20 = scalar_lea.sflag [#allocation3], %s3361_s19 }
 0x32c   : > { %p3815_p1 = pnand %p3818_p0, %p4047_p8 }
 0x32e   : > { %p3816_p2 = pneg %p3815_p1 }
 0x330   : > { %3924 = dma.done.wait (%p3816_p2), %s3362_s20, 4096  }
 0x331   : > { %3926 = vsyncadd (%p3816_p2), %s3362_s20, 4294963200  ;;  %s21_s10 = sadd.s32 1, %s3949_s10   ;;  %s6868_s27 = smov %s3933_s28 }
 0x332   : > { %p18_p3 = scmp.ge.s32.totalorder %s21_s10, 4   ;;  %s6869_s28 = smov %s3937_s29 }
 0x333   : > { %s6870_s29 = smov %s4053_s18  ;;  %s6871_s30 = smov %s3945_s9 }
 0x334   : > { %s6872_s9 = smov %s6874_s13  ;;  %20 = sbr.rel (!%p18_p3) target bundleno = 4 (0x4), region = 88 }
 0x339   :  { %3367 = vsyncpa [#allocation3], 1 }
 0x33a   :  { %3369 = vsyncpa [#allocation3 + $0x1], 1 }

</bundles_post_ra>
